<compile_context>
chip_gen: v7x
topology: tpu7x:2x2x1
jax: 0.10.0
libtpu: 0.0.40
codegen_flags: <defaults>
</compile_context>

<pallas_src>
import functools

import jax
import jax.numpy as jnp
from jax.experimental import pallas as pl
from jax.experimental.pallas import tpu as pltpu


def _round_up(x, m):
    return ((x + m - 1) // m) * m


def odefunc_kernel(t_ref, x_ref, w1t_ref, w1x_ref, b1_ref,
                   w2_ref, b2_ref, w3_ref, b3_ref, out_ref):
    """One grid step processes TM collocation points laid out on lanes.

    Activations are (features, TM): batch on lanes, features on sublanes.
    """
    t_row = t_ref[...]                                  # (1, TM)
    x_row = x_ref[...]                                  # (1, TM)

    # lin1: the K=2 matmul is degenerate -> two broadcast FMAs on the VPU.
    # (H, 1) * (1, TM) broadcasts to (H, TM).
    u = w1t_ref[...] * t_row + w1x_ref[...] * x_row + b1_ref[...]
    u = jnp.sin(u)                                      # SiLU in this repo == sin

    # lin2 on the MXU: (H, H) @ (H, TM) + (H, 1)
    u = jnp.dot(w2_ref[...], u,
                preferred_element_type=jnp.float32) + b2_ref[...]
    u = jnp.sin(u)

    # lout: (O, H) @ (H, TM) + (O, 1) -> lane-dense (O, TM) store
    out_ref[...] = (jnp.dot(w3_ref[...], u,
                            preferred_element_type=jnp.float32)
                    + b3_ref[...]).astype(out_ref.dtype)


@functools.partial(jax.jit, static_argnames=("tile_m",))
def odefunc_forward(t, x, w1, b1, w2, b2, w3, b3, *, tile_m=512):
    """Pallas wrapper. t, x: arbitrary shapes, flattened to N points.

    Weights follow the original storage convention (in_features, out_features);
    the wrapper re-lays them out for the transposed (features, batch) kernel.
    """
    t_flat = t.reshape(-1).astype(jnp.float32)
    x_flat = x.reshape(-1).astype(jnp.float32)
    n = t_flat.shape[0]
    hdim = w1.shape[1]
    odim = w3.shape[1]

    # Batch dimension goes on lanes: keep the tile a multiple of 128 and pad N.
    tm = min(_round_up(tile_m, 128), _round_up(n, 128))
    n_pad = _round_up(n, tm)

    t_row = jnp.pad(t_flat, (0, n_pad - n)).reshape(1, n_pad)
    x_row = jnp.pad(x_flat, (0, n_pad - n)).reshape(1, n_pad)

    # (features, batch) layout: weights as (out, in), biases as columns.
    w1t = w1[0].reshape(hdim, 1)          # lin1 weight column for t
    w1x = w1[1].reshape(hdim, 1)          # lin1 weight column for x
    b1c = b1.reshape(hdim, 1)
    w2k = w2.T                            # (H_out, H_in)
    b2c = b2.reshape(hdim, 1)
    w3k = w3.T                            # (O, H)
    b3c = b3.reshape(odim, 1)

    grid = (n_pad // tm,)
    inv = lambda i: (0, 0)                # grid-invariant weight/bias blocks

    out_t = pl.pallas_call(
        odefunc_kernel,
        out_shape=jax.ShapeDtypeStruct((odim, n_pad), jnp.float32),
        grid_spec=pltpu.PrefetchScalarGridSpec(
            num_scalar_prefetch=0,
            grid=grid,
            in_specs=[
                pl.BlockSpec((1, tm), lambda i: (0, i)),    # t row, tiled on lanes
                pl.BlockSpec((1, tm), lambda i: (0, i)),    # x row, tiled on lanes
                pl.BlockSpec((hdim, 1), inv),               # w1 column (t)
                pl.BlockSpec((hdim, 1), inv),               # w1 column (x)
                pl.BlockSpec((hdim, 1), inv),               # b1
                pl.BlockSpec((hdim, hdim), inv),            # w2 (out, in)
                pl.BlockSpec((hdim, 1), inv),               # b2
                pl.BlockSpec((odim, hdim), inv),            # w3 (out, in)
                pl.BlockSpec((odim, 1), inv),               # b3
            ],
            out_specs=pl.BlockSpec((odim, tm), lambda i: (0, i)),
        ),
        compiler_params=pltpu.CompilerParams(
            dimension_semantics=("parallel",)),
    )(t_row, x_row, w1t, w1x, b1c, w2k, b2c, w3k, b3c)

    # Single transpose back to the module's (N, odim) layout; drop padding.
    return out_t[:, :n].T


def make_params(key, hidden_dim, output_dim):
    """Deterministic synthetic parameters (shapes match the nn.Linear layers)."""
    k1, k2, k3, k4, k5, k6 = jax.random.split(key, 6)
    # stored as (in_features, out_features); equivalent to PyTorch W.T
    w1 = jax.random.normal(k1, (2, hidden_dim), jnp.float32) * 0.5
    b1 = jax.random.normal(k2, (hidden_dim,), jnp.float32) * 0.1
    w2 = jax.random.normal(k3, (hidden_dim, hidden_dim), jnp.float32) * 0.2
    b2 = jax.random.normal(k4, (hidden_dim,), jnp.float32) * 0.1
    w3 = jax.random.normal(k5, (hidden_dim, output_dim), jnp.float32) * 0.2
    b3 = jax.random.normal(k6, (output_dim,), jnp.float32) * 0.1
    return w1, b1, w2, b2, w3, b3


def odefunc_ref(t, x, w1, b1, w2, b2, w3, b3):
    """Pure-JAX reference of ODEFunc.forward for correctness checking."""
    inputs_ = jnp.concatenate(
        [t.reshape(-1, 1), x.reshape(-1, 1)], axis=1).astype(jnp.float32)
    u = jnp.sin(inputs_ @ w1 + b1)
    u = jnp.sin(u @ w2 + b2)
    return u @ w3 + b3


if __name__ == "__main__":
    hidden_dim = 32
    output_dim = 4
    n = 1024  # number of (t, x) collocation points (2 grid steps at tile_m=512)

    key = jax.random.PRNGKey(0)
    kt, kx, kp = jax.random.split(key, 3)
    t = jax.random.uniform(kt, (n,), jnp.float32)
    x = jax.random.uniform(kx, (n,), jnp.float32)

    params = make_params(kp, hidden_dim, output_dim)

    out = odefunc_forward(t, x, *params)
    out = jax.block_until_ready(out)

    ref = odefunc_ref(t, x, *params)
    assert out.shape == (n, output_dim), out.shape
    assert jnp.allclose(out, ref, atol=1e-5, rtol=1e-5), (
        "mismatch vs reference: max abs err = "
        f"{float(jnp.max(jnp.abs(out - ref)))}")

    print("KERNEL_OK")
</pallas_src>

<mosaic_0001>
module attributes {stable_mosaic.version = 11 : i64} {
  func.func @odefunc_kernel(%arg0: i32, %arg1: memref<1x512xf32, #tpu.memory_space<vmem>>, %arg2: memref<1x512xf32, #tpu.memory_space<vmem>>, %arg3: memref<32x1xf32, #tpu.memory_space<vmem>>, %arg4: memref<32x1xf32, #tpu.memory_space<vmem>>, %arg5: memref<32x1xf32, #tpu.memory_space<vmem>>, %arg6: memref<32x32xf32, #tpu.memory_space<vmem>>, %arg7: memref<32x1xf32, #tpu.memory_space<vmem>>, %arg8: memref<4x32xf32, #tpu.memory_space<vmem>>, %arg9: memref<4x1xf32, #tpu.memory_space<vmem>>, %arg10: memref<4x512xf32, #tpu.memory_space<vmem>>) attributes {dimension_semantics = [#tpu.dimension_semantics<parallel>], iteration_bounds = array<i64: 2>, scalar_prefetch = 0 : i64, scratch_operands = 0 : i64, tpu.core_type = #tpu.core_type<tc>, window_params = [{transform_indices = @transform_0, window_bounds = array<i64: 1, 512>}, {transform_indices = @transform_1, window_bounds = array<i64: 1, 512>}, {pipeline_mode = #tpu.pipeline_mode<synchronous>, transform_indices = @transform_2, window_bounds = array<i64: 32, 1>}, {pipeline_mode = #tpu.pipeline_mode<synchronous>, transform_indices = @transform_3, window_bounds = array<i64: 32, 1>}, {pipeline_mode = #tpu.pipeline_mode<synchronous>, transform_indices = @transform_4, window_bounds = array<i64: 32, 1>}, {pipeline_mode = #tpu.pipeline_mode<synchronous>, transform_indices = @transform_5, window_bounds = array<i64: 32, 32>}, {pipeline_mode = #tpu.pipeline_mode<synchronous>, transform_indices = @transform_6, window_bounds = array<i64: 32, 1>}, {pipeline_mode = #tpu.pipeline_mode<synchronous>, transform_indices = @transform_7, window_bounds = array<i64: 4, 32>}, {pipeline_mode = #tpu.pipeline_mode<synchronous>, transform_indices = @transform_8, window_bounds = array<i64: 4, 1>}, {transform_indices = @transform_9, window_bounds = array<i64: 4, 512>}]} {
    %c0 = arith.constant 0 : index
    %c0_0 = arith.constant 0 : index
    %0 = vector.load %arg1[%c0, %c0_0] : memref<1x512xf32, #tpu.memory_space<vmem>>, vector<1x512xf32>
    %c0_1 = arith.constant 0 : index
    %c0_2 = arith.constant 0 : index
    %1 = vector.load %arg2[%c0_1, %c0_2] : memref<1x512xf32, #tpu.memory_space<vmem>>, vector<1x512xf32>
    %c0_3 = arith.constant 0 : index
    %c0_4 = arith.constant 0 : index
    %2 = vector.load %arg3[%c0_3, %c0_4] : memref<32x1xf32, #tpu.memory_space<vmem>>, vector<32x1xf32>
    %3 = vector.broadcast %2 : vector<32x1xf32> to vector<32x512xf32>
    %4 = vector.broadcast %0 : vector<1x512xf32> to vector<32x512xf32>
    %5 = arith.mulf %3, %4 : vector<32x512xf32>
    %c0_5 = arith.constant 0 : index
    %c0_6 = arith.constant 0 : index
    %6 = vector.load %arg4[%c0_5, %c0_6] : memref<32x1xf32, #tpu.memory_space<vmem>>, vector<32x1xf32>
    %7 = vector.broadcast %6 : vector<32x1xf32> to vector<32x512xf32>
    %8 = vector.broadcast %1 : vector<1x512xf32> to vector<32x512xf32>
    %9 = arith.mulf %7, %8 : vector<32x512xf32>
    %10 = arith.addf %5, %9 : vector<32x512xf32>
    %c0_7 = arith.constant 0 : index
    %c0_8 = arith.constant 0 : index
    %11 = vector.load %arg5[%c0_7, %c0_8] : memref<32x1xf32, #tpu.memory_space<vmem>>, vector<32x1xf32>
    %12 = vector.broadcast %11 : vector<32x1xf32> to vector<32x512xf32>
    %13 = arith.addf %10, %12 : vector<32x512xf32>
    %14 = math.sin %13 : vector<32x512xf32>
    %c0_9 = arith.constant 0 : index
    %c0_10 = arith.constant 0 : index
    %15 = vector.load %arg6[%c0_9, %c0_10] : memref<32x32xf32, #tpu.memory_space<vmem>>, vector<32x32xf32>
    %cst = arith.constant dense<0.000000e+00> : vector<32x512xf32>
    %16 = tpu.matmul %15, %14, %cst {dimension_numbers = #tpu.dot_dimension_numbers<[1], [0], [0], [1], [0, 0, 1, 1], [], []>} : vector<32x32xf32>, vector<32x512xf32>, vector<32x512xf32> -> vector<32x512xf32>
    %c0_11 = arith.constant 0 : index
    %c0_12 = arith.constant 0 : index
    %17 = vector.load %arg7[%c0_11, %c0_12] : memref<32x1xf32, #tpu.memory_space<vmem>>, vector<32x1xf32>
    %18 = vector.broadcast %17 : vector<32x1xf32> to vector<32x512xf32>
    %19 = arith.addf %16, %18 : vector<32x512xf32>
    %20 = math.sin %19 : vector<32x512xf32>
    %c0_13 = arith.constant 0 : index
    %c0_14 = arith.constant 0 : index
    %21 = vector.load %arg8[%c0_13, %c0_14] : memref<4x32xf32, #tpu.memory_space<vmem>>, vector<4x32xf32>
    %cst_15 = arith.constant dense<0.000000e+00> : vector<4x512xf32>
    %22 = tpu.matmul %21, %20, %cst_15 {dimension_numbers = #tpu.dot_dimension_numbers<[1], [0], [0], [1], [0, 0, 1, 1], [], []>} : vector<4x32xf32>, vector<32x512xf32>, vector<4x512xf32> -> vector<4x512xf32>
    %c0_16 = arith.constant 0 : index
    %c0_17 = arith.constant 0 : index
    %23 = vector.load %arg9[%c0_16, %c0_17] : memref<4x1xf32, #tpu.memory_space<vmem>>, vector<4x1xf32>
    %24 = vector.broadcast %23 : vector<4x1xf32> to vector<4x512xf32>
    %25 = arith.addf %22, %24 : vector<4x512xf32>
    %c0_18 = arith.constant 0 : index
    %c0_19 = arith.constant 0 : index
    %26 = vector.load %arg10[%c0_18, %c0_19] : memref<4x512xf32, #tpu.memory_space<vmem>>, vector<4x512xf32>
    tpu.vector_store %arg10[%c0_18, %c0_19], %25 {strides = array<i32>} : memref<4x512xf32, #tpu.memory_space<vmem>>, vector<4x512xf32>,
    return
  }
  func.func @transform_0(%arg0: i32) -> (i32, i32) {
    %c0_i32 = arith.constant 0 : i32
    %c0_i32_0 = arith.constant 0 : i32
    return %c0_i32, %arg0 : i32, i32
  }
  func.func @transform_1(%arg0: i32) -> (i32, i32) {
    %c0_i32 = arith.constant 0 : i32
    %c0_i32_0 = arith.constant 0 : i32
    return %c0_i32, %arg0 : i32, i32
  }
  func.func @transform_2(%arg0: i32) -> (i32, i32) {
    %c0_i32 = arith.constant 0 : i32
    %c0_i32_0 = arith.constant 0 : i32
    %c0_i32_1 = arith.constant 0 : i32
    return %c0_i32, %c0_i32_0 : i32, i32
  }
  func.func @transform_3(%arg0: i32) -> (i32, i32) {
    %c0_i32 = arith.constant 0 : i32
    %c0_i32_0 = arith.constant 0 : i32
    %c0_i32_1 = arith.constant 0 : i32
    return %c0_i32, %c0_i32_0 : i32, i32
  }
  func.func @transform_4(%arg0: i32) -> (i32, i32) {
    %c0_i32 = arith.constant 0 : i32
    %c0_i32_0 = arith.constant 0 : i32
    %c0_i32_1 = arith.constant 0 : i32
    return %c0_i32, %c0_i32_0 : i32, i32
  }
  func.func @transform_5(%arg0: i32) -> (i32, i32) {
    %c0_i32 = arith.constant 0 : i32
    %c0_i32_0 = arith.constant 0 : i32
    %c0_i32_1 = arith.constant 0 : i32
    return %c0_i32, %c0_i32_0 : i32, i32
  }
  func.func @transform_6(%arg0: i32) -> (i32, i32) {
    %c0_i32 = arith.constant 0 : i32
    %c0_i32_0 = arith.constant 0 : i32
    %c0_i32_1 = arith.constant 0 : i32
    return %c0_i32, %c0_i32_0 : i32, i32
  }
  func.func @transform_7(%arg0: i32) -> (i32, i32) {
    %c0_i32 = arith.constant 0 : i32
    %c0_i32_0 = arith.constant 0 : i32
    %c0_i32_1 = arith.constant 0 : i32
    return %c0_i32, %c0_i32_0 : i32, i32
  }
  func.func @transform_8(%arg0: i32) -> (i32, i32) {
    %c0_i32 = arith.constant 0 : i32
    %c0_i32_0 = arith.constant 0 : i32
    %c0_i32_1 = arith.constant 0 : i32
    return %c0_i32, %c0_i32_0 : i32, i32
  }
  func.func @transform_9(%arg0: i32) -> (i32, i32) {
    %c0_i32 = arith.constant 0 : i32
    %c0_i32_0 = arith.constant 0 : i32
    return %c0_i32, %arg0 : i32, i32
  }
}

</mosaic_0001>

<bundles_post_ra>
// kernel: odefunc_forward.1
= control target key start
LH: loop header
LB: loop body
LE: loop exit
PB: predicated region body
PF: predicated region fallthrough
CT: control target
= control target key end

     0   :  { %14 = vsyncpa [#allocation3], 0  ;;  %s8517_s0 = inlined_call_operand.vmem [shape: f32[1,1024], index: 0, kind: input, shape index: {}]   ;;  %s8518_s1 = inlined_call_operand.vmem [shape: f32[1,1024], index: 1, kind: input, shape index: {}]   ;;  %s8519_s2 = inlined_call_operand.vmem [shape: f32[32,1], index: 2, kind: input, shape index: {}]   ;;  %s8520_s3 = inlined_call_operand.vmem [shape: f32[32,1], index: 3, kind: input, shape index: {}]   ;;  %s8521_s4 = inlined_call_operand.vmem [shape: f32[32,1], index: 4, kind: input, shape index: {}]   ;;  %s8522_s5 = inlined_call_operand.vmem [shape: f32[32,32], index: 5, kind: input, shape index: {}]   ;;  %s8523_s6 = inlined_call_operand.vmem [shape: f32[32,1], index: 6, kind: input, shape index: {}]   ;;  %s8524_s7 = inlined_call_operand.vmem [shape: f32[4,32], index: 7, kind: input, shape index: {}]   ;;  %s8525_s8 = inlined_call_operand.vmem [shape: f32[4,1], index: 8, kind: input, shape index: {}]   ;;  %s8526_s9 = inlined_call_operand.hbm [shape: f32[4,1024], index: 9, kind: output, shape index: {}]  }
   0x1   :  { %16 = vsyncpa [#allocation3 + $0x1], 0  ;;  %s4930_s30 = smov 0   ;;  %s4932_s10 = smov 0  }
   0x2   :  { %s4934_s11 = smov 0   ;;  %s4936_s12 = smov 0  }
   0x3 LB: > { %s4951_s13 = sadd.s32 4294967295, %s4869_s12   ;;  %s4319_s14 = sadd.s32 4294967294, %s4869_s12   ;;  %s4869_s12 = sphi %s4936_s12, %s8918_s12   ;;  %s4865_s11 = sphi %s4934_s11, %s8917_s11   ;;  %s4861_s10 = sphi %s4932_s10, %s8916_s10   ;;  %s4857_s30 = sphi %s4930_s30, %s8915_s30  }
   0x4   : > { %s4955_s15 = sadd.s32 1, %s4869_s12   ;;  %s228_s16 = sadd.s32 1, %s4865_s11 }
   0x5   : > { %s225_s17 = ssub.s32 %s4869_s12, %s4955_s15  ;;  %p238_p0 = scmp.ne.s32.totalorder %s4865_s11, %s4861_s10 }
   0x6   : > { %p226_p1 = scmp.eq.s32.totalorder %s225_s17, 0  ;;  %p239_p2 = scmp.eq.s32.totalorder %s4951_s13, 1 }
   0x7   : > { %p244_p3 = scmp.ne.s32.totalorder %s4861_s10, %s4857_s30  ;;  %p245_p4 = scmp.eq.s32.totalorder %s4319_s14, 1 }
   0x8   : > { %s4966_s18 = scalar_select %p226_p1, %s4865_s11, %s228_s16  }
   0x9   : > { %p4968_p5 = por %p239_p2, %p238_p0  ;;  %p4972_p6 = por %p245_p4, %p244_p3 }
   0xa   : > { %p4322_p7 = scmp.ge.s32.totalorder %s4869_s12, 1  ;;  %p300_p8 = scmp.lt.s32.totalorder %s4869_s12, 3 }
   0xc   : > { %p301_p9 = pnand %p4322_p7, %p300_p8 }
   0xe   : > { %304 = sbr.rel (%p301_p9) target bundleno = 1425 (0x591), region = 56 }
  0x15   : > { %v413_v0 = vld [vmem:[%s8520_s3] sm:$0xff]  ;;  %v377_v2 = vlaneseq  ;;  %s4324_s25 = sshll.u32 %s4951_s13, 2  ;;  %v4871_v3 = vmov 0   ;;  %v414_v5 = vld [vmem:[%s8520_s3 + $0x8] sm:$0xff]  ;;  %v355_v11 = vld [vmem:[%s8519_s2 + $0x18] sm:$0xff]  ;;  %s336_s24 = sand.u32 1, %s4861_s10  }
  0x16   : > { %v352_v1 = vld [vmem:[%s8519_s2] sm:$0xff]  ;;  %4678 = vset.pattern.permute.xlu1 %v4871_v3  ;;  %4677 = vset.pattern.permute.xlu0 %v4871_v3  ;;  %p340_p10 = scmp.lt.s32.totalorder %s4324_s25, 7  ;;  %v353_v6 = vld [vmem:[%s8519_s2 + $0x8] sm:$0xff]  ;;  %v354_v12 = vld [vmem:[%s8519_s2 + $0x10] sm:$0xff]  ;;  %s4323_s26 = sshll.u32 %s336_s24, 4 }
  0x17   : > { %419 = vperm.xlu1 %4678, %v413_v0   ;;  %358 = vperm.xlu0 %4677, %v352_v1   ;;  %v4985_v4 = vshrl.u32 %v377_v2, 7  ;;  %v416_v17 = vld [vmem:[%s8520_s3 + $0x18] sm:$0xff]  ;;  %v415_v18 = vld [vmem:[%s8520_s3 + $0x10] sm:$0xff]  ;;  %v491_v19 = vld [vmem:[%s8521_s4 + $0x8] sm:$0xff]  ;;  %s338_s27 = scalar_lea.vmem [#allocation2], %s4323_s26  ;;  %s4469_s28 = sshll.u32 %s4951_s13, 8 }
  0x18   : > { %s8920_s25 = smov (!%p340_p10, %s4324_s25), 7  ;;  %v490_v20 = vld [vmem:[%s8521_s4] sm:$0xff]  ;;  %v493_v21 = vld [vmem:[%s8521_s4 + $0x18] sm:$0xff]  ;;  %v492_v22 = vld [vmem:[%s8521_s4 + $0x10] sm:$0xff]  ;;  %s8475_s16 = scalar_lea.hbm %s8526_s9, %s4469_s28 }
  0x19   : > { %v379_v7 = vsub.s32 0, %v4985_v4  ;;  %v387_v8 = vsub.s32 2, %v4985_v4  ;;  %s347_s17 = scalar_lea.vmem %s8518_s1, %s8920_s25  ;;  %s342_s23 = scalar_lea.vmem %s8517_s0, %s8920_s25  ;;  %v2199_v23 = vld [vmem:[%s8523_s6 + $0x8] sm:$0xff]  ;;  %v2198_v24 = vld [vmem:[%s8523_s6] sm:$0xff]  ;;  %v2201_v25 = vld [vmem:[%s8523_s6 + $0x18] sm:$0xff]  ;;  %v383_v34 = vsub.s32 1, %v4985_v4 }
  0x1a   : > { %v5001_v9 = vld [vmem:[%s347_s17] sm:$0xf]  ;;  %v2200_v26 = vld [vmem:[%s8523_s6 + $0x10] sm:$0xff]  ;;  %v391_v35 = vsub.s32 3, %v4985_v4  ;;  %s4254_s25 = sshll.u32 %s338_s27, 4  ;;  %s4240_s17 = scalar_lea.sflag [#allocation3], %s336_s24  ;;  %s8477_s25 = int_to_ptr.vmem [resolvable:$true] %s4254_s25 }
  0x1b   : > { %424 = vperm.xlu1 %4678, %v414_v5   ;;  %363 = vperm.xlu0 %4677, %v353_v6   ;;  %v350_v10 = vld [vmem:[%s342_s23] sm:$0xf]  ;;  %v5010_v13 = vrot.slane %v5001_v9, %v379_v7  ;;  %v5013_v14 = vrot.slane %v5001_v9, %v387_v8  ;;  %v445_v58 = vrot.slane %v5001_v9, %v383_v34  ;;  %s4807_s21 = scalar_lea.vmem %s8477_s25, 256  ;;  %s4879_s13 = smov [#allocation2]  }
  0x1c   : > { %v380_v15 = vrot.slane %v350_v10, %v379_v7  ;;  %v388_v16 = vrot.slane %v350_v10, %v387_v8  ;;  %v4078_v27 = vld [vmem:[%s8525_s8] sm:$0xf]  ;;  %v384_v44 = vrot.slane %v350_v10, %v383_v34  ;;  %v392_v45 = vrot.slane %v350_v10, %v391_v35  ;;  %p4808_p11 = scmp.ne.s32.totalorder %s8477_s25, %s4807_s21  ;;  %s4811_s22 = sshll.u32 %s4879_s13, 4  ;;  %s4812_s22 = int_to_ptr.vmem [resolvable:$false] %s4811_s22 }
  0x1d   : > { %v453_v59 = vrot.slane %v5001_v9, %v391_v35  ;;  %s4813_s23 = scalar_lea.vmem %s4812_s22, 512  ;;  %p4814_p0 = scmp.lt.s32.totalorder %s8477_s25, %s4812_s22 }
  0x1e   : > { %p4809_p12 = pnand %p4808_p11, %p4968_p5  ;;  %p4815_p1 = scmp.lt.s32.totalorder %s4813_s23, %s4807_s21 }
  0x1f   : > { %373 = vperm.xlu1 %4678, %v355_v11   ;;  %368 = vperm.xlu0 %4677, %v354_v12  }
  0x20   : > { %p4810_p13 = pneg %p4809_p12  ;;  %p4816_p2 = por %p4815_p1, %p4814_p0 }
  0x22   : > { %p4817_p3 = pnand %p4816_p2, %p4810_p13 }
  0x23   : > { %434 = vperm.xlu1 %4678, %v416_v17   ;;  %429 = vperm.xlu0 %4677, %v415_v18  }
  0x27   : > { %501 = vperm.xlu1 %4678, %v491_v19   ;;  %496 = vperm.xlu0 %4677, %v490_v20  }
  0x2b   : > { %511 = vperm.xlu1 %4678, %v493_v21   ;;  %506 = vperm.xlu0 %4677, %v492_v22  }
  0x2f   : > { %2209 = vperm.xlu1 %4678, %v2199_v23   ;;  %2204 = vperm.xlu0 %4677, %v2198_v24  }
  0x33   : > { %2219 = vperm.xlu1 %4678, %v2201_v25   ;;  %2214 = vperm.xlu0 %4677, %v2200_v26  }
  0x37   : > { %4081 = vperm.xlu0 %4677, %v4078_v27  }
  0x96   : > { %v5048_v28 = vpop.permute.xlu1 %419  ;;  %v5050_v29 = vpop.permute.xlu0 %358 }
  0x97   : > { %v458_v30 = vmul.f32 %v5010_v13, %v5048_v28  ;;  %v460_v31 = vmul.f32 %v5013_v14, %v5048_v28  ;;  %v397_v32 = vmul.f32 %v380_v15, %v5050_v29  ;;  %v399_v33 = vmul.f32 %v388_v16, %v5050_v29 }
  0x98   : > { %v459_v25 = vmul.f32 %v445_v58, %v5048_v28  ;;  %v398_v26 = vmul.f32 %v384_v44, %v5050_v29 }
  0x99   : > { %v474_v38 = vadd.f32 %v458_v30, %v397_v32  ;;  %v476_v39 = vadd.f32 %v460_v31, %v399_v33  ;;  %v461_v31 = vmul.f32 %v453_v59, %v5048_v28  ;;  %v400_v32 = vmul.f32 %v392_v45, %v5050_v29 }
  0x9a   : > { %v425_v36 = vpop.permute.xlu1 %424  ;;  %v364_v37 = vpop.permute.xlu0 %363 }
  0x9b   : > { %v462_v40 = vmul.f32 %v5010_v13, %v425_v36  ;;  %v464_v41 = vmul.f32 %v5013_v14, %v425_v36  ;;  %v401_v42 = vmul.f32 %v380_v15, %v364_v37  ;;  %v403_v43 = vmul.f32 %v388_v16, %v364_v37 }
  0x9c   : > { %v463_v20 = vmul.f32 %v445_v58, %v425_v36  ;;  %v402_v21 = vmul.f32 %v384_v44, %v364_v37  ;;  %v465_v22 = vmul.f32 %v453_v59, %v425_v36  ;;  %v404_v23 = vmul.f32 %v392_v45, %v364_v37 }
  0x9d   : > { %v478_v48 = vadd.f32 %v462_v40, %v401_v42  ;;  %v480_v49 = vadd.f32 %v464_v41, %v403_v43  ;;  %v475_v36 = vadd.f32 %v459_v25, %v398_v26  ;;  %v477_v40 = vadd.f32 %v461_v31, %v400_v32 }
  0x9e   : > { %v374_v46 = vpop.permute.xlu1 %373  ;;  %v369_v47 = vpop.permute.xlu0 %368  ;;  %v479_v24 = vadd.f32 %v463_v20, %v402_v21  ;;  %v481_v27 = vadd.f32 %v465_v22, %v404_v23 }
  0x9f   : > { %v409_v50 = vmul.f32 %v380_v15, %v374_v46  ;;  %v410_v51 = vmul.f32 %v384_v44, %v374_v46  ;;  %v411_v52 = vmul.f32 %v388_v16, %v374_v46  ;;  %v412_v53 = vmul.f32 %v392_v45, %v374_v46 }
  0xa0   : > { %v405_v54 = vmul.f32 %v380_v15, %v369_v47  ;;  %v406_v55 = vmul.f32 %v384_v44, %v369_v47  ;;  %v407_v56 = vmul.f32 %v388_v16, %v369_v47  ;;  %v408_v57 = vmul.f32 %v392_v45, %v369_v47 }
  0xa2   : > { %v435_v60 = vpop.permute.xlu1 %434  ;;  %v430_v61 = vpop.permute.xlu0 %429 }
  0xa3   : > { %v470_v62 = vmul.f32 %v5010_v13, %v435_v60  ;;  %v471_v63 = vmul.f32 %v445_v58, %v435_v60  ;;  %v472_v0 = vmul.f32 %v5013_v14, %v435_v60  ;;  %v473_v1 = vmul.f32 %v453_v59, %v435_v60 }
  0xa4   : > { %v466_v2 = vmul.f32 %v5010_v13, %v430_v61  ;;  %v467_v3 = vmul.f32 %v445_v58, %v430_v61  ;;  %v468_v4 = vmul.f32 %v5013_v14, %v430_v61  ;;  %v469_v5 = vmul.f32 %v453_v59, %v430_v61 }
  0xa5   : > { %v486_v6 = vadd.f32 %v470_v62, %v409_v50  ;;  %v487_v7 = vadd.f32 %v471_v63, %v410_v51  ;;  %v488_v8 = vadd.f32 %v472_v0, %v411_v52  ;;  %v5068_v10 = vadd.f32 %v473_v1, %v412_v53 }
  0xa6   : > { %v502_v9 = vpop.permute.xlu1 %501  ;;  %v497_v11 = vpop.permute.xlu0 %496  ;;  %v482_v12 = vadd.f32 %v466_v2, %v405_v54  ;;  %v5070_v15 = vadd.f32 %v467_v3, %v406_v55  ;;  %v484_v16 = vadd.f32 %v468_v4, %v407_v56  ;;  %v5072_v17 = vadd.f32 %v469_v5, %v408_v57 }
  0xa7   : > { %v5074_v18 = vadd.f32 %v502_v9, %v478_v48  ;;  %v5076_v13 = vadd.f32 %v502_v9, %v480_v49  ;;  %v5078_v19 = vadd.f32 %v497_v11, %v474_v38  ;;  %v5080_v14 = vadd.f32 %v497_v11, %v476_v39 }
  0xa8   : > { %v5084_v30 = vadd.f32 %v502_v9, %v479_v24  ;;  %v5088_v33 = vadd.f32 %v502_v9, %v481_v27  ;;  %v5094_v41 = vadd.f32 %v497_v11, %v475_v36  ;;  %v5096_v28 = vadd.f32 %v497_v11, %v477_v40 }
  0xa9   : > { %8649 = vst [vmem:[#allocation5_spill] sm:$0xff] %v5076_v13  ;;  %8650 = vst [vmem:[#allocation6_spill] sm:$0xff] %v5080_v14  ;;  %v949_v34 = vand.u32 2139095040, %v5074_v18  ;;  %v1157_v38 = vand.u32 2139095040, %v5076_v13  ;;  %v533_v45 = vand.u32 2139095040, %v5078_v19  ;;  %v741_v50 = vand.u32 2139095040, %v5080_v14 }
  0xaa   : > { %v1053_v35 = vand.u32 2139095040, %v5084_v30  ;;  %v512_v37 = vpop.permute.xlu1 %511  ;;  %v1261_v39 = vand.u32 2139095040, %v5088_v33  ;;  %v5103_v46 = vpop.permute.xlu0 %506  ;;  %v637_v49 = vand.u32 2139095040, %v5094_v41  ;;  %v845_v56 = vand.u32 2139095040, %v5096_v28 }
  0xab   : > { %v950_v42 = vshrl.u32 %v949_v34, 23  ;;  %v5098_v29 = vadd.f32 %v512_v37, %v486_v6  ;;  %v5100_v44 = vadd.f32 %v512_v37, %v487_v7  ;;  %v1158_v47 = vshrl.u32 %v1157_v38, 23 }
  0xac   : > { %v1054_v43 = vshrl.u32 %v1053_v35, 23  ;;  %v1262_v48 = vshrl.u32 %v1261_v39, 23  ;;  %v5107_v52 = vadd.f32 %v512_v37, %v488_v8  ;;  %v5113_v57 = vadd.f32 %v5103_v46, %v482_v12 }
  0xad   : > { %8651 = vst [vmem:[#allocation7_spill] sm:$0xff] %v5098_v29  ;;  %8652 = vst [vmem:[#allocation8_spill] sm:$0xff] %v5100_v44  ;;  %v4342_v51 = vadd.s32 4294967169, %v950_v42  ;;  %v1781_v53 = vand.u32 2139095040, %v5098_v29  ;;  %v1885_v54 = vand.u32 2139095040, %v5100_v44  ;;  %v4350_v59 = vadd.s32 4294967169, %v1158_v47 }
  0xae   : > { %8653 = vst [vmem:[#allocation9_spill] sm:$0xff] %v5107_v52  ;;  %v4346_v55 = vadd.s32 4294967169, %v1054_v43  ;;  %8654 = vst [vmem:[#allocation10_spill] sm:$0xff] %v5113_v57  ;;  %v4354_v60 = vadd.s32 4294967169, %v1262_v48  ;;  %v5116_v62 = vadd.f32 %v5103_v46, %v484_v16  ;;  %v534_v0 = vshrl.u32 %v533_v45, 23 }
  0xaf   : > { %v1782_v58 = vshrl.u32 %v1781_v53, 23  ;;  %v1886_v61 = vshrl.u32 %v1885_v54, 23  ;;  %v956_v63 = vadd.s32 1, %v4342_v51  ;;  %v638_v1 = vshrl.u32 %v637_v49, 23 }
  0xb0   : > { %8655 = vst [vmem:[#allocation11_spill] sm:$0xff] %v5116_v62  ;;  %v742_v2 = vshrl.u32 %v741_v50, 23  ;;  %v1060_v3 = vadd.s32 1, %v4346_v55  ;;  %v846_v4 = vshrl.u32 %v845_v56, 23  ;;  %v1164_v6 = vadd.s32 1, %v4350_v59 }
  0xb1   : > { %v4374_v5 = vadd.s32 4294967169, %v1782_v58  ;;  %v1268_v7 = vadd.s32 1, %v4354_v60  ;;  %v4378_v8 = vadd.s32 4294967169, %v1886_v61  ;;  %vm957_vm0 = vcmp.gt.s32.totalorder %v956_v63, 0 }
  0xb2   : > { %v4326_v9 = vadd.s32 4294967169, %v534_v0  ;;  %v4330_v11 = vadd.s32 4294967169, %v638_v1  ;;  %v4334_v12 = vadd.s32 4294967169, %v742_v2  ;;  %vm1061_vm1 = vcmp.gt.s32.totalorder %v1060_v3, 0 }
  0xb3   : > { %v4338_v20 = vadd.s32 4294967169, %v846_v4  ;;  %v5119_v21 = vadd.f32 %v512_v37, %v5068_v10  ;;  %v1989_v16 = vand.u32 2139095040, %v5107_v52  ;;  %v1788_v22 = vadd.s32 1, %v4374_v5 }
  0xb4   : > { %v958_v23 = vsel %vm957_vm0, %v956_v63, 0  ;;  %vm1165_vm2 = vcmp.gt.s32.totalorder %v1164_v6, 0  ;;  %vm1269_vm3 = vcmp.gt.s32.totalorder %v1268_v7, 0  ;;  %v1892_v24 = vadd.s32 1, %v4378_v8 }
  0xb5   : > { %8656 = vst [vmem:[#allocation12_spill] sm:$0xff] %v5119_v21  ;;  %v1062_v25 = vsel %vm1061_vm1, %v1060_v3, 0  ;;  %v540_v26 = vadd.s32 1, %v4326_v9  ;;  %v644_v27 = vadd.s32 1, %v4330_v11  ;;  %v748_v31 = vadd.s32 1, %v4334_v12 }
  0xb6   : > { %v852_v32 = vadd.s32 1, %v4338_v20  ;;  %v1990_v34 = vshrl.u32 %v1989_v16, 23  ;;  %v2093_v35 = vand.u32 2139095040, %v5119_v21  ;;  %v5123_v36 = vshrl.u32 %v958_v23, 5 }
  0xb7   : > { %v1166_v38 = vsel %vm1165_vm2, %v1164_v6, 0  ;;  %v1270_v10 = vsel %vm1269_vm3, %v1268_v7, 0  ;;  %vm1789_vm4 = vcmp.gt.s32.totalorder %v1788_v22, 0  ;;  %v5125_v37 = vand.u32 31, %v958_v23 }
  0xb8   : > { %8657 = vst [vmem:[#allocation13_spill] sm:$0xff] %v5123_v36  ;;  %v5127_v39 = vshrl.u32 %v1062_v25, 5  ;;  %v5129_v40 = vand.u32 31, %v1062_v25  ;;  %vm1893_vm5 = vcmp.gt.s32.totalorder %v1892_v24, 0  ;;  %vm541_vm6 = vcmp.gt.s32.totalorder %v540_v26, 0 }
  0xb9   : > { %vm645_vm7 = vcmp.gt.s32.totalorder %v644_v27, 0  ;;  %vm749_vm8 = vcmp.gt.s32.totalorder %v748_v31, 0  ;;  %v5133_v42 = vadd.f32 %v5103_v46, %v5070_v15  ;;  %vm853_vm9 = vcmp.gt.s32.totalorder %v852_v32, 0 }
  0xba   : > { %v1790_v43 = vsel %vm1789_vm4, %v1788_v22, 0  ;;  %v4382_v45 = vadd.s32 4294967169, %v1990_v34  ;;  %v2094_v47 = vshrl.u32 %v2093_v35, 23  ;;  %v5135_v48 = vshrl.u32 %v1166_v38, 5 }
  0xbb   : > { %8658 = vst [vmem:[#allocation14_spill] sm:$0xff] %v5133_v42  ;;  %v5137_v49 = vand.u32 31, %v1166_v38  ;;  %v1894_v50 = vsel %vm1893_vm5, %v1892_v24, 0  ;;  %v1365_v51 = vand.u32 2139095040, %v5113_v57  ;;  %v5140_v53 = vshrl.u32 %v1270_v10, 5 }
  0xbc   : > { %8659 = vst [vmem:[#allocation15_spill] sm:$0xff] %v5135_v48  ;;  %v5142_v54 = vand.u32 31, %v1270_v10  ;;  %v542_v55 = vsel %vm541_vm6, %v540_v26, 0  ;;  %v646_v56 = vsel %vm645_vm7, %v644_v27, 0  ;;  %v750_v58 = vsel %vm749_vm8, %v748_v31, 0 }
  0xbd   : > { %8660 = vst [vmem:[#allocation16_spill] sm:$0xff] %v5137_v49  ;;  %v854_v15 = vsel %vm853_vm9, %v852_v32, 0  ;;  %v5144_v59 = vand.u32 31, %v1790_v43  ;;  %v1469_v60 = vand.u32 2139095040, %v5133_v42  ;;  %v5148_v61 = vsub.s32 32, %v5125_v37 }
  0xbe   : > { %v5150_v63 = vand.u32 31, %v1894_v50  ;;  %v1996_v0 = vadd.s32 1, %v4382_v45  ;;  %v4386_v1 = vadd.s32 4294967169, %v2094_v47  ;;  %v5153_v2 = vsub.s32 32, %v5129_v40 }
  0xbf   : > { %8661 = vst [vmem:[#allocation17_spill] sm:$0xff] %v5144_v59  ;;  %v5155_v3 = vand.u32 31, %v542_v55  ;;  %v5157_v4 = vand.u32 31, %v646_v56  ;;  %v1366_v5 = vshrl.u32 %v1365_v51, 23  ;;  %v5160_v6 = vsub.s32 32, %v5137_v49 }
  0xc0   : > { %8662 = vst [vmem:[#allocation18_spill] sm:$0xff] %v5150_v63  ;;  %v5163_v7 = vsub.s32 32, %v5142_v54  ;;  %v5165_v8 = vand.u32 31, %v750_v58  ;;  %v5167_v9 = vand.u32 31, %v854_v15  ;;  %v5169_v11 = vshrl.u32 %v542_v55, 5 }
  0xc1   : > { %8663 = vst [vmem:[#allocation19_spill] sm:$0xff] %v5160_v6  ;;  %v5172_v12 = vsub.s32 32, %v5144_v59  ;;  %v5176_v20 = vadd.f32 %v5103_v46, %v5072_v17  ;;  %v1470_v16 = vshrl.u32 %v1469_v60, 23  ;;  %v5179_v22 = vsub.s32 32, %v5150_v63 }
  0xc2   : > { %8664 = vst [vmem:[#allocation20_spill] sm:$0xff] %v5165_v8  ;;  %vm1997_vm10 = vcmp.gt.s32.totalorder %v1996_v0, 0  ;;  %v2100_v23 = vadd.s32 1, %v4386_v1  ;;  %v1573_v24 = vand.u32 2139095040, %v5116_v62  ;;  %v5183_v25 = vsub.s32 32, %v5155_v3 }
  0xc3   : > { %8665 = vst [vmem:[#allocation21_spill] sm:$0xff] %v5172_v12  ;;  %8666 = vst [vmem:[#allocation22_spill] sm:$0xff] %v5176_v20  ;;  %v5185_v26 = vshrl.u32 %v646_v56, 5  ;;  %v5188_v27 = vsub.s32 32, %v5157_v4  ;;  %v4358_v31 = vadd.s32 4294967169, %v1366_v5  ;;  %v5190_v32 = vshrl.u32 %v750_v58, 5 }
  0xc4   : > { %8667 = vst [vmem:[#allocation23_spill] sm:$0xff] %v5179_v22  ;;  %v5193_v17 = vsub.s32 32, %v5165_v8  ;;  %v5195_v46 = vshrl.u32 %v854_v15, 5  ;;  %v5198_v34 = vsub.s32 32, %v5167_v9  ;;  %v8553_v35 = vmov 920167782  }
  0xc5   : > { %8668 = vst [vmem:[#allocation24_spill] sm:$0xff] %v5190_v32  ;;  %v1805_v38 = vshrl.u32 %v8553_v35, %v5172_v12  ;;  %v1998_v10 = vsel %vm1997_vm10, %v1996_v0, 0  ;;  %v4362_v45 = vadd.s32 4294967169, %v1470_v16  ;;  %v1677_v47 = vand.u32 2139095040, %v5176_v20 }
  0xc6   : > { %8669 = vst [vmem:[#allocation25_spill] sm:$0xff] %v5193_v17  ;;  %v8527_v51 = vmov 1326507024   ;;  %v1909_v56 = vshrl.u32 %v8553_v35, %v5179_v22  ;;  %vm2101_vm11 = vcmp.gt.s32.totalorder %v2100_v23, 0  ;;  %v5207_v58 = vshrl.u32 %v1573_v24, 23 }
  0xc7   : > { %v1808_v55 = vshrl.u32 %v8527_v51, %v5172_v12  ;;  %v5209_v15 = vshrl.u32 %v1790_v43, 5  ;;  %v8541_v60 = vmov 2102212464   ;;  %v5213_v0 = vshrl.u32 %v1894_v50, 5 }
  0xc8   : > { %v1804_v1 = vshll.u32 %v8541_v60, %v5144_v59  ;;  %v1372_v5 = vadd.s32 1, %v4358_v31  ;;  %v1807_v16 = vshll.u32 %v8553_v35, %v5144_v59  ;;  %v1908_v51 = vshll.u32 %v8541_v60, %v5150_v63 }
  0xc9   : > { %8670 = vst [vmem:[#allocation26_spill] sm:$0xff] %v5209_v15  ;;  %8671 = vst [vmem:[#allocation27_spill] sm:$0xff] %v5213_v0  ;;  %v8672_v52 = vmov 1326507024   ;;  %v5221_v24 = vand.u32 31, %v1998_v10  ;;  %v2102_v12 = vsel %vm2101_vm11, %v2100_v23, 0  ;;  %v1911_v59 = vshll.u32 %v8553_v35, %v5150_v63 }
  0xca   : > { %v1912_v62 = vshrl.u32 %v8672_v52, %v5179_v22  ;;  %v5223_v43 = vor.u32 %v1805_v38, %v1804_v1  ;;  %v5225_v29 = vadd.s32 1, %v4362_v45  ;;  %v5227_v57 = vshrl.u32 %v1677_v47, 23 }
  0xcb   : > { %8673 = vst [vmem:[#allocation28_spill] sm:$0xff] %v5221_v24  ;;  %v1809_v50 = vor.u32 %v1808_v55, %v1807_v16  ;;  %v5229_v31 = vor.u32 %v1909_v56, %v1908_v51  ;;  %vm1813_vm12 = vcmp.lt.s32.totalorder %v5209_v15, 4  ;;  %vm1917_vm13 = vcmp.lt.s32.totalorder %v5213_v0, 4 }
  0xcc   : > { %8674 = vst [vmem:[#allocation29_spill] sm:$0xff] %v5223_v43  ;;  %v5236_v21 = vshrl.u32 %v1998_v10, 5  ;;  %vm1373_vm14 = vcmp.gt.s32.totalorder %v1372_v5, 0  ;;  %v1913_v23 = vor.u32 %v1912_v62, %v1911_v59  ;;  %v5239_v38 = vsub.s32 32, %v5221_v24 }
  0xcd   : > { %8675 = vst [vmem:[#allocation30_spill] sm:$0xff] %v5229_v31  ;;  %v5241_v45 = vshrl.u32 %v2102_v12, 5  ;;  %v5243_v47 = vand.u32 31, %v2102_v12  ;;  %v5248_v51 = vsel %vm1813_vm12, %v5223_v43, 920167782  ;;  %v5269_v60 = vshll.u32 %v8553_v35, %v5221_v24 }
  0xce   : > { %8676 = vst [vmem:[#allocation31_spill] sm:$0xff] %v5236_v21  ;;  %8677 = vst [vmem:[#allocation32_spill] sm:$0xff] %v5239_v38  ;;  %v8681_v55 = vmov 2102212464   ;;  %v8546_v10 = vmov 2475754826   ;;  %v5296_v20 = vshrl.u32 %v8672_v52, %v5239_v38  ;;  %v664_v0 = vshrl.u32 %v8672_v52, %v5188_v27 }
  0xcf   : > { %8678 = vst [vmem:[#allocation33_spill] sm:$0xff] %v5241_v45  ;;  %8679 = vst [vmem:[#allocation34_spill] sm:$0xff] %v5243_v47  ;;  %v5252_v56 = vshll.u32 %v8681_v55, %v5221_v24  ;;  %v652_v62 = vshrl.u32 %v8546_v10, %v5188_v27  ;;  %v8548_v59 = vmov 2131351028   ;;  %v5260_v12 = vsel %vm1813_vm12, %v1809_v50, 1326507024 }
  0xd0   : > { %8680 = vst [vmem:[#allocation35_spill] sm:$0xff] %v5248_v51  ;;  %v655_v1 = vshrl.u32 %v8548_v59, %v5188_v27  ;;  %8683 = vst [vmem:[#allocation37_spill] sm:$0xff] %v5260_v12  ;;  %v5265_v16 = vsel %vm1917_vm13, %v5229_v31, 920167782  ;;  %v8686_v21 = vand.u32 2147483647, %v5094_v41  ;;  %v5307_v22 = vshll.u32 %v8681_v55, %v5243_v47 }
  0xd1   : > { %8682 = vst [vmem:[#allocation36_spill] sm:$0xff] %v5252_v56  ;;  %8684 = vst [vmem:[#allocation38_spill] sm:$0xff] %v5265_v16  ;;  %vm1477_vm15 = vcmp.gt.s32.totalorder %v5225_v29, 0  ;;  %v8557_v51 = vmov 683565275   ;;  %v658_v56 = vshrl.u32 %v8681_v55, %v5188_v27  ;;  %vm666_vm0 = vcmp.lt.s32.totalorder %v5185_v26, 1 }
  0xd2   : > { %8685 = vst [vmem:[#allocation39_spill] sm:$0xff] %v5269_v60  ;;  %v641_v10 = vand.u32 8388607, %v8686_v21  ;;  %v651_v59 = vshll.u32 %v8557_v51, %v5157_v4  ;;  %v8687_v50 = vmov 2475754826   ;;  %v660_v51 = vshll.u32 %v8681_v55, %v5157_v4  ;;  %8692 = vst [vmem:[#allocation42_spill] sm:$0xff] %v5296_v20 }
  0xd3   : > { %v654_v43 = vshll.u32 %v8687_v50, %v5157_v4  ;;  %v8688_v12 = vmov 2131351028   ;;  %v5284_v35 = vsel %vm1917_vm13, %v1913_v23, 1326507024  ;;  %v8690_v21 = vmov 920167782  }
  0xd4   : > { %v657_v15 = vshll.u32 %v8688_v12, %v5157_v4  ;;  %8689 = vst [vmem:[#allocation40_spill] sm:$0xff] %v5284_v35  ;;  %v5288_v24 = vshrl.u32 %v8690_v21, %v5239_v38  ;;  %v661_v60 = vshrl.u32 %v8690_v21, %v5188_v27  ;;  %v653_v31 = vor.u32 %v652_v62, %v651_v59 }
  0xd5   : > { %v656_v16 = vor.u32 %v655_v1, %v654_v43  ;;  %v5299_v23 = vsub.s32 32, %v5243_v47  ;;  %v5310_v38 = vsel %vm1373_vm14, %v1372_v5, 0  ;;  %v642_v62 = vor.u32 8388608, %v641_v10 }
  0xd6   : > { %8691 = vst [vmem:[#allocation41_spill] sm:$0xff] %v5288_v24  ;;  %v659_v63 = vor.u32 %v658_v56, %v657_v15  ;;  %v662_v35 = vor.u32 %v661_v60, %v660_v51  ;;  %v663_v24 = vshll.u32 %v8690_v21, %v5157_v4  ;;  %v8694_v15 = vmov 683565275  }
  0xd7   : > { %8693 = vst [vmem:[#allocation43_spill] sm:$0xff] %v5299_v23  ;;  %v650_v43 = vshrl.u32 %v8694_v15, %v5188_v27  ;;  %vm667_vm1 = vcmp.lt.s32.totalorder %v5185_v26, 2  ;;  %vm668_vm2 = vcmp.lt.s32.totalorder %v5185_v26, 3  ;;  %vm669_vm3 = vcmp.lt.s32.totalorder %v5185_v26, 4 }
  0xd8   : > { %v665_v56 = vor.u32 %v664_v0, %v663_v24  ;;  %v674_v60 = vsel %vm666_vm0, %v653_v31, %v656_v16  ;;  %v678_v51 = vsel %vm666_vm0, %v656_v16, %v659_v63  ;;  %v5320_v5 = vshll.u32 %v8690_v21, %v5243_v47 }
  0xd9   : > { %v670_v4 = vsel %vm666_vm0, %v650_v43, %v653_v31  ;;  %v671_v10 = vsel %vm669_vm3, %v659_v63, 2102212464  ;;  %v675_v59 = vsel %vm669_vm3, %v662_v35, 920167782  ;;  %v682_v20 = vshll.u32 %v642_v62, 8 }
  0xda   : > { %v679_v1 = vsel %vm669_vm3, %v665_v56, 1326507024  ;;  %v672_v27 = vsel %vm668_vm2, %v656_v16, %v671_v10  ;;  %v676_v0 = vsel %vm668_vm2, %v659_v63, %v675_v59  ;;  %v8578_v43 = vand.u32 2147483647, %v5084_v30 }
  0xdb   : > { %v680_v24 = vsel %vm668_vm2, %v662_v35, %v679_v1  ;;  %v673_v44 = vsel %vm667_vm1, %v670_v4, %v672_v27  ;;  %v677_v42 = vsel %vm667_vm1, %v674_v60, %v676_v0  ;;  %v2117_v63 = vshrl.u32 %v8690_v21, %v5299_v23 }
  0xdc   : > { %v681_v31 = vsel %vm667_vm1, %v678_v51, %v680_v24  ;;  %v5332_v6 = vmul.u32.u64.low %v682_v20, %v677_v42  ;;  %v5333_v56 = vmul.u32.u64.high %v682_v20, %v677_v42, %v5332_v6  ;;  %v5340_v35 = vshrl.u32 %v8672_v52, %v5299_v23 }
  0xdd   : > { %v5329_v47 = vmul.u32.u64.low %v682_v20, %v681_v31  ;;  %v5330_v48 = vmul.u32.u64.high %v682_v20, %v681_v31, %v5329_v47  ;;  %v5343_v16 = vand.u32 31, %v5310_v38  ;;  %v1478_v26 = vsel %vm1477_vm15, %v5225_v29, 0 }
  0xde   : > { %v689_v62 = vmul.u32 %v682_v20, %v673_v44  ;;  %v1057_v42 = vand.u32 8388607, %v8578_v43  ;;  %v1067_v47 = vshll.u32 %v8694_v15, %v5129_v40  ;;  %v1068_v4 = vshrl.u32 %v8687_v50, %v5153_v2 }
  0xdf   : > { %8695 = vst [vmem:[#allocation44_spill] sm:$0xff] %v5343_v16  ;;  %v1070_v60 = vshll.u32 %v8687_v50, %v5129_v40  ;;  %v1071_v51 = vshrl.u32 %v8688_v12, %v5153_v2  ;;  %v1073_v10 = vshll.u32 %v8688_v12, %v5129_v40  ;;  %v1074_v29 = vshrl.u32 %v8681_v55, %v5153_v2 }
  0xe0   : > { %vm691_vm4 = vc.u32 %v5330_v48, %v5332_v6  ;;  %v692_v44 = vadd.s32 1, %v5333_v56  ;;  %v1066_v20 = vshrl.u32 %v8694_v15, %v5153_v2  ;;  %v1069_v59 = vor.u32 %v1068_v4, %v1067_v47 }
  0xe1   : > { %v1072_v1 = vor.u32 %v1071_v51, %v1070_v60  ;;  %v1075_v27 = vor.u32 %v1074_v29, %v1073_v10  ;;  %v1076_v0 = vshll.u32 %v8681_v55, %v5129_v40  ;;  %v1077_v24 = vshrl.u32 %v8690_v21, %v5153_v2 }
  0xe2   : > { %v693_v31 = vsel %vm691_vm4, %v692_v44, %v5333_v56  ;;  %v1058_v43 = vor.u32 8388608, %v1057_v42  ;;  %v1079_v23 = vshll.u32 %v8690_v21, %v5129_v40  ;;  %v1080_v49 = vshrl.u32 %v8672_v52, %v5153_v2 }
  0xe3   : > { %v694_v13 = vadd.s32 %v693_v31, %v689_v62  ;;  %v1078_v32 = vor.u32 %v1077_v24, %v1076_v0  ;;  %vm1082_vm5 = vcmp.lt.s32.totalorder %v5127_v39, 1  ;;  %vm1083_vm6 = vcmp.lt.s32.totalorder %v5127_v39, 2 }
  0xe4   : > { %v1081_v47 = vor.u32 %v1080_v49, %v1079_v23  ;;  %vm1084_vm7 = vcmp.lt.s32.totalorder %v5127_v39, 3  ;;  %vm1085_vm8 = vcmp.lt.s32.totalorder %v5127_v39, 4  ;;  %v1090_v4 = vsel %vm1082_vm5, %v1069_v59, %v1072_v1 }
  0xe5   : > { %vm2125_vm9 = vcmp.lt.s32.totalorder %v5241_v45, 4  ;;  %v695_v56 = vadd.s32 536870912, %v694_v13  ;;  %v1087_v42 = vsel %vm1085_vm8, %v1075_v27, 2102212464  ;;  %v1091_v40 = vsel %vm1085_vm8, %v1078_v32, 920167782 }
  0xe6   : > { %v1094_v60 = vsel %vm1082_vm5, %v1072_v1, %v1075_v27  ;;  %v1086_v51 = vsel %vm1082_vm5, %v1066_v20, %v1069_v59  ;;  %v1092_v2 = vsel %vm1084_vm7, %v1075_v27, %v1091_v40  ;;  %v1095_v62 = vsel %vm1085_vm8, %v1081_v47, 1326507024 }
  0xe7   : > { %v1098_v10 = vshll.u32 %v1058_v43, 8  ;;  %v696_v29 = vshrl.u32 %v695_v56, 30  ;;  %v1088_v44 = vsel %vm1084_vm7, %v1072_v1, %v1087_v42  ;;  %v1093_v49 = vsel %vm1083_vm6, %v1090_v4, %v1092_v2 }
  0xe8   : > { %v1096_v23 = vsel %vm1084_vm7, %v1078_v32, %v1095_v62  ;;  %v5383_v0 = vand.u32 31, %v1478_v26  ;;  %v5392_v20 = vshrl.u32 %v5310_v38, 5  ;;  %v5398_v1 = vor.u32 %v2117_v63, %v5307_v22 }
  0xe9   : > { %v1097_v24 = vsel %vm1083_vm6, %v1094_v60, %v1096_v23  ;;  %v5387_v31 = vmul.u32.u64.low %v1098_v10, %v1093_v49  ;;  %v5388_v17 = vmul.u32.u64.high %v1098_v10, %v1093_v49, %v5387_v31  ;;  %v697_v59 = vshll.u32 %v696_v29, 30 }
  0xea   : > { %v5394_v43 = vmul.u32.u64.low %v1098_v10, %v1097_v24  ;;  %v5395_v27 = vmul.u32.u64.high %v1098_v10, %v1097_v24, %v5394_v43  ;;  %8696 = vst [vmem:[#allocation45_spill] sm:$0xff] %v5398_v1  ;;  %v2121_v32 = vor.u32 %v5340_v35, %v5320_v5  ;;  %v5403_v47 = vsub.s32 32, %v5343_v16 }
  0xeb   : > { %v1089_v4 = vsel %vm1083_vm6, %v1086_v51, %v1088_v44  ;;  %v5409_v38 = vshll.u32 %v8681_v55, %v5343_v16  ;;  %v5413_v56 = vshll.u32 %v8690_v21, %v5343_v16  ;;  %v5415_v42 = vshrl.u32 %v1478_v26, 5 }
  0xec   : > { %8697 = vst [vmem:[#allocation46_spill] sm:$0xff] %v5403_v47  ;;  %v5417_v22 = vsub.s32 %v694_v13, %v697_v59  ;;  %v5420_v5 = vsub.s32 32, %v5383_v0  ;;  %v5424_v63 = vshll.u32 %v8681_v55, %v5383_v0  ;;  %v720_v39 = vsub.s32 4, %v696_v29 }
  0xed   : > { %8698 = vst [vmem:[#allocation47_spill] sm:$0xff] %v5415_v42  ;;  %v1108_v35 = vadd.s32 1, %v5388_v17  ;;  %v1105_v60 = vmul.u32 %v1098_v10, %v1089_v4  ;;  %vm1107_vm10 = vc.u32 %v5395_v27, %v5387_v31  ;;  %v8587_v26 = vand.u32 2147483647, %v5096_v28 }
  0xee   : > { %v700_v40 = vsub.s32 0, %v5417_v22  ;;  %v5434_v13 = vsel %vm2125_vm9, %v5398_v1, 920167782  ;;  %v5438_v51 = vsel %vm2125_vm9, %v2121_v32, 1326507024  ;;  %v5442_v2 = vshrl.u32 %v8690_v21, %v5403_v47 }
  0xef   : > { %8699 = vst [vmem:[#allocation48_spill] sm:$0xff] %v5434_v13  ;;  %8700 = vst [vmem:[#allocation49_spill] sm:$0xff] %v5438_v51  ;;  %v1109_v62 = vsel %vm1107_vm10, %v1108_v35, %v5388_v17  ;;  %v5447_v10 = vshrl.u32 %v8672_v52, %v5403_v47  ;;  %vm636_vm11 = vcmp.lt.s32.totalorder %v5094_v41, 0  ;;  %v8701_v23 = vand.u32 2147483647, %v5094_v41 }
  0xf0   : > { %v4331_v44 = vmin.u32 %v700_v40, %v5417_v22  ;;  %v1110_v49 = vadd.s32 %v1109_v62, %v1105_v60  ;;  %v690_v59 = vadd.s32 %v5332_v6, %v5330_v48  ;;  %v721_v17 = vsel %vm636_vm11, %v720_v39, %v696_v29 }
  0xf1   : > { %vm5453_vm14 = vcmp.le.f32.partialorder %v8701_v23, 0.7853982  ;;  %v869_v43 = vshrl.u32 %v8690_v21, %v5198_v34  ;;  %v849_v4 = vand.u32 8388607, %v8587_v26  ;;  %v858_v35 = vshrl.u32 %v8694_v15, %v5198_v34 }
  0xf2   : > { %v702_v32 = vclz %v4331_v44  ;;  %v860_v40 = vshrl.u32 %v8687_v50, %v5198_v34  ;;  %v1111_v60 = vadd.s32 536870912, %v1110_v49  ;;  %v863_v48 = vshrl.u32 %v8688_v12, %v5198_v34 }
  0xf3   : > { %v866_v6 = vshrl.u32 %v8681_v55, %v5198_v34  ;;  %v868_v29 = vshll.u32 %v8681_v55, %v5167_v9  ;;  %v723_v62 = vsel %vm5453_vm14, 0, %v721_v17  ;;  %v859_v44 = vshll.u32 %v8694_v15, %v5167_v9 }
  0xf4   : > { %v4332_v39 = vadd.s32 4294967294, %v702_v32  ;;  %v872_v23 = vshrl.u32 %v8672_v52, %v5198_v34  ;;  %v1112_v26 = vshrl.u32 %v1111_v60, 30  ;;  %v862_v47 = vshll.u32 %v8687_v50, %v5167_v9 }
  0xf5   : > { %v865_v16 = vshll.u32 %v8688_v12, %v5167_v9  ;;  %v870_v13 = vor.u32 %v869_v43, %v868_v29  ;;  %vm1052_vm0 = vcmp.lt.s32.totalorder %v5084_v30, 0  ;;  %v850_v32 = vor.u32 8388608, %v849_v4 }
  0xf6   : > { %vm4333_vm15 = vcmp.lt.s32.totalorder %v4332_v39, 0  ;;  %v861_v1 = vor.u32 %v860_v40, %v859_v44  ;;  %v871_v17 = vshll.u32 %v8690_v21, %v5167_v9  ;;  %v1113_v45 = vshll.u32 %v1112_v26, 30 }
  0xf7   : > { %v705_v51 = vsel %vm4333_vm15, 0, %v4332_v39  ;;  %v864_v8 = vor.u32 %v863_v48, %v862_v47  ;;  %v867_v34 = vor.u32 %v866_v6, %v865_v16  ;;  %vm877_vm1 = vcmp.lt.s32.totalorder %v5195_v46, 4 }
  0xf8   : > { %v706_v60 = vsub.s32 32, %v705_v51  ;;  %v710_v14 = vsub.s32 4294967266, %v705_v51  ;;  %v873_v42 = vor.u32 %v872_v23, %v871_v17  ;;  %v5489_v36 = vsub.s32 %v1110_v49, %v1113_v45 }
  0xf9   : > { %vm874_vm2 = vcmp.lt.s32.totalorder %v5195_v46, 1  ;;  %vm876_vm3 = vcmp.lt.s32.totalorder %v5195_v46, 3  ;;  %v883_v43 = vsel %vm877_vm1, %v870_v13, 920167782  ;;  %v707_v9 = vshll.u32 %v5417_v22, %v705_v51 }
  0xfa   : > { %v708_v4 = vshrl.u32 %v690_v59, %v706_v60  ;;  %v711_v40 = vadd.s32 127, %v710_v14  ;;  %v1136_v47 = vsub.s32 4, %v1112_v26  ;;  %v1116_v16 = vsub.s32 0, %v5489_v36 }
  0xfb   : > { %v882_v48 = vsel %vm874_vm2, %v861_v1, %v864_v8  ;;  %v884_v45 = vsel %vm876_vm3, %v867_v34, %v883_v43  ;;  %v886_v49 = vsel %vm874_vm2, %v864_v8, %v867_v34  ;;  %v879_v39 = vsel %vm877_vm1, %v867_v34, 2102212464 }
  0xfc   : > { %v709_v6 = vor.u32 %v708_v4, %v707_v9  ;;  %v712_v29 = vshll.u32 %v711_v40, 23  ;;  %v887_v14 = vsel %vm877_vm1, %v873_v42, 1326507024  ;;  %v727_v22 = vadd.s32 3, %v723_v62 }
  0xfd   : > { %v4347_v51 = vmin.u32 %v1116_v16, %v5489_v36  ;;  %vm875_vm4 = vcmp.lt.s32.totalorder %v5195_v46, 2  ;;  %v888_v59 = vsel %vm876_vm3, %v870_v13, %v887_v14  ;;  %v890_v60 = vshll.u32 %v850_v32, 8 }
  0xfe   : > { %v713_v44 = vor.u32 4788187, %v712_v29  ;;  %v885_v23 = vsel %vm875_vm4, %v882_v48, %v884_v45  ;;  %v889_v17 = vsel %vm875_vm4, %v886_v49, %v888_v59  ;;  %v1137_v42 = vsel %vm1052_vm0, %v1136_v47, %v1112_v26 }
  0xff   : > { %v1118_v34 = vclz %v4347_v51  ;;  %v878_v62 = vsel %vm874_vm2, %v858_v35, %v861_v1  ;;  %v880_v43 = vsel %vm876_vm3, %v864_v8, %v879_v39  ;;  %v716_v13 = vcvt.s32.f32 %v709_v6 }
 0x100   : > { %v714_v9 = vand.u32 2147483647, %v713_v44  ;;  %v5521_v4 = vmul.u32.u64.low %v890_v60, %v889_v17  ;;  %v5522_v40 = vmul.u32.u64.high %v890_v60, %v889_v17, %v5521_v4  ;;  %v8704_v16 = vand.u32 2147483647, %v5084_v30 }
 0x101   : > { %v4348_v32 = vadd.s32 4294967294, %v1118_v34  ;;  %v5530_v45 = vmul.u32.u64.low %v890_v60, %v885_v23  ;;  %v5531_v26 = vmul.u32.u64.high %v890_v60, %v885_v23, %v5530_v45  ;;  %v5536_v1 = vshrl.u32 %v8690_v21, %v5420_v5 }
 0x102   : > { %vm5526_vm5 = vcmp.le.f32.partialorder %v8704_v16, 0.7853982  ;;  %v717_v8 = vmul.f32 %v716_v13, %v714_v9  ;;  %v1258_v47 = vand.u32 2147483647, %v5088_v33  ;;  %v5543_v49 = vshll.u32 %v8690_v21, %v5383_v0 }
 0x103   : > { %v1139_v35 = vsel %vm5526_vm5, 0, %v1137_v42  ;;  %v1106_v6 = vadd.s32 %v5387_v31, %v5395_v27  ;;  %vm4349_vm6 = vcmp.lt.s32.totalorder %v4348_v32, 0  ;;  %v881_v29 = vsel %vm875_vm4, %v878_v62, %v880_v43 }
 0x104   : > { %v718_v39 = vxor.u32 2147483648, %v717_v8  ;;  %v5549_v14 = vand.u32 3, %v727_v22  ;;  %v1121_v51 = vsel %vm4349_vm6, 0, %v4348_v32  ;;  %vm899_vm7 = vc.u32 %v5522_v40, %v5530_v45 }
 0x105   : > { %v1122_v59 = vsub.s32 32, %v1121_v51  ;;  %v1126_v44 = vsub.s32 4294967266, %v1121_v51  ;;  %v1143_v23 = vadd.s32 3, %v1139_v35  ;;  %v900_v17 = vadd.s32 1, %v5531_v26 }
 0x106   : > { %v719_v34 = vsel %vm636_vm11, %v718_v39, %v717_v8  ;;  %v1123_v31 = vshll.u32 %v5489_v36, %v1121_v51  ;;  %v897_v27 = vmul.u32 %v890_v60, %v881_v29  ;;  %v5559_v46 = vand.u32 8388607, %v1258_v47 }
 0x107   : > { %v722_v22 = vsel %vm5453_vm14, %v5094_v41, %v719_v34  ;;  %v1124_v42 = vshrl.u32 %v1106_v6, %v1122_v59  ;;  %v1127_v62 = vadd.s32 127, %v1126_v44  ;;  %v901_v43 = vsel %vm899_vm7, %v900_v17, %v5531_v26 }
 0x108   : > { %4679 = vcosq.f32 %v722_v22  ;;  %v902_v9 = vadd.s32 %v901_v43, %v897_v27  ;;  %v1276_v13 = vshrl.u32 %v8687_v50, %v5163_v7  ;;  %v1279_v36 = vshrl.u32 %v8688_v12, %v5163_v7 }
 0x109   : > { %4681 = vsinq.f32 %v722_v22  ;;  %v1125_v60 = vor.u32 %v1124_v42, %v1123_v31  ;;  %v1128_v4 = vshll.u32 %v1127_v62, 23  ;;  %v1282_v16 = vshrl.u32 %v8681_v55, %v5163_v7 }
 0x10a   : > { %v903_v24 = vadd.s32 536870912, %v902_v9  ;;  %v1275_v32 = vshll.u32 %v8694_v15, %v5142_v54  ;;  %v1284_v26 = vshll.u32 %v8681_v55, %v5142_v54  ;;  %v1285_v8 = vshrl.u32 %v8690_v21, %v5163_v7 }
 0x10b   : > { %v1129_v35 = vor.u32 4788187, %v1128_v4  ;;  %v1278_v6 = vshll.u32 %v8687_v50, %v5142_v54  ;;  %v1281_v29 = vshll.u32 %v8688_v12, %v5142_v54  ;;  %v1288_v39 = vshrl.u32 %v8672_v52, %v5163_v7 }
 0x10c   : > { %v904_v51 = vshrl.u32 %v903_v24, 30  ;;  %v1277_v59 = vor.u32 %v1276_v13, %v1275_v32  ;;  %v1286_v44 = vor.u32 %v1285_v8, %v1284_v26  ;;  %v1287_v17 = vshll.u32 %v8690_v21, %v5142_v54 }
 0x10d   : > { %vm730_vm8 = vcmp.eq.s32.totalorder %v5549_v14, 0  ;;  %vm733_vm10 = vcmp.eq.s32.totalorder %v5549_v14, 2  ;;  %v1130_v34 = vand.u32 2147483647, %v1129_v35  ;;  %v1132_v31 = vcvt.s32.f32 %v1125_v60 }
 0x10e   : > { %v1280_v27 = vor.u32 %v1279_v36, %v1278_v6  ;;  %v1283_v22 = vor.u32 %v1282_v16, %v1281_v29  ;;  %v5587_v42 = vand.u32 3, %v1143_v23  ;;  %vm844_vm11 = vcmp.lt.s32.totalorder %v5096_v28, 0 }
 0x10f   : > { %v905_v62 = vshll.u32 %v904_v51, 30  ;;  %v1289_v43 = vor.u32 %v1288_v39, %v1287_v17  ;;  %vm1293_vm14 = vcmp.lt.s32.totalorder %v5140_v53, 4  ;;  %v1133_v13 = vmul.f32 %v1132_v31, %v1130_v34 }
 0x110   : > { %v1266_v4 = vor.u32 8388608, %v5559_v46  ;;  %v1274_v54 = vshrl.u32 %v8694_v15, %v5163_v7  ;;  %v1299_v24 = vsel %vm1293_vm14, %v1286_v44, 920167782  ;;  %vm1290_vm15 = vcmp.lt.s32.totalorder %v5140_v53, 1 }
 0x111   : > { %v5596_v60 = vsub.s32 %v902_v9, %v905_v62  ;;  %vm1291_vm1 = vcmp.lt.s32.totalorder %v5140_v53, 2  ;;  %vm1292_vm2 = vcmp.lt.s32.totalorder %v5140_v53, 3  ;;  %v1134_v23 = vxor.u32 2147483648, %v1133_v13 }
 0x112   : > { %v928_v36 = vsub.s32 4, %v904_v51  ;;  %v1295_v16 = vsel %vm1293_vm14, %v1283_v22, 2102212464  ;;  %v1298_v46 = vsel %vm1290_vm15, %v1277_v59, %v1280_v27  ;;  %v4680_v32 = vpop.eup %4679  ;;  %v1300_v26 = vsel %vm1292_vm2, %v1283_v22, %v1299_v24 }
 0x113   : > { %v908_v7 = vsub.s32 0, %v5596_v60  ;;  %v1302_v9 = vsel %vm1290_vm15, %v1280_v27, %v1283_v22  ;;  %v1303_v8 = vsel %vm1293_vm14, %v1289_v43, 1326507024  ;;  %v4682_v35 = vpop.eup %4681  ;;  %v734_v6 = vxor.u32 2147483648, %v4680_v32 }
 0x114   : > { %v1135_v29 = vsel %vm1052_vm0, %v1134_v23, %v1133_v13  ;;  %v1294_v39 = vsel %vm1290_vm15, %v1274_v54, %v1277_v59  ;;  %v1304_v17 = vsel %vm1292_vm2, %v1286_v44, %v1303_v8  ;;  %v731_v34 = vxor.u32 2147483648, %v4682_v35 }
 0x115   : > { %v1138_v31 = vsel %vm5526_vm5, %v5084_v30, %v1135_v29  ;;  %v4339_v62 = vmin.u32 %v908_v7, %v5596_v60  ;;  %v1296_v22 = vsel %vm1292_vm2, %v1280_v27, %v1295_v16  ;;  %v1301_v43 = vsel %vm1291_vm1, %v1298_v46, %v1300_v26 }
 0x116   : > { %4683 = vcosq.f32 %v1138_v31  ;;  %v1305_v59 = vsel %vm1291_vm1, %v1302_v9, %v1304_v17  ;;  %v1306_v13 = vshll.u32 %v1266_v4, 8  ;;  %v732_v44 = vsel %vm730_vm8, %v4680_v32, %v731_v34 }
 0x117   : > { %v735_v48 = vsel %vm733_vm10, %v734_v6, %v4682_v35  ;;  %4685 = vsinq.f32 %v1138_v31  ;;  %v910_v54 = vclz %v4339_v62  ;;  %v5628_v24 = vor.u32 %v5442_v2, %v5409_v38 }
 0x118   : > { %v5632_v27 = vshrl.u32 %v8672_v52, %v5420_v5  ;;  %vm729_vm0 = vcmp.lt.s32.totalorder %v5549_v14, 2  ;;  %v5637_v4 = vsel %vm844_vm11, %v928_v36, %v904_v51  ;;  %v1297_v16 = vsel %vm1291_vm1, %v1294_v39, %v1296_v22 }
 0x119   : > { %v4340_v23 = vadd.s32 4294967294, %v910_v54  ;;  %v5641_v46 = vmul.u32.u64.low %v1306_v13, %v1305_v59  ;;  %v5642_v32 = vmul.u32.u64.high %v1306_v13, %v1305_v59, %v5641_v46  ;;  %v736_v7 = vsel %vm729_vm0, %v732_v44, %v735_v48 }
 0x11a   : > { %v5644_v38 = vmul.u32.u64.low %v1306_v13, %v1301_v43  ;;  %v5645_v2 = vmul.u32.u64.high %v1306_v13, %v1301_v43, %v5644_v38  ;;  %v530_v26 = vand.u32 2147483647, %v5078_v19  ;;  %vm726_vm3 = vweird.f32 %v5094_v41 }
 0x11b   : > { %vm1146_vm4 = vcmp.eq.s32.totalorder %v5587_v42, 0  ;;  %v8707_v14 = vand.u32 2147483647, %v5096_v28  ;;  %vm4341_vm6 = vcmp.lt.s32.totalorder %v4340_v23, 0  ;;  %vm1145_vm7 = vcmp.lt.s32.totalorder %v5587_v42, 2 }
 0x11c   : > { %vm1149_vm8 = vcmp.eq.s32.totalorder %v5587_v42, 2  ;;  %v898_v53 = vadd.s32 %v5530_v45, %v5522_v40  ;;  %v913_v36 = vsel %vm4341_vm6, 0, %v4340_v23  ;;  %v737_v9 = vsel %vm726_vm3, nan, %v736_v7 }
 0x11d   : > { %vm5653_vm5 = vcmp.le.f32.partialorder %v8707_v14, 0.7853982  ;;  %vm1142_vm10 = vweird.f32 %v5084_v30  ;;  %v914_v8 = vsub.s32 32, %v913_v36  ;;  %v918_v35 = vsub.s32 4294967266, %v913_v36 }
 0x11e   : > { %v931_v41 = vsel %vm5653_vm5, 0, %v5637_v4  ;;  %v1313_v6 = vmul.u32 %v1306_v13, %v1297_v16  ;;  %vm1315_vm14 = vc.u32 %v5642_v32, %v5644_v38  ;;  %v1316_v29 = vadd.s32 1, %v5645_v2 }
 0x11f   : > { %v5670_v39 = vand.u32 8388607, %v530_v26  ;;  %v548_v40 = vshrl.u32 %v8687_v50, %v5183_v25  ;;  %v915_v45 = vshll.u32 %v5596_v60, %v913_v36  ;;  %v916_v17 = vshrl.u32 %v898_v53, %v914_v8 }
 0x120   : > { %v919_v34 = vadd.s32 127, %v918_v35  ;;  %v547_v31 = vshll.u32 %v8694_v15, %v5155_v3  ;;  %v4684_v62 = vpop.eup %4683  ;;  %v1317_v22 = vsel %vm1315_vm14, %v1316_v29, %v5645_v2  ;;  %v550_v43 = vshll.u32 %v8687_v50, %v5155_v3 }
 0x121   : > { %v551_v59 = vshrl.u32 %v8688_v12, %v5183_v25  ;;  %v557_v13 = vshrl.u32 %v8690_v21, %v5183_v25  ;;  %v4686_v44 = vpop.eup %4685  ;;  %v1150_v48 = vxor.u32 2147483648, %v4684_v62  ;;  %v917_v60 = vor.u32 %v916_v17, %v915_v45 }
 0x122   : > { %v920_v54 = vshll.u32 %v919_v34, 23  ;;  %v1318_v4 = vadd.s32 %v1317_v22, %v1313_v6  ;;  %v1147_v23 = vxor.u32 2147483648, %v4686_v44  ;;  %v549_v16 = vor.u32 %v548_v40, %v547_v31 }
 0x123   : > { %v554_v46 = vshrl.u32 %v8681_v55, %v5183_v25  ;;  %v556_v7 = vshll.u32 %v8681_v55, %v5155_v3  ;;  %v1151_v2 = vsel %vm1149_vm8, %v1150_v48, %v4686_v44  ;;  %v553_v36 = vshll.u32 %v8688_v12, %v5155_v3 }
 0x124   : > { %v921_v14 = vor.u32 4788187, %v920_v54  ;;  %v1319_v53 = vadd.s32 536870912, %v1318_v4  ;;  %v1148_v8 = vsel %vm1146_vm4, %v4684_v62, %v1147_v23  ;;  %v559_v6 = vshll.u32 %v8690_v21, %v5155_v3 }
 0x125   : > { %v558_v35 = vor.u32 %v557_v13, %v556_v7  ;;  %v560_v29 = vshrl.u32 %v8672_v52, %v5183_v25  ;;  %v1152_v40 = vsel %vm1145_vm7, %v1148_v8, %v1151_v2  ;;  %v924_v17 = vcvt.s32.f32 %v917_v60 }
 0x126   : > { %v922_v45 = vand.u32 2147483647, %v921_v14  ;;  %vm1260_vm15 = vcmp.lt.s32.totalorder %v5088_v33, 0  ;;  %v1320_v34 = vshrl.u32 %v1319_v53, 30  ;;  %v1153_v31 = vsel %vm1142_vm10, nan, %v1152_v40 }
 0x127   : > { %v552_v22 = vor.u32 %v551_v59, %v550_v43  ;;  %v555_v62 = vor.u32 %v554_v46, %v553_v36  ;;  %v561_v13 = vor.u32 %v560_v29, %v559_v6  ;;  %v4470_v44 = vpack.c.bf16 %v1153_v31, %v737_v9 }
 0x128   : > { %v925_v48 = vmul.f32 %v924_v17, %v922_v45  ;;  %v1321_v3 = vshll.u32 %v1320_v34, 30  ;;  %vm565_vm1 = vcmp.lt.s32.totalorder %v5169_v11, 4  ;;  %v935_v54 = vadd.s32 3, %v931_v41 }
 0x129   : > { %v538_v42 = vor.u32 8388608, %v5670_v39  ;;  %vm562_vm2 = vcmp.lt.s32.totalorder %v5169_v11, 1  ;;  %v571_v60 = vsel %vm565_vm1, %v558_v35, 920167782  ;;  %4471 = vmatprep.subr.bf16.mxu0 %v4470_v44  ;;  %v1344_v43 = vsub.s32 4, %v1320_v34 }
 0x12a   : > { %v926_v23 = vxor.u32 2147483648, %v925_v48  ;;  %v5708_v30 = vsub.s32 %v1318_v4, %v1321_v3  ;;  %vm564_vm0 = vcmp.lt.s32.totalorder %v5169_v11, 3  ;;  %vm1397_vm3 = vcmp.lt.s32.totalorder %v5392_v20, 4 }
 0x12b   : > { %v570_v9 = vsel %vm562_vm2, %v549_v16, %v552_v22  ;;  %v572_v41 = vsel %vm564_vm0, %v555_v62, %v571_v60  ;;  %v574_v39 = vsel %vm562_vm2, %v552_v22, %v555_v62  ;;  %v575_v59 = vsel %vm565_vm1, %v561_v13, 1326507024 }
 0x12c   : > { %v927_v4 = vsel %vm844_vm11, %v926_v23, %v925_v48  ;;  %v1324_v46 = vsub.s32 0, %v5708_v30  ;;  %v546_v7 = vshrl.u32 %v8694_v15, %v5183_v25  ;;  %vm563_vm4 = vcmp.lt.s32.totalorder %v5169_v11, 2 }
 0x12d   : > { %v930_v2 = vsel %vm5653_vm5, %v5096_v28, %v927_v4  ;;  %v567_v14 = vsel %vm565_vm1, %v555_v62, 2102212464  ;;  %v576_v53 = vsel %vm564_vm0, %v558_v35, %v575_v59  ;;  %v578_v36 = vshll.u32 %v538_v42, 8 }
 0x12e   : > { %4687 = vcosq.f32 %v930_v2  ;;  %v4355_v8 = vmin.u32 %v1324_v46, %v5708_v30  ;;  %v573_v6 = vsel %vm563_vm4, %v570_v9, %v572_v41  ;;  %v577_v25 = vsel %vm563_vm4, %v574_v39, %v576_v53 }
 0x12f   : > { %v1393_v51 = vor.u32 %v5447_v10, %v5413_v56  ;;  %v1345_v29 = vsel %vm1260_vm15, %v1344_v43, %v1320_v34  ;;  %v5742_v40 = vmul.u32.u64.low %v578_v36, %v577_v25  ;;  %v5743_v45 = vmul.u32.u64.high %v578_v36, %v577_v25, %v5742_v40 }
 0x130   : > { %v5746_v35 = vadd.s32 4294967169, %v5207_v58  ;;  %v1326_v17 = vclz %v4355_v8  ;;  %v566_v31 = vsel %vm562_vm2, %v546_v7, %v549_v16  ;;  %v568_v62 = vsel %vm564_vm0, %v552_v22, %v567_v14 }
 0x131   : > { %v5753_v13 = vadd.s32 4294967169, %v5227_v57  ;;  %vm5757_vm11 = vcmp.le.f32.partialorder %v1258_v47, 0.7853982  ;;  %v5761_v10 = vmul.u32.u64.low %v578_v36, %v573_v6  ;;  %v5762_v34 = vmul.u32.u64.high %v578_v36, %v573_v6, %v5761_v10 }
 0x132   : > { %4689 = vsinq.f32 %v930_v2  ;;  %v5765_v58 = vand.u32 3, %v935_v54  ;;  %v4356_v16 = vadd.s32 4294967294, %v1326_v17  ;;  %v1347_v22 = vsel %vm5757_vm11, 0, %v1345_v29 }
 0x133   : > { %v5771_v57 = vor.u32 %v5536_v1, %v5424_v63  ;;  %v1497_v47 = vor.u32 %v5632_v27, %v5543_v49  ;;  %v569_v44 = vsel %vm563_vm4, %v566_v31, %v568_v62  ;;  %v946_v48 = vand.u32 2147483647, %v5074_v18 }
 0x134   : > { %v5781_v3 = vsel %vm1397_vm3, %v5628_v24, 920167782  ;;  %v5785_v54 = vsel %vm1397_vm3, %v1393_v51, 1326507024  ;;  %vm4357_vm5 = vcmp.lt.s32.totalorder %v4356_v16, 0  ;;  %vm587_vm6 = vc.u32 %v5743_v45, %v5761_v10 }
 0x135   : > { %v1314_v63 = vadd.s32 %v5644_v38, %v5642_v32  ;;  %v1329_v11 = vsel %vm4357_vm5, 0, %v4356_v16  ;;  %v1351_v1 = vadd.s32 3, %v1347_v22  ;;  %v588_v42 = vadd.s32 1, %v5762_v34 }
 0x136   : > { %vm941_vm7 = vcmp.eq.s32.totalorder %v5765_v58, 2  ;;  %v1330_v60 = vsub.s32 32, %v1329_v11  ;;  %v1334_v23 = vsub.s32 4294967266, %v1329_v11  ;;  %v585_v43 = vmul.u32 %v578_v36, %v569_v44 }
 0x137   : > { %v963_v9 = vshll.u32 %v8694_v15, %v5125_v37  ;;  %v589_v41 = vsel %vm587_vm6, %v588_v42, %v5762_v34  ;;  %v953_v39 = vand.u32 8388607, %v946_v48  ;;  %v964_v32 = vshrl.u32 %v8687_v50, %v5148_v61 }
 0x138   : > { %v973_v38 = vshrl.u32 %v8690_v21, %v5148_v61  ;;  %v4688_v59 = vpop.eup %4687  ;;  %v1331_v4 = vshll.u32 %v5708_v30, %v1329_v11  ;;  %v1332_v46 = vshrl.u32 %v1314_v63, %v1330_v60  ;;  %v1335_v7 = vadd.s32 127, %v1334_v23 }
 0x139   : > { %v590_v2 = vadd.s32 %v589_v41, %v585_v43  ;;  %v967_v14 = vshrl.u32 %v8688_v12, %v5148_v61  ;;  %v970_v53 = vshrl.u32 %v8681_v55, %v5148_v61  ;;  %v972_v36 = vshll.u32 %v8681_v55, %v5125_v37 }
 0x13a   : > { %v976_v8 = vshrl.u32 %v8672_v52, %v5148_v61  ;;  %vm938_vm8 = vcmp.eq.s32.totalorder %v5765_v58, 0  ;;  %v1333_v6 = vor.u32 %v1332_v46, %v1331_v4  ;;  %v1336_v25 = vshll.u32 %v1335_v7, 23 }
 0x13b   : > { %v591_v30 = vadd.s32 536870912, %v590_v2  ;;  %v966_v51 = vshll.u32 %v8687_v50, %v5125_v37  ;;  %v942_v29 = vxor.u32 2147483648, %v4688_v59  ;;  %v969_v40 = vshll.u32 %v8688_v12, %v5125_v37 }
 0x13c   : > { %v974_v17 = vor.u32 %v973_v38, %v972_v36  ;;  %v975_v31 = vshll.u32 %v8690_v21, %v5125_v37  ;;  %v4690_v62 = vpop.eup %4689  ;;  %v1337_v34 = vor.u32 4788187, %v1336_v25  ;;  %v5818_v16 = vand.u32 3, %v1351_v1  ;;  %v8712_v38 = vld [vmem:[#allocation13_spill] sm:$0xff] }
 0x13d   : > { %v592_v22 = vshrl.u32 %v591_v30, 30  ;;  %v962_v44 = vshrl.u32 %v8694_v15, %v5148_v61  ;;  %vm937_vm10 = vcmp.lt.s32.totalorder %v5765_v58, 2  ;;  %v965_v63 = vor.u32 %v964_v32, %v963_v9  ;;  %v8713_v61 = vld [vmem:[#allocation47_spill] sm:$0xff] }
 0x13e   : > { %v968_v11 = vor.u32 %v967_v14, %v966_v51  ;;  %v971_v42 = vor.u32 %v970_v53, %v969_v40  ;;  %v977_v60 = vor.u32 %v976_v8, %v975_v31  ;;  %v1338_v23 = vand.u32 2147483647, %v1337_v34 }
 0x13f   : > { %v1340_v43 = vcvt.s32.f32 %v1333_v6  ;;  %v593_v41 = vshll.u32 %v592_v22, 30  ;;  %vm981_vm14 = vcmp.lt.s32.totalorder %v8712_v38, 4  ;;  %v939_v37 = vxor.u32 2147483648, %v4690_v62 }
 0x140   : > { %v943_v1 = vsel %vm941_vm7, %v942_v29, %v4690_v62  ;;  %v954_v4 = vor.u32 8388608, %v953_v39  ;;  %v987_v46 = vsel %vm981_vm14, %v974_v17, 920167782  ;;  %vm1501_vm1 = vcmp.lt.s32.totalorder %v8713_v61, 4 }
 0x141   : > { %v1341_v7 = vmul.f32 %v1340_v43, %v1338_v23  ;;  %v5829_v9 = vsub.s32 %v590_v2, %v593_v41  ;;  %vm978_vm2 = vcmp.lt.s32.totalorder %v8712_v38, 1  ;;  %vm980_vm0 = vcmp.lt.s32.totalorder %v8712_v38, 3  ;;  %v8714_v41 = vld [vmem:[#allocation6_spill] sm:$0xff] }
 0x142   : > { %v986_v32 = vsel %vm978_vm2, %v965_v63, %v968_v11  ;;  %v988_v14 = vsel %vm980_vm0, %v971_v42, %v987_v46  ;;  %v990_v53 = vsel %vm978_vm2, %v968_v11, %v971_v42  ;;  %v991_v39 = vsel %vm981_vm14, %v977_v60, 1326507024 }
 0x143   : > { %v1342_v36 = vxor.u32 2147483648, %v1341_v7  ;;  %v596_v8 = vsub.s32 0, %v5829_v9  ;;  %vm979_vm4 = vcmp.lt.s32.totalorder %v8712_v38, 2  ;;  %v983_v2 = vsel %vm981_vm14, %v971_v42, 2102212464 }
 0x144   : > { %v940_v6 = vsel %vm938_vm8, %v4688_v59, %v939_v37  ;;  %v982_v25 = vsel %vm978_vm2, %v962_v44, %v965_v63  ;;  %v992_v30 = vsel %vm980_vm0, %v974_v17, %v991_v39  ;;  %v994_v51 = vshll.u32 %v954_v4, 8 }
 0x145   : > { %v1343_v29 = vsel %vm1260_vm15, %v1342_v36, %v1341_v7  ;;  %v4327_v40 = vmin.u32 %v596_v8, %v5829_v9  ;;  %v989_v31 = vsel %vm979_vm4, %v986_v32, %v988_v14  ;;  %v993_v62 = vsel %vm979_vm4, %v990_v53, %v992_v30  ;;  %v8715_v14 = vld [vmem:[#allocation20_spill] sm:$0xff]  ;;  %v8716_v53 = vld [vmem:[#allocation25_spill] sm:$0xff] }
 0x146   : > { %v1346_v59 = vsel %vm5757_vm11, %v5088_v33, %v1343_v29  ;;  %v984_v34 = vsel %vm980_vm0, %v968_v11, %v983_v2  ;;  %v5857_v17 = vmul.u32.u64.low %v994_v51, %v993_v62  ;;  %v5858_v44 = vmul.u32.u64.high %v994_v51, %v993_v62, %v5857_v17 }
 0x147   : > { %v944_v63 = vsel %vm937_vm10, %v940_v6, %v943_v1  ;;  %4691 = vcosq.f32 %v1346_v59  ;;  %v598_v42 = vclz %v4327_v40  ;;  %v616_v60 = vsub.s32 4, %v592_v22 }
 0x148   : > { %4693 = vsinq.f32 %v1346_v59  ;;  %v5862_v23 = vmul.u32.u64.low %v994_v51, %v989_v31  ;;  %v5863_v43 = vmul.u32.u64.high %v994_v51, %v989_v31, %v5862_v23  ;;  %v738_v56 = vand.u32 2147483647, %v8714_v41 }
 0x149   : > { %v5868_v37 = vadd.s32 1, %v5746_v35  ;;  %v5871_v11 = vadd.s32 1, %v5753_v13  ;;  %v4328_v4 = vadd.s32 4294967294, %v598_v42  ;;  %v985_v58 = vsel %vm979_vm4, %v982_v25, %v984_v34 }
 0x14a   : > { %v5878_v1 = vsel %vm1501_vm1, %v5771_v57, 920167782  ;;  %vm934_vm15 = vweird.f32 %v5096_v28  ;;  %vm532_vm11 = vcmp.lt.s32.totalorder %v5078_v19, 0  ;;  %v586_v35 = vadd.s32 %v5761_v10, %v5743_v45 }
 0x14b   : > { %v5884_v46 = vsel %vm934_vm15, nan, %v944_v63  ;;  %vm1357_vm5 = vcmp.eq.s32.totalorder %v5818_v16, 2  ;;  %vm4329_vm6 = vcmp.lt.s32.totalorder %v4328_v4, 0  ;;  %v5889_v13 = vsel %vm532_vm11, %v616_v60, %v592_v22 }
 0x14c   : > { %vm1003_vm7 = vc.u32 %v5858_v44, %v5862_v23  ;;  %vm1354_vm8 = vcmp.eq.s32.totalorder %v5818_v16, 0  ;;  %v601_v28 = vsel %vm4329_vm6, 0, %v4328_v4  ;;  %v1001_v38 = vmul.u32 %v994_v51, %v985_v58 }
 0x14d   : > { %v1004_v7 = vadd.s32 1, %v5863_v43  ;;  %v5897_v45 = vand.u32 8388607, %v738_v56  ;;  %vm1353_vm10 = vcmp.lt.s32.totalorder %v5818_v16, 2  ;;  %v602_v10 = vsub.s32 32, %v601_v28 }
 0x14e   : > { %v606_v32 = vsub.s32 4294967266, %v601_v28  ;;  %v755_v22 = vshll.u32 %v8694_v15, %v8715_v14  ;;  %v756_v39 = vshrl.u32 %v8687_v50, %v8716_v53  ;;  %vm1350_vm14 = vweird.f32 %v5088_v33 }
 0x14f   : > { %v603_v36 = vshll.u32 %v5829_v9, %v601_v28  ;;  %v1005_v8 = vsel %vm1003_vm7, %v1004_v7, %v5863_v43  ;;  %v759_v2 = vshrl.u32 %v8688_v12, %v8716_v53  ;;  %v762_v6 = vshrl.u32 %v8681_v55, %v8716_v53 }
 0x150   : > { %v604_v25 = vshrl.u32 %v586_v35, %v602_v10  ;;  %v607_v30 = vadd.s32 127, %v606_v32  ;;  %v1006_v51 = vadd.s32 %v1005_v8, %v1001_v38  ;;  %v765_v29 = vshrl.u32 %v8690_v21, %v8716_v53 }
 0x151   : > { %v746_v40 = vor.u32 8388608, %v5897_v45  ;;  %v758_v31 = vshll.u32 %v8687_v50, %v8715_v14  ;;  %v761_v9 = vshll.u32 %v8688_v12, %v8715_v14  ;;  %v764_v62 = vshll.u32 %v8681_v55, %v8715_v14  ;;  %v4692_v59 = vpop.eup %4691 }
 0x152   : > { %v605_v34 = vor.u32 %v604_v25, %v603_v36  ;;  %v608_v17 = vshll.u32 %v607_v30, 23  ;;  %v1007_v63 = vadd.s32 536870912, %v1006_v51  ;;  %v757_v42 = vor.u32 %v756_v39, %v755_v22  ;;  %v4694_v60 = vpop.eup %4693  ;;  %v8719_v36 = vld [vmem:[#allocation24_spill] sm:$0xff] }
 0x153   : > { %vm1685_vm2 = vcmp.gt.s32.totalorder %v5871_v11, 0  ;;  %v1358_v43 = vxor.u32 2147483648, %v4692_v59  ;;  %v760_v4 = vor.u32 %v759_v2, %v758_v31  ;;  %v766_v58 = vor.u32 %v765_v29, %v764_v62 }
 0x154   : > { %v768_v35 = vshrl.u32 %v8672_v52, %v8716_v53  ;;  %v1355_v28 = vxor.u32 2147483648, %v4694_v60  ;;  %v609_v38 = vor.u32 4788187, %v608_v17  ;;  %v1008_v7 = vshrl.u32 %v1007_v63, 30 }
 0x155   : > { %v763_v45 = vor.u32 %v762_v6, %v761_v9  ;;  %v1359_v10 = vsel %vm1357_vm5, %v1358_v43, %v4694_v60  ;;  %vm5927_vm0 = vcmp.le.f32.partialorder %v530_v26, 0.7853982  ;;  %v612_v22 = vcvt.s32.f32 %v605_v34 }
 0x156   : > { %v767_v39 = vshll.u32 %v8690_v21, %v8715_v14  ;;  %vm770_vm4 = vcmp.lt.s32.totalorder %v8719_v36, 1  ;;  %v1356_v8 = vsel %vm1354_vm8, %v4692_v59, %v1355_v28  ;;  %v610_v2 = vand.u32 2147483647, %v609_v38 }
 0x157   : > { %v1009_v6 = vshll.u32 %v1008_v7, 30  ;;  %vm773_vm15 = vcmp.lt.s32.totalorder %v8719_v36, 4  ;;  %v1360_v25 = vsel %vm1353_vm10, %v1356_v8, %v1359_v10  ;;  %vm772_vm5 = vcmp.lt.s32.totalorder %v8719_v36, 3 }
 0x158   : > { %v769_v26 = vor.u32 %v768_v35, %v767_v39  ;;  %v779_v30 = vsel %vm773_vm15, %v766_v58, 920167782  ;;  %v1361_v14 = vsel %vm1350_vm14, nan, %v1360_v25  ;;  %v613_v29 = vmul.f32 %v612_v22, %v610_v2 }
 0x159   : > { %v5944_v31 = vsub.s32 %v1006_v51, %v1009_v6  ;;  %v778_v9 = vsel %vm770_vm4, %v757_v42, %v760_v4  ;;  %v4478_v62 = vpack.c.bf16 %v1361_v14, %v5884_v46  ;;  %v754_v16 = vshrl.u32 %v8694_v15, %v8716_v53 }
 0x15a   : > { %vm771_vm6 = vcmp.lt.s32.totalorder %v8719_v36, 2  ;;  %v780_v59 = vsel %vm772_vm5, %v763_v45, %v779_v30  ;;  %v614_v34 = vxor.u32 2147483648, %v613_v29  ;;  %v775_v51 = vsel %vm773_vm15, %v763_v45, 2102212464 }
 0x15b   : > { %v1012_v33 = vsub.s32 0, %v5944_v31  ;;  %v782_v17 = vsel %vm770_vm4, %v760_v4, %v763_v45  ;;  %4479 = vmatprep.subr.bf16.mxu1 %v4478_v62  ;;  %v774_v46 = vsel %vm770_vm4, %v754_v16, %v757_v42  ;;  %v781_v53 = vsel %vm771_vm6, %v778_v9, %v780_v59  ;;  %v8722_v59 = vld [vmem:[#allocation5_spill] sm:$0xff] }
 0x15c   : > { %v783_v63 = vsel %vm773_vm15, %v769_v26, 1326507024  ;;  %v786_v60 = vshll.u32 %v746_v40, 8  ;;  %v615_v43 = vsel %vm532_vm11, %v614_v34, %v613_v29  ;;  %v1032_v28 = vsub.s32 4, %v1008_v7 }
 0x15d   : > { %v4343_v35 = vmin.u32 %v1012_v33, %v5944_v31  ;;  %v784_v38 = vsel %vm772_vm5, %v766_v58, %v783_v63  ;;  %v776_v45 = vsel %vm772_vm5, %v760_v4, %v775_v51  ;;  %v5981_v40 = vsel %vm1685_vm2, %v5871_v11, 0  ;;  %v8723_v63 = vld [vmem:[#allocation16_spill] sm:$0xff] }
 0x15e   : > { %v785_v42 = vsel %vm771_vm6, %v782_v17, %v784_v38  ;;  %v5974_v10 = vmul.u32.u64.low %v786_v60, %v781_v53  ;;  %v5975_v22 = vmul.u32.u64.high %v786_v60, %v781_v53, %v5974_v10  ;;  %v618_v39 = vsel %vm5927_vm0, %v5078_v19, %v615_v43 }
 0x15f   : > { %v619_v4 = vsel %vm5927_vm0, 0, %v5889_v13  ;;  %v1014_v58 = vclz %v4343_v35  ;;  %vm1581_vm11 = vcmp.gt.s32.totalorder %v5868_v37, 0  ;;  %vm948_vm7 = vcmp.lt.s32.totalorder %v5074_v18, 0 }
 0x160   : > { %v5991_v8 = vmul.u32.u64.low %v786_v60, %v785_v42  ;;  %v5992_v2 = vmul.u32.u64.high %v786_v60, %v785_v42, %v5991_v8  ;;  %v5999_v11 = vsel %vm1501_vm1, %v1497_v47, 1326507024  ;;  %v1033_v32 = vsel %vm948_vm7, %v1032_v28, %v1008_v7 }
 0x161   : > { %v4344_v6 = vadd.s32 4294967294, %v1014_v58  ;;  %v777_v13 = vsel %vm771_vm6, %v774_v46, %v776_v45  ;;  %v6006_v25 = vand.u32 31, %v5981_v40  ;;  %4695 = vcosq.f32 %v618_v39 }
 0x162   : > { %v623_v26 = vadd.s32 3, %v619_v4  ;;  %v796_v30 = vadd.s32 1, %v5975_v22  ;;  %v6010_v49 = vsel %vm1581_vm11, %v5868_v37, 0  ;;  %4697 = vsinq.f32 %v618_v39 }
 0x163   : > { %vm6014_vm8 = vcmp.le.f32.partialorder %v946_v48, 0.7853982  ;;  %vm4345_vm10 = vcmp.lt.s32.totalorder %v4344_v6, 0  ;;  %v793_v36 = vmul.u32 %v786_v60, %v777_v13  ;;  %vm795_vm14 = vc.u32 %v5992_v2, %v5974_v10 }
 0x164   : > { %v1017_v47 = vsel %vm4345_vm10, 0, %v4344_v6  ;;  %v1035_v7 = vsel %vm6014_vm8, 0, %v1033_v32  ;;  %v1002_v37 = vadd.s32 %v5862_v23, %v5858_v44  ;;  %v797_v9 = vsel %vm795_vm14, %v796_v30, %v5975_v22  ;;  %v8724_v23 = vld [vmem:[#allocation19_spill] sm:$0xff] }
 0x165   : > { %v1018_v14 = vsub.s32 32, %v1017_v47  ;;  %v1022_v29 = vsub.s32 4294967266, %v1017_v47  ;;  %v6026_v48 = vsub.s32 32, %v6006_v25  ;;  %v6028_v62 = vand.u32 3, %v623_v26 }
 0x166   : > { %v798_v16 = vadd.s32 %v797_v9, %v793_v36  ;;  %v1154_v34 = vand.u32 2147483647, %v8722_v59  ;;  %v1019_v33 = vshll.u32 %v5944_v31, %v1017_v47  ;;  %v1039_v46 = vadd.s32 3, %v1035_v7 }
 0x167   : > { %v1020_v51 = vshrl.u32 %v1002_v37, %v1018_v14  ;;  %v1023_v17 = vadd.s32 127, %v1022_v29  ;;  %v1171_v44 = vshll.u32 %v8694_v15, %v8723_v63  ;;  %v1172_v60 = vshrl.u32 %v8687_v50, %v8724_v23 }
 0x168   : > { %v799_v53 = vadd.s32 536870912, %v798_v16  ;;  %v1178_v43 = vshrl.u32 %v8681_v55, %v8724_v23  ;;  %v1175_v38 = vshrl.u32 %v8688_v12, %v8724_v23  ;;  %v1181_v31 = vshrl.u32 %v8690_v21, %v8724_v23 }
 0x169   : > { %v1021_v35 = vor.u32 %v1020_v51, %v1019_v33  ;;  %v1024_v28 = vshll.u32 %v1023_v17, 23  ;;  %v1161_v42 = vand.u32 8388607, %v1154_v34  ;;  %v1177_v22 = vshll.u32 %v8688_v12, %v8723_v63 }
 0x16a   : > { %v6042_v45 = vshrl.u32 %v799_v53, 30  ;;  %v1184_v39 = vshrl.u32 %v8672_v52, %v8724_v23  ;;  %v6050_v58 = vand.u32 3, %v1039_v46  ;;  %v1174_v8 = vshll.u32 %v8687_v50, %v8723_v63 }
 0x16b   : > { %v1025_v4 = vor.u32 4788187, %v1024_v28  ;;  %v1180_v6 = vshll.u32 %v8681_v55, %v8723_v63  ;;  %v4696_v32 = vpop.eup %4695  ;;  %vm626_vm2 = vcmp.eq.s32.totalorder %v6028_v62, 0  ;;  %vm629_vm0 = vcmp.eq.s32.totalorder %v6028_v62, 2  ;;  %v8725_v28 = vld [vmem:[#allocation15_spill] sm:$0xff] }
 0x16c   : > { %v801_v13 = vshll.u32 %v6042_v45, 30  ;;  %v1173_v26 = vor.u32 %v1172_v60, %v1171_v44  ;;  %v1179_v30 = vor.u32 %v1178_v43, %v1177_v22  ;;  %v1183_v47 = vshll.u32 %v8690_v21, %v8723_v63  ;;  %v4698_v7 = vpop.eup %4697 }
 0x16d   : > { %v1026_v36 = vand.u32 2147483647, %v1025_v4  ;;  %v1028_v37 = vcvt.s32.f32 %v1021_v35  ;;  %v1176_v14 = vor.u32 %v1175_v38, %v1174_v8  ;;  %v1182_v29 = vor.u32 %v1181_v31, %v1180_v6 }
 0x16e   : > { %v6061_v9 = vsub.s32 %v798_v16, %v801_v13  ;;  %v1162_v33 = vor.u32 8388608, %v1161_v42  ;;  %v1170_v51 = vshrl.u32 %v8694_v15, %v8724_v23  ;;  %v1185_v17 = vor.u32 %v1184_v39, %v1183_v47 }
 0x16f   : > { %v630_v46 = vxor.u32 2147483648, %v4696_v32  ;;  %v1029_v53 = vmul.f32 %v1028_v37, %v1026_v36  ;;  %vm1186_vm4 = vcmp.lt.s32.totalorder %v8725_v28, 1  ;;  %vm1189_vm15 = vcmp.lt.s32.totalorder %v8725_v28, 4 }
 0x170   : > { %v627_v44 = vxor.u32 2147483648, %v4698_v7  ;;  %v804_v63 = vsub.s32 0, %v6061_v9  ;;  %vm1187_vm5 = vcmp.lt.s32.totalorder %v8725_v28, 2  ;;  %v1191_v60 = vsel %vm1189_vm15, %v1179_v30, 2102212464 }
 0x171   : > { %v1030_v43 = vxor.u32 2147483648, %v1029_v53  ;;  %vm1188_vm6 = vcmp.lt.s32.totalorder %v8725_v28, 3  ;;  %v1194_v16 = vsel %vm1186_vm4, %v1173_v26, %v1176_v14  ;;  %v1195_v35 = vsel %vm1189_vm15, %v1182_v29, 920167782 }
 0x172   : > { %v4335_v23 = vmin.u32 %v804_v63, %v6061_v9  ;;  %v1196_v38 = vsel %vm1188_vm6, %v1179_v30, %v1195_v35  ;;  %v1198_v31 = vsel %vm1186_vm4, %v1176_v14, %v1179_v30  ;;  %v1199_v42 = vsel %vm1189_vm15, %v1185_v17, 1326507024 }
 0x173   : > { %v1031_v22 = vsel %vm948_vm7, %v1030_v43, %v1029_v53  ;;  %v1190_v39 = vsel %vm1186_vm4, %v1170_v51, %v1173_v26  ;;  %v1192_v4 = vsel %vm1188_vm6, %v1176_v14, %v1191_v60  ;;  %v1200_v8 = vsel %vm1188_vm6, %v1182_v29, %v1199_v42 }
 0x174   : > { %v1034_v6 = vsel %vm6014_vm8, %v5074_v18, %v1031_v22  ;;  %v806_v13 = vclz %v4335_v23  ;;  %v1197_v47 = vsel %vm1187_vm5, %v1194_v16, %v1196_v38  ;;  %v1202_v36 = vshll.u32 %v1162_v33, 8 }
 0x175   : > { %v628_v37 = vsel %vm626_vm2, %v4696_v32, %v627_v44  ;;  %v631_v30 = vsel %vm629_vm0, %v630_v46, %v4698_v7  ;;  %4699 = vcosq.f32 %v1034_v6  ;;  %v1201_v26 = vsel %vm1187_vm5, %v1198_v31, %v1200_v8  ;;  %v8726_v32 = vld [vmem:[#allocation14_spill] sm:$0xff] }
 0x176   : > { %4701 = vsinq.f32 %v1034_v6  ;;  %v4336_v14 = vadd.s32 4294967294, %v806_v13  ;;  %v6084_v29 = vmul.u32.u64.low %v1202_v36, %v1201_v26  ;;  %v6085_v27 = vmul.u32.u64.high %v1202_v36, %v1201_v26, %v6084_v29 }
 0x177   : > { %v1193_v51 = vsel %vm1187_vm5, %v1190_v39, %v1192_v4  ;;  %v6089_v17 = vmul.u32.u64.low %v1202_v36, %v1197_v47  ;;  %v6090_v33 = vmul.u32.u64.high %v1202_v36, %v1197_v47, %v6089_v17  ;;  %v1466_v53 = vand.u32 2147483647, %v8726_v32 }
 0x178   : > { %vm622_vm11 = vweird.f32 %v5078_v19  ;;  %vm625_vm7 = vcmp.lt.s32.totalorder %v6028_v62, 2  ;;  %v794_v7 = vadd.s32 %v5974_v10, %v5992_v2  ;;  %vm4337_vm8 = vcmp.lt.s32.totalorder %v4336_v14, 0 }
 0x179   : > { %v632_v46 = vsel %vm625_vm7, %v628_v37, %v631_v30  ;;  %vm1045_vm10 = vcmp.eq.s32.totalorder %v6050_v58, 2  ;;  %v809_v44 = vsel %vm4337_vm8, 0, %v4336_v14  ;;  %v824_v28 = vsub.s32 4, %v6042_v45 }
 0x17a   : > { %v1484_v63 = vshrl.u32 %v8687_v50, %v5420_v5  ;;  %vm1042_vm14 = vcmp.eq.s32.totalorder %v6050_v58, 0  ;;  %v810_v60 = vsub.s32 32, %v809_v44  ;;  %v814_v43 = vsub.s32 4294967266, %v809_v44 }
 0x17b   : > { %v1209_v16 = vmul.u32 %v1202_v36, %v1193_v51  ;;  %v1483_v62 = vshll.u32 %v8694_v15, %v5383_v0  ;;  %vm1041_vm2 = vcmp.lt.s32.totalorder %v6050_v58, 2  ;;  %v811_v10 = vshll.u32 %v6061_v9, %v809_v44 }
 0x17c   : > { %vm1211_vm0 = vc.u32 %v6085_v27, %v6089_v17  ;;  %v1212_v2 = vadd.s32 1, %v6090_v33  ;;  %v1473_v35 = vand.u32 8388607, %v1466_v53  ;;  %vm1038_vm4 = vweird.f32 %v5074_v18 }
 0x17d   : > { %v812_v23 = vshrl.u32 %v794_v7, %v810_v60  ;;  %v815_v38 = vadd.s32 127, %v814_v43  ;;  %v1486_v31 = vshll.u32 %v8687_v50, %v5383_v0  ;;  %v1487_v42 = vshrl.u32 %v8688_v12, %v5420_v5 }
 0x17e   : > { %v1213_v9 = vsel %vm1211_vm0, %v1212_v2, %v6090_v33  ;;  %v1485_v22 = vor.u32 %v1484_v63, %v1483_v62  ;;  %v1489_v39 = vshll.u32 %v8688_v12, %v5383_v0  ;;  %v1490_v4 = vshrl.u32 %v8681_v55, %v5420_v5 }
 0x17f   : > { %v813_v8 = vor.u32 %v812_v23, %v811_v10  ;;  %v816_v6 = vshll.u32 %v815_v38, 23  ;;  %v1214_v13 = vadd.s32 %v1213_v9, %v1209_v16  ;;  %v1488_v47 = vor.u32 %v1487_v42, %v1486_v31  ;;  %v4700_v36 = vpop.eup %4699 }
 0x180   : > { %v633_v37 = vsel %vm622_vm11, nan, %v632_v46  ;;  %v1474_v30 = vor.u32 8388608, %v1473_v35  ;;  %v1491_v26 = vor.u32 %v1490_v4, %v1489_v39  ;;  %vm1498_vm15 = vcmp.lt.s32.totalorder %v8713_v61, 1  ;;  %v4702_v14 = vpop.eup %4701 }
 0x181   : > { %v1046_v29 = vxor.u32 2147483648, %v4700_v36  ;;  %v817_v51 = vor.u32 4788187, %v816_v6  ;;  %v1215_v33 = vadd.s32 536870912, %v1214_v13  ;;  %vm1500_vm5 = vcmp.lt.s32.totalorder %v8713_v61, 3 }
 0x182   : > { %v1043_v0 = vxor.u32 2147483648, %v4702_v14  ;;  %vm1499_vm6 = vcmp.lt.s32.totalorder %v8713_v61, 2  ;;  %v1506_v7 = vsel %vm1498_vm15, %v1485_v22, %v1488_v47  ;;  %v1508_v19 = vsel %vm1500_vm5, %v1491_v26, %v5878_v1 }
 0x183   : > { %v1047_v46 = vsel %vm1045_vm10, %v1046_v29, %v4702_v14  ;;  %v818_v44 = vand.u32 2147483647, %v817_v51  ;;  %v820_v63 = vcvt.s32.f32 %v813_v8  ;;  %v1216_v60 = vshrl.u32 %v1215_v33, 30 }
 0x184   : > { %v1044_v43 = vsel %vm1042_vm14, %v4700_v36, %v1043_v0  ;;  %v1482_v16 = vshrl.u32 %v8694_v15, %v5420_v5  ;;  %v1503_v62 = vsel %vm1501_vm1, %v1491_v26, 2102212464  ;;  %v1509_v10 = vsel %vm1499_vm6, %v1506_v7, %v1508_v19 }
 0x185   : > { %v1048_v1 = vsel %vm1041_vm2, %v1044_v43, %v1047_v46  ;;  %v821_v2 = vmul.f32 %v820_v63, %v818_v44  ;;  %v1217_v35 = vshll.u32 %v1216_v60, 30  ;;  %v1510_v23 = vsel %vm1498_vm15, %v1488_v47, %v1491_v26 }
 0x186   : > { %v1049_v38 = vsel %vm1038_vm4, nan, %v1048_v1  ;;  %vm740_vm11 = vcmp.lt.s32.totalorder %v8714_v41, 0  ;;  %v1512_v5 = vsel %vm1500_vm5, %v5771_v57, %v5999_v11  ;;  %v1514_v31 = vshll.u32 %v1474_v30, 8  ;;  %v8732_v1 = vld [vmem:[#allocation23_spill] sm:$0xff] }
 0x187   : > { %v4472_v42 = vpack.c.bf16 %v1049_v38, %v633_v37  ;;  %v822_v9 = vxor.u32 2147483648, %v821_v2  ;;  %v6153_v58 = vsub.s32 %v1214_v13, %v1217_v35  ;;  %v1502_v39 = vsel %vm1498_vm15, %v1482_v16, %v1485_v22  ;;  %v8731_v16 = vld [vmem:[#allocation8_spill] sm:$0xff] }
 0x188   : > { %v1504_v4 = vsel %vm1500_vm5, %v1488_v47, %v1503_v62  ;;  %v1513_v18 = vsel %vm1499_vm6, %v1510_v23, %v1512_v5  ;;  %v6161_v8 = vmul.u32.u64.low %v1514_v31, %v1509_v10  ;;  %v6162_v6 = vmul.u32.u64.high %v1514_v31, %v1509_v10, %v6161_v8 }
 0x189   : > { %v6166_v57 = vand.u32 31, %v6010_v49  ;;  %v6169_v11 = vshrl.u32 %v5981_v40, 5  ;;  %4473 = vmatpush1.bf16.msra.mxu0 %v4472_v42  ;;  %v825_v22 = vsel %vm740_vm11, %v824_v28, %v6042_v45  ;;  %v1220_v13 = vsub.s32 0, %v6153_v58 }
 0x18a   : > { %v823_v47 = vsel %vm740_vm11, %v822_v9, %v821_v2  ;;  %v1240_v36 = vsub.s32 4, %v1216_v60  ;;  %v6175_v37 = vmul.u32.u64.low %v1514_v31, %v1513_v18  ;;  %v6176_v30 = vmul.u32.u64.high %v1514_v31, %v1513_v18, %v6175_v37 }
 0x18b   : > { %v1700_v26 = vshll.u32 %v8681_v55, %v6006_v25  ;;  %vm6182_vm1 = vcmp.le.f32.partialorder %v738_v56, 0.7853982  ;;  %v4351_v14 = vmin.u32 %v1220_v13, %v6153_v58  ;;  %v1505_v45 = vsel %vm1499_vm6, %v1502_v39, %v1504_v4 }
 0x18c   : > { %v1701_v28 = vshrl.u32 %v8690_v21, %v6026_v48  ;;  %v6193_v29 = vshll.u32 %v8690_v21, %v6006_v25  ;;  %v827_v51 = vsel %vm6182_vm1, 0, %v825_v22  ;;  %v1524_v56 = vadd.s32 1, %v6162_v6 }
 0x18d   : > { %v6200_v33 = vshrl.u32 %v8672_v52, %v6026_v48  ;;  %v826_v61 = vsel %vm6182_vm1, %v8714_v41, %v823_v47  ;;  %vm1156_vm7 = vcmp.lt.s32.totalorder %v8722_v59, 0  ;;  %v1222_v0 = vclz %v4351_v14 }
 0x18e   : > { %vm6208_vm8 = vcmp.le.f32.partialorder %v1154_v34, 0.7853982  ;;  %v1241_v19 = vsel %vm1156_vm7, %v1240_v36, %v1216_v60  ;;  %v1521_v46 = vmul.u32 %v1514_v31, %v1505_v45  ;;  %vm1523_vm10 = vc.u32 %v6176_v30, %v6161_v8  ;;  %v8733_v31 = vld [vmem:[#allocation18_spill] sm:$0xff] }
 0x18f   : > { %v831_v44 = vadd.s32 3, %v827_v51  ;;  %v4352_v63 = vadd.s32 4294967294, %v1222_v0  ;;  %v1525_v43 = vsel %vm1523_vm10, %v1524_v56, %v6162_v6  ;;  %v1882_v62 = vand.u32 2147483647, %v8731_v16 }
 0x190   : > { %4703 = vcosq.f32 %v826_v61  ;;  %v1526_v10 = vadd.s32 %v1525_v43, %v1521_v46  ;;  %v1900_v34 = vshrl.u32 %v8687_v50, %v8732_v1  ;;  %v1903_v2 = vshrl.u32 %v8688_v12, %v8732_v1 }
 0x191   : > { %v1210_v60 = vadd.s32 %v6089_v17, %v6085_v27  ;;  %vm4353_vm14 = vcmp.lt.s32.totalorder %v4352_v63, 0  ;;  %v1243_v35 = vsel %vm6208_vm8, 0, %v1241_v19  ;;  %v1906_v23 = vshrl.u32 %v8681_v55, %v8732_v1 }
 0x192   : > { %v1225_v38 = vsel %vm4353_vm14, 0, %v4352_v63  ;;  %v1527_v5 = vadd.s32 536870912, %v1526_v10  ;;  %v1899_v42 = vshll.u32 %v8694_v15, %v8733_v31  ;;  %v1902_v9 = vshll.u32 %v8687_v50, %v8733_v31  ;;  %v8734_v63 = vld [vmem:[#allocation27_spill] sm:$0xff] }
 0x193   : > { %v1226_v39 = vsub.s32 32, %v1225_v38  ;;  %v1230_v4 = vsub.s32 4294967266, %v1225_v38  ;;  %v1889_v27 = vand.u32 8388607, %v1882_v62  ;;  %v1905_v17 = vshll.u32 %v8688_v12, %v8733_v31 }
 0x194   : > { %4705 = vsinq.f32 %v826_v61  ;;  %v6236_v18 = vshrl.u32 %v1527_v5, 30  ;;  %v1901_v6 = vor.u32 %v1900_v34, %v1899_v42  ;;  %v1904_v22 = vor.u32 %v1903_v2, %v1902_v9 }
 0x195   : > { %vm1709_vm2 = vcmp.lt.s32.totalorder %v6169_v11, 4  ;;  %v1227_v13 = vshll.u32 %v6153_v58, %v1225_v38  ;;  %v1228_v47 = vshrl.u32 %v1210_v60, %v1226_v39  ;;  %v1231_v36 = vadd.s32 127, %v1230_v4 }
 0x196   : > { %v1907_v37 = vor.u32 %v1906_v23, %v1905_v17  ;;  %v6240_v40 = vor.u32 %v1701_v28, %v1700_v26  ;;  %v1705_v14 = vor.u32 %v6200_v33, %v6193_v29  ;;  %v6244_v45 = vand.u32 3, %v831_v44  ;;  %v8735_v33 = vld [vmem:[#allocation38_spill] sm:$0xff] }
 0x197   : > { %v1529_v51 = vshll.u32 %v6236_v18, 30  ;;  %v1229_v56 = vor.u32 %v1228_v47, %v1227_v13  ;;  %v1232_v61 = vshll.u32 %v1231_v36, 23  ;;  %v1247_v0 = vadd.s32 3, %v1243_v35  ;;  %v8736_v35 = vld [vmem:[#allocation40_spill] sm:$0xff]  ;;  %v8737_v23 = vld [vmem:[#allocation30_spill] sm:$0xff] }
 0x198   : > { %v1890_v19 = vor.u32 8388608, %v1889_v27  ;;  %v1898_v58 = vshrl.u32 %v8694_v15, %v8732_v1  ;;  %vm1914_vm0 = vcmp.lt.s32.totalorder %v8734_v63, 1  ;;  %vm1916_vm4 = vcmp.lt.s32.totalorder %v8734_v63, 3 }
 0x199   : > { %v6247_v46 = vsub.s32 %v1526_v10, %v1529_v51  ;;  %v1233_v26 = vor.u32 4788187, %v1232_v61  ;;  %v1919_v28 = vsel %vm1917_vm13, %v1907_v37, 2102212464  ;;  %v1922_v29 = vsel %vm1914_vm0, %v1901_v6, %v1904_v22 }
 0x19a   : > { %v1924_v44 = vsel %vm1916_vm4, %v1907_v37, %v8735_v33  ;;  %v6256_v43 = vpop.eup %4703  ;;  %vm1915_vm15 = vcmp.lt.s32.totalorder %v8734_v63, 2  ;;  %v1918_v10 = vsel %vm1914_vm0, %v1898_v58, %v1901_v6  ;;  %v1926_v2 = vsel %vm1914_vm0, %v1904_v22, %v1907_v37 }
 0x19b   : > { %v1532_v34 = vsub.s32 0, %v6247_v46  ;;  %v1234_v1 = vand.u32 2147483647, %v1233_v26  ;;  %v1236_v60 = vcvt.s32.f32 %v1229_v56  ;;  %v1928_v38 = vsel %vm1916_vm4, %v8737_v23, %v8736_v35 }
 0x19c   : > { %v1930_v5 = vshll.u32 %v1890_v19, 8  ;;  %v1920_v42 = vsel %vm1916_vm4, %v1904_v22, %v1919_v28  ;;  %v1925_v9 = vsel %vm1915_vm15, %v1922_v29, %v1924_v44  ;;  %v1929_v39 = vsel %vm1915_vm15, %v1926_v2, %v1928_v38  ;;  %v8738_v44 = vld [vmem:[#allocation22_spill] sm:$0xff] }
 0x19d   : > { %v4363_v31 = vmin.u32 %v1532_v34, %v6247_v46  ;;  %v838_v4 = vxor.u32 2147483648, %v6256_v43  ;;  %v1237_v27 = vmul.f32 %v1236_v60, %v1234_v1  ;;  %v6272_v47 = vsub.s32 32, %v6166_v57 }
 0x19e   : > { %v6268_v17 = vmul.u32.u64.low %v1930_v5, %v1929_v39  ;;  %v6269_v6 = vmul.u32.u64.high %v1930_v5, %v1929_v39, %v6268_v17  ;;  %v4706_v13 = vpop.eup %4705  ;;  %v6277_v22 = vsel %vm1709_vm2, %v6240_v40, 920167782  ;;  %v1719_v36 = vsel %vm1709_vm2, %v1705_v14, 1326507024 }
 0x19f   : > { %v1534_v37 = vclz %v4363_v31  ;;  %vm834_vm13 = vcmp.eq.s32.totalorder %v6244_v45, 0  ;;  %v1238_v51 = vxor.u32 2147483648, %v1237_v27  ;;  %v1921_v56 = vsel %vm1915_vm15, %v1918_v10, %v1920_v42 }
 0x1a0   : > { %v6284_v61 = vmul.u32.u64.low %v1930_v5, %v1925_v9  ;;  %v6285_v19 = vmul.u32.u64.high %v1930_v5, %v1925_v9, %v6284_v61  ;;  %vm837_vm5 = vcmp.eq.s32.totalorder %v6244_v45, 2  ;;  %v6289_v58 = vand.u32 3, %v1247_v0 }
 0x1a1   : > { %v1522_v26 = vadd.s32 %v6161_v8, %v6176_v30  ;;  %v4364_v28 = vadd.s32 4294967294, %v1534_v37  ;;  %v835_v14 = vxor.u32 2147483648, %v4706_v13  ;;  %v839_v29 = vsel %vm837_vm5, %v838_v4, %v4706_v13 }
 0x1a2   : > { %v1239_v33 = vsel %vm1156_vm7, %v1238_v51, %v1237_v27  ;;  %v1674_v63 = vand.u32 2147483647, %v8738_v44  ;;  %vm833_vm6 = vcmp.lt.s32.totalorder %v6244_v45, 2  ;;  %v1937_v0 = vmul.u32 %v1930_v5, %v1921_v56 }
 0x1a3   : > { %v1242_v34 = vsel %vm6208_vm8, %v8722_v59, %v1239_v33  ;;  %vm4365_vm11 = vcmp.lt.s32.totalorder %v4364_v28, 0  ;;  %vm1939_vm1 = vc.u32 %v6269_v6, %v6284_v61  ;;  %v1940_v30 = vadd.s32 1, %v6285_v19 }
 0x1a4   : > { %4707 = vcosq.f32 %v1242_v34  ;;  %v1537_v8 = vsel %vm4365_vm11, 0, %v4364_v28  ;;  %v1692_v10 = vshrl.u32 %v8687_v50, %v6026_v48  ;;  %v1691_v60 = vshll.u32 %v8694_v15, %v6006_v25 }
 0x1a5   : > { %4709 = vsinq.f32 %v1242_v34  ;;  %v1538_v2 = vsub.s32 32, %v1537_v8  ;;  %v1542_v1 = vsub.s32 4294967266, %v1537_v8  ;;  %v1941_v7 = vsel %vm1939_vm1, %v1940_v30, %v6285_v19 }
 0x1a6   : > { %v1681_v35 = vand.u32 8388607, %v1674_v63  ;;  %v1694_v23 = vshll.u32 %v8687_v50, %v6006_v25  ;;  %v1695_v38 = vshrl.u32 %v8688_v12, %v6026_v48  ;;  %v1539_v5 = vshll.u32 %v6247_v46, %v1537_v8 }
 0x1a7   : > { %v1540_v31 = vshrl.u32 %v1522_v26, %v1538_v2  ;;  %v1543_v42 = vadd.s32 127, %v1542_v1  ;;  %v1942_v9 = vadd.s32 %v1941_v7, %v1937_v0  ;;  %vm1253_vm7 = vcmp.eq.s32.totalorder %v6289_v58, 2 }
 0x1a8   : > { %v1693_v39 = vor.u32 %v1692_v10, %v1691_v60  ;;  %v1696_v4 = vor.u32 %v1695_v38, %v1694_v23  ;;  %v1697_v27 = vshll.u32 %v8688_v12, %v6006_v25  ;;  %v1698_v17 = vshrl.u32 %v8681_v55, %v6026_v48 }
 0x1a9   : > { %vm830_vm8 = vweird.f32 %v8714_v41  ;;  %v836_v13 = vsel %vm834_vm13, %v6256_v43, %v835_v14  ;;  %vm1250_vm10 = vcmp.eq.s32.totalorder %v6289_v58, 0  ;;  %v1541_v46 = vor.u32 %v1540_v31, %v1539_v5 }
 0x1aa   : > { %v1544_v37 = vshll.u32 %v1543_v42, 23  ;;  %v1943_v51 = vadd.s32 536870912, %v1942_v9  ;;  %vm1249_vm14 = vcmp.lt.s32.totalorder %v6289_v58, 2  ;;  %vm1468_vm0 = vcmp.lt.s32.totalorder %v8726_v32, 0 }
 0x1ab   : > { %v1552_v25 = vsub.s32 4, %v6236_v18  ;;  %v1682_v56 = vor.u32 8388608, %v1681_v35  ;;  %v1699_v19 = vor.u32 %v1698_v17, %v1697_v27  ;;  %vm1708_vm4 = vcmp.lt.s32.totalorder %v6169_v11, 3 }
 0x1ac   : > { %vm1246_vm15 = vweird.f32 %v8722_v59  ;;  %v1545_v26 = vor.u32 4788187, %v1544_v37  ;;  %v1944_v28 = vshrl.u32 %v1943_v51, 30  ;;  %vm1706_vm13 = vcmp.lt.s32.totalorder %v6169_v11, 1 }
 0x1ad   : > { %v1720_v43 = vsel %vm1708_vm4, %v6240_v40, %v1719_v36  ;;  %v840_v14 = vsel %vm833_vm6, %v836_v13, %v839_v29  ;;  %v1714_v33 = vsel %vm1706_vm13, %v1693_v39, %v1696_v4  ;;  %v1716_v34 = vsel %vm1708_vm4, %v1699_v19, %v6277_v22 }
 0x1ae   : > { %v1718_v0 = vsel %vm1706_vm13, %v1696_v4, %v1699_v19  ;;  %v1546_v8 = vand.u32 2147483647, %v1545_v26  ;;  %v1548_v30 = vcvt.s32.f32 %v1541_v46  ;;  %v1945_v10 = vshll.u32 %v1944_v28, 30  ;;  %v4708_v2 = vpop.eup %4707 }
 0x1af   : > { %vm1707_vm5 = vcmp.lt.s32.totalorder %v6169_v11, 2  ;;  %v1690_v40 = vshrl.u32 %v8694_v15, %v6026_v48  ;;  %v1711_v45 = vsel %vm1709_vm2, %v1699_v19, 2102212464  ;;  %v1722_v29 = vshll.u32 %v1682_v56, 8  ;;  %v4710_v22 = vpop.eup %4709  ;;  %v8741_v11 = vld [vmem:[#allocation12_spill] sm:$0xff] }
 0x1b0   : > { %v1721_v36 = vsel %vm1707_vm5, %v1718_v0, %v1720_v43  ;;  %v1254_v1 = vxor.u32 2147483648, %v4708_v2  ;;  %v1549_v60 = vmul.f32 %v1548_v30, %v1546_v8  ;;  %v6350_v7 = vsub.s32 %v1942_v9, %v1945_v10 }
 0x1b1   : > { %v1717_v35 = vsel %vm1707_vm5, %v1714_v33, %v1716_v34  ;;  %v1251_v23 = vxor.u32 2147483648, %v4710_v22  ;;  %v1710_v38 = vsel %vm1706_vm13, %v1690_v40, %v1693_v39  ;;  %v1712_v9 = vsel %vm1708_vm4, %v1696_v4, %v1711_v45 }
 0x1b2   : > { %v6356_v48 = vmul.u32.u64.low %v1722_v29, %v1721_v36  ;;  %v6357_v5 = vmul.u32.u64.high %v1722_v29, %v1721_v36, %v6356_v48  ;;  %v1255_v31 = vsel %vm1253_vm7, %v1254_v1, %v4710_v22  ;;  %v1550_v42 = vxor.u32 2147483648, %v1549_v60 }
 0x1b3   : > { %v1948_v27 = vsub.s32 0, %v6350_v7  ;;  %v841_v17 = vsel %vm830_vm8, nan, %v840_v14  ;;  %v1252_v13 = vsel %vm1250_vm10, %v4708_v2, %v1251_v23  ;;  %vm6376_vm2 = vcmp.le.f32.partialorder %v1466_v53, 0.7853982 }
 0x1b4   : > { %v6368_v46 = vmul.u32.u64.low %v1722_v29, %v1717_v35  ;;  %v6369_v39 = vmul.u32.u64.high %v1722_v29, %v1717_v35, %v6368_v46  ;;  %v1256_v37 = vsel %vm1249_vm14, %v1252_v13, %v1255_v31  ;;  %v1551_v41 = vsel %vm1468_vm0, %v1550_v42, %v1549_v60  ;;  %v8743_v35 = vld [vmem:[#allocation34_spill] sm:$0xff] }
 0x1b5   : > { %v4379_v4 = vmin.u32 %v1948_v27, %v6350_v7  ;;  %v1257_v56 = vsel %vm1246_vm15, nan, %v1256_v37  ;;  %v1553_v19 = vsel %vm1468_vm0, %v1552_v25, %v6236_v18  ;;  %v1968_v58 = vsub.s32 4, %v1944_v28 }
 0x1b6   : > { %v1713_v26 = vsel %vm1707_vm5, %v1710_v38, %v1712_v9  ;;  %v4480_v53 = vpack.c.bf16 %v1257_v56, %v841_v17  ;;  %v1554_v43 = vsel %vm6376_vm2, %v8726_v32, %v1551_v41  ;;  %vm1731_vm6 = vc.u32 %v6357_v5, %v6368_v46 }
 0x1b7   : > { %v1950_v14 = vclz %v4379_v4  ;;  %v6396_v59 = vshrl.u32 %v6010_v49, 5  ;;  %v6400_v33 = vshll.u32 %v8681_v55, %v6166_v57  ;;  %v1732_v18 = vadd.s32 1, %v6369_v39 }
 0x1b8   : > { %v2090_v25 = vand.u32 2147483647, %v8741_v11  ;;  %v6406_v34 = vshrl.u32 %v8690_v21, %v6272_v47  ;;  %4481 = vmatpush1.bf16.msra.mxu1 %v4480_v53  ;;  %vm1884_vm11 = vcmp.lt.s32.totalorder %v8731_v16, 0  ;;  %v1729_v8 = vmul.u32 %v1722_v29, %v1713_v26  ;;  %v8742_v29 = vld [vmem:[#allocation43_spill] sm:$0xff]  ;;  %v8746_v26 = vld [vmem:[#allocation33_spill] sm:$0xff] }
 0x1b9   : > { %v4380_v0 = vadd.s32 4294967294, %v1950_v14  ;;  %v1555_v49 = vsel %vm6376_vm2, 0, %v1553_v19  ;;  %4711 = vcosq.f32 %v1554_v43  ;;  %v1938_v30 = vadd.s32 %v6284_v61, %v6269_v6  ;;  %v8747_v14 = vld [vmem:[#allocation49_spill] sm:$0xff] }
 0x1ba   : > { %v1733_v10 = vsel %vm1731_vm6, %v1732_v18, %v6369_v39  ;;  %4713 = vsinq.f32 %v1554_v43  ;;  %v1969_v2 = vsel %vm1884_vm11, %v1968_v58, %v1944_v28  ;;  %v2097_v36 = vand.u32 8388607, %v2090_v25  ;;  %v8748_v18 = vld [vmem:[#allocation45_spill] sm:$0xff] }
 0x1bb   : > { %vm4381_vm1 = vcmp.lt.s32.totalorder %v4380_v0, 0  ;;  %v1734_v40 = vadd.s32 %v1733_v10, %v1729_v8  ;;  %v2108_v22 = vshrl.u32 %v8687_v50, %v8742_v29  ;;  %v2111_v1 = vshrl.u32 %v8688_v12, %v8742_v29 }
 0x1bc   : > { %v1953_v45 = vsel %vm4381_vm1, 0, %v4380_v0  ;;  %v2110_v23 = vshll.u32 %v8687_v50, %v8743_v35  ;;  %v2107_v28 = vshll.u32 %v8694_v15, %v8743_v35  ;;  %v2113_v48 = vshll.u32 %v8688_v12, %v8743_v35 }
 0x1bd   : > { %v1954_v60 = vsub.s32 32, %v1953_v45  ;;  %v1958_v6 = vsub.s32 4294967266, %v1953_v45  ;;  %v1735_v61 = vadd.s32 536870912, %v1734_v40  ;;  %v1955_v38 = vshll.u32 %v6350_v7, %v1953_v45 }
 0x1be   : > { %v2114_v31 = vshrl.u32 %v8681_v55, %v8742_v29  ;;  %v2112_v17 = vor.u32 %v2111_v1, %v2110_v23  ;;  %v6435_v13 = vshrl.u32 %v8672_v52, %v6272_v47  ;;  %vm6439_vm7 = vcmp.le.f32.partialorder %v1882_v62, 0.7853982 }
 0x1bf   : > { %v1956_v42 = vshrl.u32 %v1938_v30, %v1954_v60  ;;  %v1959_v27 = vadd.s32 127, %v1958_v6  ;;  %v6431_v9 = vshrl.u32 %v1735_v61, 30  ;;  %v2109_v39 = vor.u32 %v2108_v22, %v2107_v28  ;;  %v8749_v22 = vld [vmem:[#allocation48_spill] sm:$0xff] }
 0x1c0   : > { %v2115_v37 = vor.u32 %v2114_v31, %v2113_v48  ;;  %v1559_v51 = vadd.s32 3, %v1555_v49  ;;  %v1971_v19 = vsel %vm6439_vm7, 0, %v1969_v2  ;;  %v2098_v58 = vor.u32 8388608, %v2097_v36 }
 0x1c1   : > { %v1957_v41 = vor.u32 %v1956_v42, %v1955_v38  ;;  %v1960_v4 = vshll.u32 %v1959_v27, 23  ;;  %v1737_v56 = vshll.u32 %v6431_v9, 30  ;;  %vm2122_vm8 = vcmp.lt.s32.totalorder %v8746_v26, 1  ;;  %v8750_v27 = vld [vmem:[#allocation10_spill] sm:$0xff] }
 0x1c2   : > { %vm2124_vm10 = vcmp.lt.s32.totalorder %v8746_v26, 3  ;;  %v2134_v43 = vsel %vm2122_vm8, %v2112_v17, %v2115_v37  ;;  %v2106_v49 = vshrl.u32 %v8694_v15, %v8742_v29  ;;  %vm2123_vm14 = vcmp.lt.s32.totalorder %v8746_v26, 2 }
 0x1c3   : > { %v1961_v53 = vor.u32 4788187, %v1960_v4  ;;  %v6448_v62 = vsub.s32 %v1734_v40, %v1737_v56  ;;  %v2136_v0 = vsel %vm2124_vm10, %v8748_v18, %v8747_v14  ;;  %v4712_v8 = vpop.eup %4711  ;;  %v2127_v30 = vsel %vm2125_vm9, %v2115_v37, 2102212464 }
 0x1c4   : > { %v2130_v10 = vsel %vm2122_vm8, %v2109_v39, %v2112_v17  ;;  %v4714_v2 = vpop.eup %4713  ;;  %v1964_v45 = vcvt.s32.f32 %v1957_v41  ;;  %v2132_v1 = vsel %vm2124_vm10, %v2115_v37, %v8749_v22  ;;  %v1560_v60 = vand.u32 3, %v1559_v51 }
 0x1c5   : > { %v1962_v40 = vand.u32 2147483647, %v1961_v53  ;;  %v1740_v36 = vsub.s32 0, %v6448_v62  ;;  %v1975_v6 = vadd.s32 3, %v1971_v19  ;;  %v2126_v29 = vsel %vm2122_vm8, %v2106_v49, %v2109_v39 }
 0x1c6   : > { %v2137_v61 = vsel %vm2123_vm14, %v2134_v43, %v2136_v0  ;;  %v2128_v38 = vsel %vm2124_vm10, %v2112_v17, %v2127_v30  ;;  %v2138_v28 = vshll.u32 %v2098_v58, 8  ;;  %v1563_v48 = vxor.u32 2147483648, %v4714_v2 }
 0x1c7   : > { %v1965_v35 = vmul.f32 %v1964_v45, %v1962_v40  ;;  %v4371_v23 = vmin.u32 %v1740_v36, %v6448_v62  ;;  %v1566_v31 = vxor.u32 2147483648, %v4712_v8  ;;  %v2133_v42 = vsel %vm2123_vm14, %v2130_v10, %v2132_v1 }
 0x1c8   : > { %v1362_v37 = vand.u32 2147483647, %v8750_v27  ;;  %v6477_v39 = vmul.u32.u64.low %v2138_v28, %v2137_v61  ;;  %v6478_v4 = vmul.u32.u64.high %v2138_v28, %v2137_v61, %v6477_v39  ;;  %vm1562_vm9 = vcmp.eq.s32.totalorder %v1560_v60, 0 }
 0x1c9   : > { %v1966_v51 = vxor.u32 2147483648, %v1965_v35  ;;  %v1742_v41 = vclz %v4371_v23  ;;  %vm1565_vm0 = vcmp.eq.s32.totalorder %v1560_v60, 2  ;;  %v6480_v56 = vand.u32 3, %v1975_v6 }
 0x1ca   : > { %v2129_v17 = vsel %vm2123_vm14, %v2126_v29, %v2128_v38  ;;  %vm1561_vm4 = vcmp.lt.s32.totalorder %v1560_v60, 2  ;;  %v6486_v53 = vmul.u32.u64.low %v2138_v28, %v2133_v42  ;;  %v6487_v43 = vmul.u32.u64.high %v2138_v28, %v2133_v42, %v6486_v53 }
 0x1cb   : > { %v1967_v19 = vsel %vm1884_vm11, %v1966_v51, %v1965_v35  ;;  %v4372_v58 = vadd.s32 4294967294, %v1742_v41  ;;  %v1564_v14 = vsel %vm1562_vm9, %v4712_v8, %v1563_v48  ;;  %v1567_v18 = vsel %vm1565_vm0, %v1566_v31, %v4714_v2  ;;  %v8751_v8 = vld [vmem:[#allocation44_spill] sm:$0xff] }
 0x1cc   : > { %v1970_v0 = vsel %vm6439_vm7, %v8731_v16, %v1967_v19  ;;  %v1730_v49 = vadd.s32 %v6368_v46, %v6357_v5  ;;  %v2145_v26 = vmul.u32 %v2138_v28, %v2129_v17  ;;  %v1369_v30 = vand.u32 8388607, %v1362_v37  ;;  %v8752_v46 = vld [vmem:[#allocation46_spill] sm:$0xff] }
 0x1cd   : > { %4715 = vcosq.f32 %v1970_v0  ;;  %vm4373_vm15 = vcmp.lt.s32.totalorder %v4372_v58, 0  ;;  %vm2147_vm13 = vc.u32 %v6478_v4, %v6486_v53  ;;  %v1379_v2 = vshll.u32 %v8694_v15, %v8751_v8 }
 0x1ce   : > { %4717 = vsinq.f32 %v1970_v0  ;;  %v1745_v10 = vsel %vm4373_vm15, 0, %v4372_v58  ;;  %v2148_v5 = vadd.s32 1, %v6487_v43  ;;  %v1380_v36 = vshrl.u32 %v8687_v50, %v8752_v46 }
 0x1cf   : > { %v1746_v40 = vsub.s32 32, %v1745_v10  ;;  %v1747_v7 = vshll.u32 %v6448_v62, %v1745_v10  ;;  %v1750_v45 = vsub.s32 4294967266, %v1745_v10  ;;  %v1382_v22 = vshll.u32 %v8687_v50, %v8751_v8 }
 0x1d0   : > { %v1383_v1 = vshrl.u32 %v8688_v12, %v8752_v46  ;;  %v1385_v6 = vshll.u32 %v8688_v12, %v8751_v8  ;;  %v2149_v35 = vsel %vm2147_vm13, %v2148_v5, %v6487_v43  ;;  %v1386_v62 = vshrl.u32 %v8681_v55, %v8752_v46 }
 0x1d1   : > { %v1748_v29 = vshrl.u32 %v1730_v49, %v1746_v40  ;;  %v1751_v61 = vadd.s32 127, %v1750_v45  ;;  %vm1558_vm5 = vweird.f32 %v8726_v32  ;;  %vm1978_vm2 = vcmp.eq.s32.totalorder %v6480_v56, 0 }
 0x1d2   : > { %v2150_v23 = vadd.s32 %v2149_v35, %v2145_v26  ;;  %v1381_v38 = vor.u32 %v1380_v36, %v1379_v2  ;;  %v1384_v28 = vor.u32 %v1383_v1, %v1382_v22  ;;  %v1370_v42 = vor.u32 8388608, %v1369_v30 }
 0x1d3   : > { %v1749_v48 = vor.u32 %v1748_v29, %v1747_v7  ;;  %v1752_v31 = vshll.u32 %v1751_v61, 23  ;;  %v1387_v51 = vor.u32 %v1386_v62, %v1385_v6  ;;  %v1568_v41 = vsel %vm1561_vm4, %v1564_v14, %v1567_v18 }
 0x1d4   : > { %vm1974_vm6 = vweird.f32 %v8731_v16  ;;  %vm1981_vm11 = vcmp.eq.s32.totalorder %v6480_v56, 2  ;;  %vm1676_vm1 = vcmp.lt.s32.totalorder %v8738_v44, 0  ;;  %v1760_v39 = vsub.s32 4, %v6431_v9  ;;  %v8753_v16 = vld [vmem:[#allocation36_spill] sm:$0xff] }
 0x1d5   : > { %v2151_v17 = vadd.s32 536870912, %v2150_v23  ;;  %v1753_v19 = vor.u32 4788187, %v1752_v31  ;;  %vm1394_vm7 = vcmp.lt.s32.totalorder %v5392_v20, 1  ;;  %vm1395_vm8 = vcmp.lt.s32.totalorder %v5392_v20, 2 }
 0x1d6   : > { %vm1396_vm10 = vcmp.lt.s32.totalorder %v5392_v20, 3  ;;  %v1756_v58 = vcvt.s32.f32 %v1749_v48  ;;  %v1402_v60 = vsel %vm1394_vm7, %v1381_v38, %v1384_v28  ;;  %v1406_v14 = vsel %vm1394_vm7, %v1384_v28, %v1387_v51 }
 0x1d7   : > { %v6524_v43 = vshrl.u32 %v2151_v17, 30  ;;  %v4716_v18 = vpop.eup %4715  ;;  %v1754_v0 = vand.u32 2147483647, %v1753_v19  ;;  %v1404_v49 = vsel %vm1396_vm10, %v1387_v51, %v5781_v3  ;;  %v1408_v26 = vsel %vm1396_vm10, %v5628_v24, %v5785_v54 }
 0x1d8   : > { %v1410_v30 = vshll.u32 %v1370_v42, 8  ;;  %v4718_v10 = vpop.eup %4717  ;;  %v1982_v8 = vxor.u32 2147483648, %v4716_v18  ;;  %v1399_v40 = vsel %vm1397_vm3, %v1387_v51, 2102212464  ;;  %v1409_v7 = vsel %vm1395_vm8, %v1406_v14, %v1408_v26 }
 0x1d9   : > { %v2153_v2 = vshll.u32 %v6524_v43, 30  ;;  %v1979_v45 = vxor.u32 2147483648, %v4718_v10  ;;  %v1757_v5 = vmul.f32 %v1756_v58, %v1754_v0  ;;  %v1378_v54 = vshrl.u32 %v8694_v15, %v8752_v46  ;;  %v8757_v0 = vld [vmem:[#allocation7_spill] sm:$0xff]  ;;  %v8763_v58 = vld [vmem:[#allocation37_spill] sm:$0xff] }
 0x1da   : > { %v6542_v36 = vmul.u32.u64.low %v1410_v30, %v1409_v7  ;;  %v6543_v3 = vmul.u32.u64.high %v1410_v30, %v1409_v7, %v6542_v36  ;;  %v1983_v22 = vsel %vm1981_vm11, %v1982_v8, %v4718_v10  ;;  %v1405_v1 = vsel %vm1395_vm8, %v1402_v60, %v1404_v49  ;;  %v8758_v10 = vld [vmem:[#allocation21_spill] sm:$0xff] }
 0x1db   : > { %v6547_v24 = vsub.s32 %v2150_v23, %v2153_v2  ;;  %v1569_v6 = vsel %vm1558_vm5, nan, %v1568_v41  ;;  %vm1977_vm3 = vcmp.lt.s32.totalorder %v6480_v56, 2  ;;  %v1980_v29 = vsel %vm1978_vm2, %v4716_v18, %v1979_v45  ;;  %v8754_v41 = vld [vmem:[#allocation41_spill] sm:$0xff] }
 0x1dc   : > { %v1758_v61 = vxor.u32 2147483648, %v1757_v5  ;;  %v1984_v35 = vsel %vm1977_vm3, %v1980_v29, %v1983_v22  ;;  %v1398_v23 = vsel %vm1394_vm7, %v1378_v54, %v1381_v38  ;;  %v1400_v46 = vsel %vm1396_vm10, %v1384_v28, %v1399_v40 }
 0x1dd   : > { %v2156_v62 = vsub.s32 0, %v6547_v24  ;;  %v1985_v48 = vsel %vm1974_vm6, nan, %v1984_v35  ;;  %v6567_v31 = vmul.u32.u64.low %v1410_v30, %v1405_v1  ;;  %v6568_v42 = vmul.u32.u64.high %v1410_v30, %v1405_v1, %v6567_v31 }
 0x1de   : > { %v1759_v32 = vsel %vm1676_vm1, %v1758_v61, %v1757_v5  ;;  %v6573_v56 = vshll.u32 %v8690_v21, %v6166_v57  ;;  %v4474_v51 = vpack.c.bf16 %v1985_v48, %v1569_v6  ;;  %v1761_v38 = vsel %vm1676_vm1, %v1760_v39, %v6431_v9 }
 0x1df   : > { %v4387_v28 = vmin.u32 %v2156_v62, %v6547_v24  ;;  %v6581_v17 = vor.u32 %v8754_v41, %v8753_v16  ;;  %v6585_v19 = vor.u32 %v6406_v34, %v6400_v33  ;;  %vm6589_vm14 = vcmp.le.f32.partialorder %v1674_v63, 0.7853982 }
 0x1e0   : > { %v1401_v60 = vsel %vm1395_vm8, %v1398_v23, %v1400_v46  ;;  %v1601_v9 = vor.u32 %v6435_v13, %v6573_v56  ;;  %vm1605_vm9 = vcmp.lt.s32.totalorder %v6396_v59, 4  ;;  %4475 = vmatprep.subr.bf16.mxu0 %v4474_v51  ;;  %v1762_v33 = vsel %vm6589_vm14, %v8738_v44, %v1759_v32  ;;  %v8762_v56 = vld [vmem:[#allocation26_spill] sm:$0xff] }
 0x1e1   : > { %v2158_v34 = vclz %v4387_v28  ;;  %vm1419_vm0 = vc.u32 %v6543_v3, %v6567_v31  ;;  %v1763_v63 = vsel %vm6589_vm14, 0, %v1761_v38  ;;  %vm2092_vm4 = vcmp.lt.s32.totalorder %v8741_v11, 0 }
 0x1e2   : > { %v2146_v20 = vadd.s32 %v6486_v53, %v6478_v4  ;;  %v1420_v13 = vadd.s32 1, %v6568_v42  ;;  %v2176_v14 = vsub.s32 4, %v6524_v43  ;;  %v1417_v18 = vmul.u32 %v1410_v30, %v1401_v60  ;;  %v8759_v53 = vld [vmem:[#allocation17_spill] sm:$0xff] }
 0x1e3   : > { %v4388_v39 = vadd.s32 4294967294, %v2158_v34  ;;  %v1778_v49 = vand.u32 2147483647, %v8757_v0  ;;  %4719 = vcosq.f32 %v1762_v33  ;;  %v1796_v8 = vshrl.u32 %v8687_v50, %v8758_v10 }
 0x1e4   : > { %v1421_v26 = vsel %vm1419_vm0, %v1420_v13, %v6568_v42  ;;  %v1799_v2 = vshrl.u32 %v8688_v12, %v8758_v10  ;;  %4721 = vsinq.f32 %v1762_v33  ;;  %v1795_v40 = vshll.u32 %v8694_v15, %v8759_v53 }
 0x1e5   : > { %vm4389_vm15 = vcmp.lt.s32.totalorder %v4388_v39, 0  ;;  %v1422_v4 = vadd.s32 %v1421_v26, %v1417_v18  ;;  %v1798_v30 = vshll.u32 %v8687_v50, %v8759_v53  ;;  %v1801_v45 = vshll.u32 %v8688_v12, %v8759_v53 }
 0x1e6   : > { %v2161_v7 = vsel %vm4389_vm15, 0, %v4388_v39  ;;  %v1802_v5 = vshrl.u32 %v8681_v55, %v8758_v10  ;;  %v2177_v54 = vsel %vm2092_vm4, %v2176_v14, %v6524_v43  ;;  %v1785_v6 = vand.u32 8388607, %v1778_v49 }
 0x1e7   : > { %v2162_v36 = vsub.s32 32, %v2161_v7  ;;  %v2166_v22 = vsub.s32 4294967266, %v2161_v7  ;;  %v1423_v1 = vadd.s32 536870912, %v1422_v4  ;;  %v1797_v29 = vor.u32 %v1796_v8, %v1795_v40 }
 0x1e8   : > { %v1800_v61 = vor.u32 %v1799_v2, %v1798_v30  ;;  %v1803_v35 = vor.u32 %v1802_v5, %v1801_v45  ;;  %v2163_v62 = vshll.u32 %v6547_v24, %v2161_v7  ;;  %v6635_v32 = vsel %vm1605_vm9, %v6585_v19, 920167782 }
 0x1e9   : > { %v2164_v23 = vshrl.u32 %v2146_v20, %v2162_v36  ;;  %v2167_v46 = vadd.s32 127, %v2166_v22  ;;  %v6630_v48 = vshrl.u32 %v1423_v1, 30  ;;  %v1767_v42 = vadd.s32 3, %v1763_v63  ;;  %v8765_v20 = vld [vmem:[#allocation35_spill] sm:$0xff] }
 0x1ea   : > { %vm6639_vm13 = vcmp.le.f32.partialorder %v2090_v25, 0.7853982  ;;  %vm1810_vm5 = vcmp.lt.s32.totalorder %v8762_v56, 1  ;;  %vm1812_vm2 = vcmp.lt.s32.totalorder %v8762_v56, 3  ;;  %v1786_v16 = vor.u32 8388608, %v1785_v6  ;;  %v8764_v25 = vld [vmem:[#allocation29_spill] sm:$0xff] }
 0x1eb   : > { %v2165_v51 = vor.u32 %v2164_v23, %v2163_v62  ;;  %v2168_v24 = vshll.u32 %v2167_v46, 23  ;;  %v1425_v38 = vshll.u32 %v6630_v48, 30  ;;  %v2179_v28 = vsel %vm6639_vm13, 0, %v2177_v54 }
 0x1ec   : > { %v1822_v41 = vsel %vm1810_vm5, %v1800_v61, %v1803_v35  ;;  %v1824_v60 = vsel %vm1812_vm2, %v8764_v25, %v8763_v58  ;;  %v1818_v63 = vsel %vm1810_vm5, %v1797_v29, %v1800_v61  ;;  %v1820_v13 = vsel %vm1812_vm2, %v1803_v35, %v8765_v20 }
 0x1ed   : > { %v2169_v33 = vor.u32 4788187, %v2168_v24  ;;  %v6654_v34 = vsub.s32 %v1422_v4, %v1425_v38  ;;  %v4720_v39 = vpop.eup %4719  ;;  %v6663_v14 = vsel %vm1605_vm9, %v1601_v9, 1326507024  ;;  %v1794_v18 = vshrl.u32 %v8694_v15, %v8758_v10 }
 0x1ee   : > { %vm1811_vm6 = vcmp.lt.s32.totalorder %v8762_v56, 2  ;;  %v1815_v26 = vsel %vm1813_vm12, %v1803_v35, 2102212464  ;;  %v4722_v8 = vpop.eup %4721  ;;  %v2172_v4 = vcvt.s32.f32 %v2165_v51  ;;  %v1768_v7 = vand.u32 3, %v1767_v42 }
 0x1ef   : > { %v2170_v2 = vand.u32 2147483647, %v2169_v33  ;;  %v1428_v53 = vsub.s32 0, %v6654_v34  ;;  %v1825_v40 = vsel %vm1811_vm6, %v1822_v41, %v1824_v60  ;;  %v2183_v30 = vadd.s32 3, %v2179_v28 }
 0x1f0   : > { %v1821_v9 = vsel %vm1811_vm6, %v1818_v63, %v1820_v13  ;;  %v1826_v45 = vshll.u32 %v1786_v16, 8  ;;  %v1814_v36 = vsel %vm1810_vm5, %v1794_v18, %v1797_v29  ;;  %v1816_v22 = vsel %vm1812_vm2, %v1800_v61, %v1815_v26  ;;  %v8766_v29 = vld [vmem:[#allocation11_spill] sm:$0xff] }
 0x1f1   : > { %v2173_v10 = vmul.f32 %v2172_v4, %v2170_v2  ;;  %v4359_v5 = vmin.u32 %v1428_v53, %v6654_v34  ;;  %v1771_v54 = vxor.u32 2147483648, %v4722_v8  ;;  %v1774_v1 = vxor.u32 2147483648, %v4720_v39 }
 0x1f2   : > { %v6680_v6 = vmul.u32.u64.low %v1826_v45, %v1825_v40  ;;  %v6681_v35 = vmul.u32.u64.high %v1826_v45, %v1825_v40, %v6680_v6  ;;  %v6683_v46 = vmul.u32.u64.low %v1826_v45, %v1821_v9  ;;  %v6684_v42 = vmul.u32.u64.high %v1826_v45, %v1821_v9, %v6683_v46 }
 0x1f3   : > { %v2174_v62 = vxor.u32 2147483648, %v2173_v10  ;;  %v1430_v23 = vclz %v4359_v5  ;;  %vm1770_vm12 = vcmp.eq.s32.totalorder %v1768_v7, 0  ;;  %vm1773_vm11 = vcmp.eq.s32.totalorder %v1768_v7, 2 }
 0x1f4   : > { %v1817_v51 = vsel %vm1811_vm6, %v1814_v36, %v1816_v22  ;;  %v1570_v24 = vand.u32 2147483647, %v8766_v29  ;;  %vm1769_vm1 = vcmp.lt.s32.totalorder %v1768_v7, 2  ;;  %v6692_v38 = vand.u32 3, %v2183_v30 }
 0x1f5   : > { %v2175_v61 = vsel %vm2092_vm4, %v2174_v62, %v2173_v10  ;;  %v1418_v28 = vadd.s32 %v6567_v31, %v6543_v3  ;;  %v4360_v16 = vadd.s32 4294967294, %v1430_v23  ;;  %v1772_v41 = vsel %vm1770_vm12, %v4720_v39, %v1771_v54 }
 0x1f6   : > { %v1775_v58 = vsel %vm1773_vm11, %v1774_v1, %v4722_v8  ;;  %v2178_v25 = vsel %vm6639_vm13, %v8741_v11, %v2175_v61  ;;  %vm1835_vm7 = vc.u32 %v6681_v35, %v6683_v46  ;;  %v1833_v56 = vmul.u32 %v1826_v45, %v1817_v51 }
 0x1f7   : > { %4723 = vcosq.f32 %v2178_v25  ;;  %vm4361_vm8 = vcmp.lt.s32.totalorder %v4360_v16, 0  ;;  %v1836_v60 = vadd.s32 1, %v6684_v42  ;;  %v1577_v3 = vand.u32 8388607, %v1570_v24 }
 0x1f8   : > { %4725 = vsinq.f32 %v2178_v25  ;;  %v1433_v33 = vsel %vm4361_vm8, 0, %v4360_v16  ;;  %v1588_v31 = vshrl.u32 %v8687_v50, %v6272_v47  ;;  %vm1766_vm10 = vweird.f32 %v8738_v44 }
 0x1f9   : > { %v1434_v43 = vsub.s32 32, %v1433_v33  ;;  %v1438_v63 = vsub.s32 4294967266, %v1433_v33  ;;  %v1837_v20 = vsel %vm1835_vm7, %v1836_v60, %v6684_v42  ;;  %v1587_v13 = vshll.u32 %v8694_v15, %v6166_v57 }
 0x1fa   : > { %v1435_v39 = vshll.u32 %v6654_v34, %v1433_v33  ;;  %v1838_v18 = vadd.s32 %v1837_v20, %v1833_v56  ;;  %v1590_v26 = vshll.u32 %v8687_v50, %v6166_v57  ;;  %v1591_v8 = vshrl.u32 %v8688_v12, %v6272_v47 }
 0x1fb   : > { %v1436_v2 = vshrl.u32 %v1418_v28, %v1434_v43  ;;  %v1439_v4 = vadd.s32 127, %v1438_v63  ;;  %v1593_v53 = vshll.u32 %v8688_v12, %v6166_v57  ;;  %v1594_v40 = vshrl.u32 %v8681_v55, %v6272_v47 }
 0x1fc   : > { %vm2186_vm3 = vcmp.eq.s32.totalorder %v6692_v38, 0  ;;  %v1839_v30 = vadd.s32 536870912, %v1838_v18  ;;  %v1589_v9 = vor.u32 %v1588_v31, %v1587_v13  ;;  %v1592_v34 = vor.u32 %v1591_v8, %v1590_v26 }
 0x1fd   : > { %vm2185_vm14 = vcmp.lt.s32.totalorder %v6692_v38, 2  ;;  %vm2189_vm0 = vcmp.eq.s32.totalorder %v6692_v38, 2  ;;  %v1437_v45 = vor.u32 %v1436_v2, %v1435_v39  ;;  %v1440_v10 = vshll.u32 %v1439_v4, 23  ;;  %v8767_v39 = vld [vmem:[#allocation39_spill] sm:$0xff] }
 0x1fe   : > { %v1595_v5 = vor.u32 %v1594_v40, %v1593_v53  ;;  %v1776_v36 = vsel %vm1769_vm1, %v1772_v41, %v1775_v58  ;;  %v6723_v22 = vshrl.u32 %v1839_v30, 30  ;;  %v1586_v57 = vshrl.u32 %v8694_v15, %v6272_v47  ;;  %v8769_v4 = vld [vmem:[#allocation31_spill] sm:$0xff] }
 0x1ff   : > { %vm1604_vm4 = vcmp.lt.s32.totalorder %v6396_v59, 3  ;;  %v1441_v54 = vor.u32 4788187, %v1440_v10  ;;  %v1578_v1 = vor.u32 8388608, %v1577_v3  ;;  %vm1602_vm15 = vcmp.lt.s32.totalorder %v6396_v59, 1 }
 0x200   : > { %v1616_v6 = vsel %vm1604_vm4, %v6585_v19, %v6663_v14  ;;  %v1444_v62 = vcvt.s32.f32 %v1437_v45  ;;  %v1841_v7 = vshll.u32 %v6723_v22, 30  ;;  %vm1603_vm13 = vcmp.lt.s32.totalorder %v6396_v59, 2 }
 0x201   : > { %v1610_v23 = vsel %vm1602_vm15, %v1589_v9, %v1592_v34  ;;  %v4724_v47 = vpop.eup %4723  ;;  %v1442_v42 = vand.u32 2147483647, %v1441_v54  ;;  %v1607_v51 = vsel %vm1605_vm9, %v1595_v5, 2102212464  ;;  %v1612_v61 = vsel %vm1604_vm4, %v1595_v5, %v6635_v32 }
 0x202   : > { %v1614_v19 = vsel %vm1602_vm15, %v1592_v34, %v1595_v5  ;;  %v4726_v14 = vpop.eup %4725  ;;  %v1777_v28 = vsel %vm1766_vm10, nan, %v1776_v36  ;;  %v2190_v16 = vxor.u32 2147483648, %v4724_v47  ;;  %v1842_v41 = vsub.s32 %v1838_v18, %v1841_v7  ;;  %v8768_v18 = vld [vmem:[#allocation42_spill] sm:$0xff]  ;;  %v8770_v36 = vld [vmem:[#allocation9_spill] sm:$0xff]  ;;  %v8773_v7 = vld [vmem:[#allocation32_spill] sm:$0xff] }
 0x203   : > { %v1617_v58 = vsel %vm1603_vm13, %v1614_v19, %v1616_v6  ;;  %v2187_v25 = vxor.u32 2147483648, %v4726_v14  ;;  %v1445_v56 = vmul.f32 %v1444_v62, %v1442_v42  ;;  %v1606_v60 = vsel %vm1602_vm15, %v1586_v57, %v1589_v9 }
 0x204   : > { %v1618_v33 = vshll.u32 %v1578_v1, 8  ;;  %v2191_v32 = vsel %vm2189_vm0, %v2190_v16, %v4726_v14  ;;  %v1844_v3 = vsub.s32 0, %v1842_v41  ;;  %v1608_v31 = vsel %vm1604_vm4, %v1592_v34, %v1607_v51  ;;  %v8774_v51 = vld [vmem:[#allocation28_spill] sm:$0xff] }
 0x205   : > { %v1613_v44 = vsel %vm1603_vm13, %v1610_v23, %v1612_v61  ;;  %v2188_v43 = vsel %vm2186_vm3, %v4724_v47, %v2187_v25  ;;  %v1446_v63 = vxor.u32 2147483648, %v1445_v56  ;;  %v2017_v26 = vor.u32 %v8768_v18, %v8767_v39 }
 0x206   : > { %v6758_v20 = vmul.u32.u64.low %v1618_v33, %v1617_v58  ;;  %v6759_v13 = vmul.u32.u64.high %v1618_v33, %v1617_v58, %v6758_v20  ;;  %vm2182_vm9 = vweird.f32 %v8741_v11  ;;  %v2192_v8 = vsel %vm2185_vm14, %v2188_v43, %v2191_v32 }
 0x207   : > { %v4375_v2 = vmin.u32 %v1844_v3, %v1842_v41  ;;  %vm2021_vm5 = vcmp.lt.s32.totalorder %v8769_v4, 4  ;;  %v2193_v53 = vsel %vm2182_vm9, nan, %v2192_v8  ;;  %vm1364_vm2 = vcmp.lt.s32.totalorder %v8750_v27, 0 }
 0x208   : > { %v6767_v40 = vmul.u32.u64.low %v1618_v33, %v1613_v44  ;;  %v6768_v30 = vmul.u32.u64.high %v1618_v33, %v1613_v44, %v6767_v40  ;;  %v4482_v9 = vpack.c.bf16 %v2193_v53, %v1777_v28  ;;  %v1609_v45 = vsel %vm1603_vm13, %v1606_v60, %v1608_v31 }
 0x209   : > { %v1846_v34 = vclz %v4375_v2  ;;  %v2027_v11 = vsel %vm2021_vm5, %v6581_v17, 920167782  ;;  %v1447_v38 = vsel %vm1364_vm2, %v1446_v63, %v1445_v56  ;;  %v2031_v10 = vsel %vm2021_vm5, %v2017_v26, 1326507024 }
 0x20a   : > { %4483 = vmatprep.subr.bf16.mxu1 %v4482_v9  ;;  %vm1627_vm6 = vc.u32 %v6759_v13, %v6767_v40  ;;  %v1986_v57 = vand.u32 2147483647, %v8770_v36  ;;  %vm6786_vm12 = vcmp.le.f32.partialorder %v1362_v37, 0.7853982  ;;  %v1834_v54 = vadd.s32 %v6683_v46, %v6681_v35 }
 0x20b   : > { %v4376_v5 = vadd.s32 4294967294, %v1846_v34  ;;  %v1625_v1 = vmul.u32 %v1618_v33, %v1609_v45  ;;  %v1628_v6 = vadd.s32 1, %v6768_v30  ;;  %v1450_v62 = vsel %vm6786_vm12, %v8750_v27, %v1447_v38 }
 0x20c   : > { %v2004_v23 = vshrl.u32 %v8687_v50, %v8773_v7  ;;  %v2007_v37 = vshrl.u32 %v8688_v12, %v8773_v7  ;;  %v2003_v35 = vshll.u32 %v8694_v15, %v8774_v51  ;;  %v2006_v46 = vshll.u32 %v8687_v50, %v8774_v51 }
 0x20d   : > { %vm4377_vm11 = vcmp.lt.s32.totalorder %v4376_v5, 0  ;;  %v1629_v42 = vsel %vm1627_vm6, %v1628_v6, %v6768_v30  ;;  %v1993_v28 = vand.u32 8388607, %v1986_v57  ;;  %v2009_v25 = vshll.u32 %v8688_v12, %v8774_v51 }
 0x20e   : > { %v1849_v47 = vsel %vm4377_vm11, 0, %v4376_v5  ;;  %v1630_v14 = vadd.s32 %v1629_v42, %v1625_v1  ;;  %v2005_v16 = vor.u32 %v2004_v23, %v2003_v35  ;;  %v2008_v58 = vor.u32 %v2007_v37, %v2006_v46 }
 0x20f   : > { %v1850_v61 = vsub.s32 32, %v1849_v47  ;;  %v1854_v19 = vsub.s32 4294967266, %v1849_v47  ;;  %v2010_v56 = vshrl.u32 %v8681_v55, %v8773_v7  ;;  %v1851_v60 = vshll.u32 %v1842_v41, %v1849_v47 }
 0x210   : > { %v1631_v3 = vadd.s32 536870912, %v1630_v14  ;;  %v1448_v31 = vsub.s32 4, %v6630_v48  ;;  %v1864_v44 = vsub.s32 4, %v6723_v22  ;;  %vm2018_vm1 = vcmp.lt.s32.totalorder %v8769_v4, 1 }
 0x211   : > { %v1852_v33 = vshrl.u32 %v1834_v54, %v1850_v61  ;;  %v1855_v32 = vadd.s32 127, %v1854_v19  ;;  %v2011_v43 = vor.u32 %v2010_v56, %v2009_v25  ;;  %vm2020_vm7 = vcmp.lt.s32.totalorder %v8769_v4, 3 }
 0x212   : > { %v6814_v39 = vshrl.u32 %v1631_v3, 30  ;;  %4727 = vcosq.f32 %v1450_v62  ;;  %v1994_v18 = vor.u32 8388608, %v1993_v28  ;;  %v2026_v41 = vsel %vm2018_vm1, %v2005_v16, %v2008_v58 }
 0x213   : > { %v1853_v63 = vor.u32 %v1852_v33, %v1851_v60  ;;  %v1856_v20 = vshll.u32 %v1855_v32, 23  ;;  %v2032_v26 = vsel %vm2020_vm7, %v6581_v17, %v2031_v10  ;;  %v2028_v53 = vsel %vm2020_vm7, %v2011_v43, %v2027_v11 }
 0x214   : > { %v1633_v2 = vshll.u32 %v6814_v39, 30  ;;  %v2030_v30 = vsel %vm2018_vm1, %v2008_v58, %v2011_v43  ;;  %v1449_v9 = vsel %vm1364_vm2, %v1448_v31, %v6630_v48  ;;  %4729 = vsinq.f32 %v1450_v62 }
 0x215   : > { %v1857_v8 = vor.u32 4788187, %v1856_v20  ;;  %vm1780_vm8 = vcmp.lt.s32.totalorder %v8757_v0, 0  ;;  %vm2019_vm10 = vcmp.lt.s32.totalorder %v8769_v4, 2  ;;  %v1860_v17 = vcvt.s32.f32 %v1853_v63 }
 0x216   : > { %v1634_v45 = vsub.s32 %v1630_v14, %v1633_v2  ;;  %v2023_v38 = vsel %vm2021_vm5, %v2011_v43, 2102212464  ;;  %v2002_v11 = vshrl.u32 %v8694_v15, %v8773_v7  ;;  %v2029_v10 = vsel %vm2019_vm10, %v2026_v41, %v2028_v53 }
 0x217   : > { %v1858_v34 = vand.u32 2147483647, %v1857_v8  ;;  %v2033_v48 = vsel %vm2019_vm10, %v2030_v30, %v2032_v26  ;;  %v2034_v5 = vshll.u32 %v1994_v18, 8  ;;  %v1451_v54 = vsel %vm6786_vm12, 0, %v1449_v9 }
 0x218   : > { %v1865_v6 = vsel %vm1780_vm8, %v1864_v44, %v6723_v22  ;;  %v1636_v62 = vsub.s32 0, %v1634_v45  ;;  %v2022_v23 = vsel %vm2018_vm1, %v2002_v11, %v2005_v16  ;;  %v2024_v7 = vsel %vm2020_vm7, %v2008_v58, %v2023_v38 }
 0x219   : > { %v1861_v1 = vmul.f32 %v1860_v17, %v1858_v34  ;;  %v6849_v37 = vmul.u32.u64.low %v2034_v5, %v2033_v48  ;;  %v6850_v47 = vmul.u32.u64.high %v2034_v5, %v2033_v48, %v6849_v37  ;;  %v1455_v46 = vadd.s32 3, %v1451_v54 }
 0x21a   : > { %v4367_v51 = vmin.u32 %v1636_v62, %v1634_v45  ;;  %v6852_v35 = vmul.u32.u64.low %v2034_v5, %v2029_v10  ;;  %v6853_v59 = vmul.u32.u64.high %v2034_v5, %v2029_v10, %v6852_v35  ;;  %vm6858_vm3 = vcmp.le.f32.partialorder %v1778_v49, 0.7853982 }
 0x21b   : > { %v1862_v42 = vxor.u32 2147483648, %v1861_v1  ;;  %v4878_v14 = vmov 0.0   ;;  %v1867_v49 = vsel %vm6858_vm3, 0, %v1865_v6  ;;  %v2025_v58 = vsel %vm2019_vm10, %v2022_v23, %v2024_v7 }
 0x21c   : > { %v1638_v19 = vclz %v4367_v51  ;;  %2299 = vmatprep.mubr.f32.mxu0 %v4878_v14  ;;  %2388 = vmatprep.mubr.f32.mxu1 %v4878_v14  ;;  %v4728_v28 = vpop.eup %4727  ;;  %vm2043_vm14 = vc.u32 %v6850_v47, %v6852_v35  ;;  %v2044_v60 = vadd.s32 1, %v6853_v59  ;;  %v1456_v33 = vand.u32 3, %v1455_v46 }
 0x21d   : > { %v1863_v61 = vsel %vm1780_vm8, %v1862_v42, %v1861_v1  ;;  %v1871_v32 = vadd.s32 3, %v1867_v49  ;;  %v2041_v3 = vmul.u32 %v2034_v5, %v2025_v58  ;;  %v1462_v31 = vxor.u32 2147483648, %v4728_v28  ;;  %v6896_v49 = vld [vmem:[%s8522_s5 + $0x8] sm:$0xff] }
 0x21e   : > { %v1866_v16 = vsel %vm6858_vm3, %v8757_v0, %v1863_v61  ;;  %v4368_v25 = vadd.s32 4294967294, %v1638_v19  ;;  %v4730_v56 = vpop.eup %4729  ;;  %v1626_v44 = vadd.s32 %v6767_v40, %v6759_v13  ;;  %v2045_v4 = vsel %vm2043_vm14, %v2044_v60, %v6853_v59 }
 0x21f   : > { %4731 = vcosq.f32 %v1866_v16  ;;  %v1459_v63 = vxor.u32 2147483648, %v4730_v56  ;;  %v2046_v41 = vadd.s32 %v2045_v4, %v2041_v3  ;;  %vm1461_vm4 = vcmp.eq.s32.totalorder %v1456_v33, 2 }
 0x220   : > { %4733 = vsinq.f32 %v1866_v16  ;;  %vm4369_vm0 = vcmp.lt.s32.totalorder %v4368_v25, 0  ;;  %vm1458_vm15 = vcmp.eq.s32.totalorder %v1456_v33, 0  ;;  %v1463_v53 = vsel %vm1461_vm4, %v1462_v31, %v4730_v56 }
 0x221   : > { %v1641_v43 = vsel %vm4369_vm0, 0, %v4368_v25  ;;  %v2047_v2 = vadd.s32 536870912, %v2046_v41  ;;  %v1872_v30 = vand.u32 3, %v1871_v32  ;;  %v1460_v9 = vsel %vm1458_vm15, %v4728_v28, %v1459_v63  ;;  %v2197_v63 = vld [vmem:[%s8522_s5 + $0x18] sm:$0xff] }
 0x222   : > { %v1642_v20 = vsub.s32 32, %v1641_v43  ;;  %v1646_v18 = vsub.s32 4294967266, %v1641_v43  ;;  %v1643_v34 = vshll.u32 %v1634_v45, %v1641_v43  ;;  %vm1457_vm13 = vcmp.lt.s32.totalorder %v1456_v33, 2 }
 0x223   : > { %v6879_v38 = vshrl.u32 %v2047_v2, 30  ;;  %v1464_v5 = vsel %vm1457_vm13, %v1460_v9, %v1463_v53  ;;  %vm1877_vm9 = vcmp.eq.s32.totalorder %v1872_v30, 2  ;;  %vm1454_vm5 = vweird.f32 %v8750_v27  ;;  %v6887_v27 = vld [vmem:[%s8522_s5] sm:$0xff] }
 0x224   : > { %v1644_v26 = vshrl.u32 %v1626_v44, %v1642_v20  ;;  %v1647_v8 = vadd.s32 127, %v1646_v18  ;;  %vm1873_vm2 = vcmp.lt.s32.totalorder %v1872_v30, 2  ;;  %vm1874_vm6 = vcmp.eq.s32.totalorder %v1872_v30, 0 }
 0x225   : > { %v2049_v10 = vshll.u32 %v6879_v38, 30  ;;  %v1465_v23 = vsel %vm1454_vm5, nan, %v1464_v5  ;;  %vm1870_vm12 = vweird.f32 %v8757_v0  ;;  %vm8624_vm11 = vcmask 261120  }
 0x226   : > { %v1648_v17 = vshll.u32 %v1647_v8, 23  ;;  %v1645_v40 = vor.u32 %v1644_v26, %v1643_v34  ;;  %vm1572_vm7 = vcmp.lt.s32.totalorder %v8766_v29, 0  ;;  %v2042_v25 = vadd.s32 %v6852_v35, %v6850_v47  ;;  %v2196_v47 = vld [vmem:[%s8522_s5 + $0x10] sm:$0xff] }
 0x227   : > { %v2050_v62 = vsub.s32 %v2046_v41, %v2049_v10  ;;  %vm6904_vm8 = vcmp.le.f32.partialorder %v1570_v24, 0.7853982  ;;  %v1656_v43 = vsub.s32 4, %v6814_v39  ;;  %v2072_v8 = vsub.s32 4, %v6879_v38 }
 0x228   : > { %v1649_v11 = vor.u32 4788187, %v1648_v17  ;;  %v1652_v37 = vcvt.s32.f32 %v1645_v40  ;;  %vm1988_vm10 = vcmp.lt.s32.totalorder %v8770_v36, 0  ;;  %vm1987_vm3 = vcmp.le.f32.partialorder %v1986_v57, 0.7853982 }
 0x229   : > { %v4732_v13 = vpop.eup %4731  ;;  %v2052_v42 = vsub.s32 0, %v2050_v62  ;;  %v1657_v41 = vsel %vm1572_vm7, %v1656_v43, %v6814_v39  ;;  %v2073_v9 = vsel %vm1988_vm10, %v2072_v8, %v6879_v38  ;;  %vm1662_vm13 = vweird.f32 %v8766_v29 }
 0x22a   : > { %v4734_v48 = vpop.eup %4733  ;;  %v1878_v54 = vxor.u32 2147483648, %v4732_v13  ;;  %v1650_v6 = vand.u32 2147483647, %v1649_v11  ;;  %v1659_v2 = vsel %vm6904_vm8, 0, %v1657_v41  ;;  %v2075_v40 = vsel %vm1987_vm3, 0, %v2073_v9 }
 0x22b   : > { %v1875_v1 = vxor.u32 2147483648, %v4734_v48  ;;  %v4383_v22 = vmin.u32 %v2052_v42, %v2050_v62  ;;  %v1663_v39 = vadd.s32 3, %v1659_v2  ;;  %v2079_v5 = vadd.s32 3, %v2075_v40 }
 0x22c   : > { %v1879_v45 = vsel %vm1877_vm9, %v1878_v54, %v4734_v48  ;;  %v1653_v46 = vmul.f32 %v1652_v37, %v1650_v6 }
 0x22d   : > { %v1876_v7 = vsel %vm1874_vm6, %v4732_v13, %v1875_v1  ;;  %v2054_v19 = vclz %v4383_v22  ;;  %v1664_v11 = vand.u32 3, %v1663_v39  ;;  %v2080_v57 = vand.u32 3, %v2079_v5 }
 0x22e   : > { %v1880_v51 = vsel %vm1873_vm2, %v1876_v7, %v1879_v45  ;;  %v1654_v28 = vxor.u32 2147483648, %v1653_v46  ;;  %vm2078_vm2 = vweird.f32 %v8770_v36 }
 0x22f   : > { %v1881_v59 = vsel %vm1870_vm12, nan, %v1880_v51  ;;  %v4384_v16 = vadd.s32 4294967294, %v2054_v19  ;;  %vm1666_vm14 = vcmp.eq.s32.totalorder %v1664_v11, 0  ;;  %vm1669_vm0 = vcmp.eq.s32.totalorder %v1664_v11, 2 }
 0x230   : > { %v4476_v61 = vpack.c.bf16 %v1881_v59, %v1465_v23  ;;  %v1655_v58 = vsel %vm1572_vm7, %v1654_v28, %v1653_v46  ;;  %vm1665_vm4 = vcmp.lt.s32.totalorder %v1664_v11, 2  ;;  %vm2085_vm15 = vcmp.eq.s32.totalorder %v2080_v57, 2 }
 0x231   : > { %vm4385_vm1 = vcmp.lt.s32.totalorder %v4384_v16, 0  ;;  %v1658_v44 = vsel %vm6904_vm8, %v8766_v29, %v1655_v58  ;;  %vm2082_vm9 = vcmp.eq.s32.totalorder %v2080_v57, 0  ;;  %vm2081_vm5 = vcmp.lt.s32.totalorder %v2080_v57, 2  ;;  %v6948_v29 = vpop.permute.xlu0 %2204 }
 0x232   : > { %4477 = vmatpush1.bf16.msra.mxu0 %v4476_v61  ;;  %v2057_v0 = vsel %vm4385_vm1, 0, %v4384_v16  ;;  %4735 = vcosq.f32 %v1658_v44 }
 0x233   : > { %v2058_v56 = vsub.s32 32, %v2057_v0  ;;  %v2062_v60 = vsub.s32 4294967266, %v2057_v0  ;;  %v2059_v32 = vshll.u32 %v2050_v62, %v2057_v0  ;;  %4737 = vsinq.f32 %v1658_v44 }
 0x235   : > { %4390 = vmatmul.mubr.msk.f32.vlgmr.msra.gmra.mrb[0].mxu0 %vm8624_vm11, %v6887_v27  ;;  %v2060_v3 = vshrl.u32 %v2042_v25, %v2058_v56  ;;  %v2063_v31 = vadd.s32 127, %v2062_v60 }
 0x236   : > { %2305 = vmatprep.mubr.f32.mxu0 %v4878_v14 }
 0x237   : > { %v2061_v24 = vor.u32 %v2060_v3, %v2059_v32  ;;  %v2064_v35 = vshll.u32 %v2063_v31, 23  ;;  %v6966_v3 = vpop.permute.xlu1 %2209 }
 0x239   : > { %4391 = vmatmul.mubr.msk.f32.gmra.mrb[2].mxu0 %vm8624_vm11, %v6896_v49  ;;  %v2065_v4 = vor.u32 4788187, %v2064_v35  ;;  %v2068_v18 = vcvt.s32.f32 %v2061_v24 }
 0x23a   : > { %2311 = vmatprep.mubr.f32.mxu0 %v4878_v14 }
 0x23b   : > { %v2066_v20 = vand.u32 2147483647, %v2065_v4 }
 0x23c   : > { %v4736_v17 = vpop.eup %4735 }
 0x23d   : > { %4392 = vmatmul.mubr.msk.f32.gmra.mrb[4].mxu0 %vm8624_vm11, %v2196_v47  ;;  %v2069_v26 = vmul.f32 %v2068_v18, %v2066_v20  ;;  %v4738_v13 = vpop.eup %4737  ;;  %v1670_v48 = vxor.u32 2147483648, %v4736_v17 }
 0x23e   : > { %2317 = vmatprep.mubr.f32.mxu0 %v4878_v14  ;;  %v1667_v10 = vxor.u32 2147483648, %v4738_v13 }
 0x23f   : > { %v2070_v53 = vxor.u32 2147483648, %v2069_v26  ;;  %v1671_v1 = vsel %vm1669_vm0, %v1670_v48, %v4738_v13 }
 0x240   : > { %v1668_v54 = vsel %vm1666_vm14, %v4736_v17, %v1667_v10 }
 0x241   : > { %4393 = vmatmul.mubr.msk.f32.gmra.mrb[6].mxu0 %vm8624_vm11, %v2197_v63  ;;  %v2071_v30 = vsel %vm1988_vm10, %v2070_v53, %v2069_v26  ;;  %v1672_v62 = vsel %vm1665_vm4, %v1668_v54, %v1671_v1 }
 0x242   : > { %4151 = vmatprep.mubr.f32.mxu0 %v4878_v14  ;;  %v2074_v34 = vsel %vm1987_vm3, %v8770_v36, %v2071_v30  ;;  %v1673_v37 = vsel %vm1662_vm13, nan, %v1672_v62 }
 0x243   : > { %4739 = vcosq.f32 %v2074_v34 }
 0x244   : > { %4741 = vsinq.f32 %v2074_v34 }
 0x24d   : > { %v4740_v6 = vpop.eup %4739 }
 0x24e   : > { %v4742_v38 = vpop.eup %4741  ;;  %v2086_v45 = vxor.u32 2147483648, %v4740_v6 }
 0x24f   : > { %v2083_v23 = vxor.u32 2147483648, %v4742_v38 }
 0x250   : > { %v2087_v7 = vsel %vm2085_vm15, %v2086_v45, %v4742_v38 }
 0x251   : > { %v2084_v42 = vsel %vm2082_vm9, %v4740_v6, %v2083_v23 }
 0x252   : > { %v2088_v51 = vsel %vm2081_vm5, %v2084_v42, %v2087_v7 }
 0x253   : > { %v2089_v59 = vsel %vm2078_vm2, nan, %v2088_v51 }
 0x254   : > { %v4484_v46 = vpack.c.bf16 %v2089_v59, %v1673_v37 }
 0x256   : > { %4485 = vmatpush1.bf16.msra.mxu1 %v4484_v46 }
 0x259   : > { %4394 = vmatmul.mubr.msk.f32.vlgmr.msra.gmra.mrb[0].mxu1 %vm8624_vm11, %v6887_v27 }
 0x25a   : > { %2394 = vmatprep.mubr.f32.mxu1 %v4878_v14 }
 0x25d   : > { %4395 = vmatmul.mubr.msk.f32.gmra.mrb[2].mxu1 %vm8624_vm11, %v6896_v49 }
 0x25e   : > { %2400 = vmatprep.mubr.f32.mxu1 %v4878_v14 }
 0x261   : > { %4396 = vmatmul.mubr.msk.f32.gmra.mrb[4].mxu1 %vm8624_vm11, %v2196_v47 }
 0x262   : > { %2406 = vmatprep.mubr.f32.mxu1 %v4878_v14 }
 0x265   : > { %4397 = vmatmul.mubr.msk.f32.gmra.mrb[6].mxu1 %vm8624_vm11, %v2197_v63 }
 0x266   : > { %4222 = vmatprep.mubr.f32.mxu1 %v4878_v14 }
 0x308   : > { %v2301_v36 = vpop.f32.mrb[0].mxu0 }
 0x309   : > { %v6951_v22 = vadd.f32 %v2301_v36, %v6948_v29  ;;  %v2303_v61 = vpop.f32.mrb[1].mxu0 }
 0x30a   : > { %v6954_v19 = vadd.f32 %v2303_v61, %v6948_v29 }
 0x30b   : > { %8779 = vst [vmem:[#allocation13_spill] sm:$0xff] %v6951_v22  ;;  %v2413_v27 = vand.u32 2147483647, %v6951_v22  ;;  %v2416_v28 = vand.u32 2139095040, %v6951_v22  ;;  %vm2415_vm5 = vcmp.lt.s32.totalorder %v6951_v22, 0 }
 0x30c   : > { %v8603_v16 = vand.u32 2147483647, %v6954_v19  ;;  %v2520_v0 = vand.u32 2139095040, %v6954_v19  ;;  %v2307_v49 = vpop.f32.mrb[2].mxu0 }
 0x30d   : > { %v2417_v14 = vshrl.u32 %v2416_v28, 23  ;;  %v6960_v58 = vpop.f32.mrb[3].mxu0  ;;  %v2420_v25 = vand.u32 8388607, %v2413_v27  ;;  %v6969_v35 = vadd.f32 %v2307_v49, %v6966_v3 }
 0x30e   : > { %v2521_v56 = vshrl.u32 %v2520_v0, 23  ;;  %v2524_v60 = vand.u32 8388607, %v8603_v16 }
 0x30f   : > { %v4398_v33 = vadd.s32 4294967169, %v2417_v14  ;;  %v2421_v44 = vor.u32 8388608, %v2420_v25  ;;  %8780 = vst [vmem:[#allocation47_spill] sm:$0xff] %v6969_v35  ;;  %v2832_v26 = vand.u32 2139095040, %v6969_v35 }
 0x310   : > { %v4402_v32 = vadd.s32 4294967169, %v2521_v56  ;;  %v2525_v47 = vor.u32 8388608, %v2524_v60  ;;  %v6992_v42 = vpop.f32.mrb[4].mxu0 }
 0x311   : > { %v2423_v31 = vadd.s32 1, %v4398_v33  ;;  %v6971_v18 = vshll.u32 %v2421_v44, 8 }
 0x312   : > { %v2527_v24 = vadd.s32 1, %v4402_v32  ;;  %v6973_v41 = vshll.u32 %v2525_v47, 8 }
 0x313   : > { %vm2424_vm6 = vcmp.gt.s32.totalorder %v2423_v31, 0 }
 0x314   : > { %v2425_v43 = vsel %vm2424_vm6, %v2423_v31, 0  ;;  %vm2528_vm12 = vcmp.gt.s32.totalorder %v2527_v24, 0 }
 0x315   : > { %v2426_v4 = vshrl.u32 %v2425_v43, 5  ;;  %v2427_v63 = vand.u32 31, %v2425_v43  ;;  %v2529_v20 = vsel %vm2528_vm12, %v2527_v24, 0 }
 0x316   : > { %v6977_v53 = vshrl.u32 %v2529_v20, 5  ;;  %v2531_v30 = vand.u32 31, %v2529_v20 }
 0x317   : > { %v2428_v8 = vsub.s32 32, %v2427_v63  ;;  %v2430_v2 = vshll.u32 %v8694_v15, %v2427_v63  ;;  %v2433_v9 = vshll.u32 %v8687_v50, %v2427_v63  ;;  %v2436_v39 = vshll.u32 %v8688_v12, %v2427_v63 }
 0x318   : > { %v2439_v34 = vshll.u32 %v8681_v55, %v2427_v63  ;;  %v2442_v17 = vshll.u32 %v8690_v21, %v2427_v63  ;;  %vm2445_vm1 = vcmp.lt.s32.totalorder %v2426_v4, 1  ;;  %vm2446_vm7 = vcmp.lt.s32.totalorder %v2426_v4, 2 }
 0x319   : > { %v2431_v13 = vshrl.u32 %v8687_v50, %v2428_v8  ;;  %v2434_v40 = vshrl.u32 %v8688_v12, %v2428_v8  ;;  %v2437_v11 = vshrl.u32 %v8681_v55, %v2428_v8  ;;  %v2429_v10 = vshrl.u32 %v8694_v15, %v2428_v8 }
 0x31a   : > { %v2440_v48 = vshrl.u32 %v8690_v21, %v2428_v8  ;;  %v2443_v5 = vshrl.u32 %v8672_v52, %v2428_v8  ;;  %v2532_v6 = vsub.s32 32, %v2531_v30  ;;  %vm2447_vm8 = vcmp.lt.s32.totalorder %v2426_v4, 3 }
 0x31b   : > { %v2432_v54 = vor.u32 %v2431_v13, %v2430_v2  ;;  %v2435_v1 = vor.u32 %v2434_v40, %v2433_v9  ;;  %v2438_v57 = vor.u32 %v2437_v11, %v2436_v39  ;;  %vm2448_vm10 = vcmp.lt.s32.totalorder %v2426_v4, 4 }
 0x31c   : > { %v2441_v38 = vor.u32 %v2440_v48, %v2439_v34  ;;  %v2444_v62 = vor.u32 %v2443_v5, %v2442_v17  ;;  %v2534_v36 = vshll.u32 %v8694_v15, %v2531_v30  ;;  %v2535_v0 = vshrl.u32 %v8687_v50, %v2532_v6 }
 0x31d   : > { %v2449_v45 = vsel %vm2445_vm1, %v2429_v10, %v2432_v54  ;;  %v2450_v23 = vsel %vm2448_vm10, %v2438_v57, 2102212464  ;;  %v2453_v7 = vsel %vm2445_vm1, %v2432_v54, %v2435_v1  ;;  %v2457_v37 = vsel %vm2445_vm1, %v2435_v1, %v2438_v57 }
 0x31e   : > { %v2451_v51 = vsel %vm2447_vm8, %v2435_v1, %v2450_v23  ;;  %v2454_v59 = vsel %vm2448_vm10, %v2441_v38, 920167782  ;;  %v2458_v46 = vsel %vm2448_vm10, %v2444_v62, 1326507024  ;;  %v2537_v49 = vshll.u32 %v8687_v50, %v2531_v30 }
 0x31f   : > { %v2455_v61 = vsel %vm2447_vm8, %v2438_v57, %v2454_v59  ;;  %v2459_v28 = vsel %vm2447_vm8, %v2441_v38, %v2458_v46  ;;  %v2452_v14 = vsel %vm2446_vm7, %v2449_v45, %v2451_v51  ;;  %v2538_v60 = vshrl.u32 %v8688_v12, %v2532_v6 }
 0x320   : > { %v2456_v25 = vsel %vm2446_vm7, %v2453_v7, %v2455_v61  ;;  %v2460_v56 = vsel %vm2446_vm7, %v2457_v37, %v2459_v28  ;;  %v2536_v47 = vor.u32 %v2535_v0, %v2534_v36  ;;  %v2540_v43 = vshll.u32 %v8688_v12, %v2531_v30 }
 0x321   : > { %v7002_v33 = vmul.u32.u64.low %v6971_v18, %v2460_v56  ;;  %v7003_v32 = vmul.u32.u64.high %v6971_v18, %v2460_v56, %v7002_v33  ;;  %v7006_v31 = vmul.u32.u64.low %v6971_v18, %v2456_v25  ;;  %v7007_v44 = vmul.u32.u64.high %v6971_v18, %v2456_v25, %v7006_v31 }
 0x322   : > { %v2539_v24 = vor.u32 %v2538_v60, %v2537_v49  ;;  %v2541_v63 = vshrl.u32 %v8681_v55, %v2532_v6  ;;  %v2543_v4 = vshll.u32 %v8681_v55, %v2531_v30  ;;  %v2544_v20 = vshrl.u32 %v8690_v21, %v2532_v6 }
 0x323   : > { %v2547_v8 = vshrl.u32 %v8672_v52, %v2532_v6  ;;  %v2833_v2 = vshrl.u32 %v2832_v26, 23  ;;  %v2468_v9 = vmul.u32 %v6971_v18, %v2452_v14  ;;  %v2533_v39 = vshrl.u32 %v8694_v15, %v2532_v6 }
 0x324   : > { %v2542_v34 = vor.u32 %v2541_v63, %v2540_v43  ;;  %v2546_v17 = vshll.u32 %v8690_v21, %v2531_v30  ;;  %vm2470_vm3 = vc.u32 %v7003_v32, %v7006_v31  ;;  %v2471_v13 = vadd.s32 1, %v7007_v44 }
 0x325   : > { %v2545_v40 = vor.u32 %v2544_v20, %v2543_v4  ;;  %vm2549_vm14 = vcmp.lt.s32.totalorder %v6977_v53, 1  ;;  %vm2551_vm0 = vcmp.lt.s32.totalorder %v6977_v53, 3  ;;  %vm2552_vm4 = vcmp.lt.s32.totalorder %v6977_v53, 4 }
 0x326   : > { %v2548_v11 = vor.u32 %v2547_v8, %v2546_v17  ;;  %v2557_v26 = vsel %vm2549_vm14, %v2536_v47, %v2539_v24  ;;  %v2472_v18 = vsel %vm2470_vm3, %v2471_v13, %v7007_v44  ;;  %v2554_v10 = vsel %vm2552_vm4, %v2542_v34, 2102212464 }
 0x327   : > { %v2558_v48 = vsel %vm2552_vm4, %v2545_v40, 920167782  ;;  %v2561_v5 = vsel %vm2549_vm14, %v2539_v24, %v2542_v34  ;;  %v2473_v30 = vadd.s32 %v2472_v18, %v2468_v9  ;;  %vm2550_vm15 = vcmp.lt.s32.totalorder %v6977_v53, 2 }
 0x328   : > { %v2559_v54 = vsel %vm2551_vm0, %v2542_v34, %v2558_v48  ;;  %v2562_v1 = vsel %vm2552_vm4, %v2548_v11, 1326507024  ;;  %v2553_v57 = vsel %vm2549_vm14, %v2533_v39, %v2536_v47  ;;  %v2555_v6 = vsel %vm2551_vm0, %v2539_v24, %v2554_v10 }
 0x329   : > { %v2560_v38 = vsel %vm2550_vm15, %v2557_v26, %v2559_v54  ;;  %v2563_v62 = vsel %vm2551_vm0, %v2545_v40, %v2562_v1  ;;  %v2474_v45 = vadd.s32 536870912, %v2473_v30  ;;  %v4414_v46 = vadd.s32 4294967169, %v2833_v2 }
 0x32a   : > { %v2564_v23 = vsel %vm2550_vm15, %v2561_v5, %v2563_v62  ;;  %v7027_v7 = vmul.u32.u64.low %v6973_v41, %v2560_v38  ;;  %v7028_v37 = vmul.u32.u64.high %v6973_v41, %v2560_v38, %v7027_v7  ;;  %v2556_v53 = vsel %vm2550_vm15, %v2553_v57, %v2555_v6 }
 0x32b   : > { %v7032_v51 = vmul.u32.u64.low %v6973_v41, %v2564_v23  ;;  %v7033_v59 = vmul.u32.u64.high %v6973_v41, %v2564_v23, %v7032_v51  ;;  %v7035_v36 = vshrl.u32 %v2474_v45, 30  ;;  %v8602_v61 = vand.u32 2147483647, %v6969_v35 }
 0x32c   : > { %v2575_v0 = vadd.s32 1, %v7028_v37  ;;  %v2572_v49 = vmul.u32 %v6973_v41, %v2556_v53  ;;  %v2839_v14 = vadd.s32 1, %v4414_v46  ;;  %v2390_v56 = vpop.f32.mrb[0].mxu1  ;;  %v7048_v33 = vadd.f32 %v6960_v58, %v6966_v3 }
 0x32d   : > { %v2476_v28 = vshll.u32 %v7035_v36, 30  ;;  %vm2574_vm13 = vc.u32 %v7033_v59, %v7027_v7  ;;  %v7051_v44 = vadd.f32 %v2390_v56, %v6948_v29  ;;  %v2392_v24 = vpop.f32.mrb[1].mxu1  ;;  %v2836_v41 = vand.u32 8388607, %v8602_v61 }
 0x32e   : > { %v2576_v60 = vsel %vm2574_vm13, %v2575_v0, %v7028_v37  ;;  %v7057_v63 = vadd.f32 %v2392_v24, %v6948_v29  ;;  %vm2840_vm9 = vcmp.gt.s32.totalorder %v2839_v14, 0  ;;  %v2936_v39 = vand.u32 2139095040, %v7048_v33 }
 0x32f   : > { %v7043_v25 = vsub.s32 %v2473_v30, %v2476_v28  ;;  %8781 = vst [vmem:[#allocation6_spill] sm:$0xff] %v7051_v44  ;;  %v2577_v47 = vadd.s32 %v2576_v60, %v2572_v49  ;;  %v8605_v4 = vand.u32 2147483647, %v7051_v44  ;;  %v2624_v20 = vand.u32 2139095040, %v7051_v44 }
 0x330   : > { %v2728_v2 = vand.u32 2139095040, %v7057_v63  ;;  %v7063_v9 = vpop.f32.mrb[2].mxu1  ;;  %v2837_v13 = vor.u32 8388608, %v2836_v41  ;;  %v8601_v29 = vand.u32 2147483647, %v7048_v33  ;;  %v2841_v18 = vsel %vm2840_vm9, %v2839_v14, 0 }
 0x331   : > { %v2479_v43 = vsub.s32 0, %v7043_v25  ;;  %v2578_v8 = vadd.s32 536870912, %v2577_v47  ;;  %v2625_v34 = vshrl.u32 %v2624_v20, 23  ;;  %v2628_v11 = vand.u32 8388607, %v8605_v4  ;;  %v7071_v10 = vpop.f32.mrb[3].mxu1 }
 0x332   : > { %v2729_v26 = vshrl.u32 %v2728_v2, 23  ;;  %v2937_v1 = vshrl.u32 %v2936_v39, 23  ;;  %v7077_v38 = vand.u32 31, %v2841_v18  ;;  %v7079_v62 = vshll.u32 %v2837_v13, 8 }
 0x333   : > { %v4399_v58 = vmin.u32 %v2479_v43, %v7043_v25  ;;  %v7066_v17 = vshrl.u32 %v2578_v8, 30  ;;  %v4406_v48 = vadd.s32 4294967169, %v2625_v34  ;;  %v7083_v45 = vand.u32 8388607, %v8601_v29 }
 0x334   : > { %v4410_v54 = vadd.s32 4294967169, %v2729_v26  ;;  %v7075_v57 = vpop.f32.mrb[4].mxu1  ;;  %v7087_v23 = vadd.s32 %v7006_v31, %v7003_v32  ;;  %v2499_v37 = vsub.s32 4, %v7035_v36  ;;  %v2629_v51 = vor.u32 8388608, %v2628_v11 }
 0x335   : > { %8782 = vst [vmem:[#allocation20_spill] sm:$0xff] %v7066_v17  ;;  %v2481_v40 = vclz %v4399_v58  ;;  %v2580_v5 = vshll.u32 %v7066_v17, 30  ;;  %v2631_v6 = vadd.s32 1, %v4406_v48  ;;  %v7094_v28 = vshrl.u32 %v2841_v18, 5 }
 0x336   : > { %v2735_v14 = vadd.s32 1, %v4410_v54  ;;  %v7097_v56 = vadd.s32 4294967169, %v2937_v1  ;;  %v7101_v32 = vadd.s32 %v7027_v7, %v7033_v59  ;;  %v7104_v31 = vsub.s32 32, %v7077_v38 }
 0x337   : > { %v4400_v30 = vadd.s32 4294967294, %v2481_v40  ;;  %vm2632_vm6 = vcmp.gt.s32.totalorder %v2631_v6, 0  ;;  %v7092_v53 = vsub.s32 %v2577_v47, %v2580_v5  ;;  %v7110_v47 = vsel %vm2415_vm5, %v2499_v37, %v7035_v36 }
 0x338   : > { %v2633_v49 = vsel %vm2632_vm6, %v2631_v6, 0  ;;  %v7112_v41 = vshll.u32 %v2629_v51, 8  ;;  %v8604_v43 = vand.u32 2147483647, %v7057_v63  ;;  %v2846_v20 = vshll.u32 %v8694_v15, %v7077_v38 }
 0x339   : > { %vm4401_vm2 = vcmp.lt.s32.totalorder %v4400_v30, 0  ;;  %v2635_v60 = vand.u32 31, %v2633_v49  ;;  %v2634_v59 = vshrl.u32 %v2633_v49, 5  ;;  %v2583_v58 = vsub.s32 0, %v7092_v53 }
 0x33a   : > { %v7090_v46 = vsel %vm4401_vm2, 0, %v4400_v30  ;;  %vm2736_vm12 = vcmp.gt.s32.totalorder %v2735_v14, 0  ;;  %vm7132_vm1 = vcmp.le.f32.partialorder %v2413_v27, 0.7853982  ;;  %v2847_v61 = vshrl.u32 %v8687_v50, %v7104_v31 }
 0x33b   : > { %v2489_v0 = vsub.s32 4294967266, %v7090_v46  ;;  %v2485_v7 = vsub.s32 32, %v7090_v46  ;;  %v2636_v8 = vsub.s32 32, %v2635_v60  ;;  %v2638_v39 = vshll.u32 %v8694_v15, %v2635_v60 }
 0x33c   : > { %v2641_v34 = vshll.u32 %v8687_v50, %v2635_v60  ;;  %v2644_v40 = vshll.u32 %v8688_v12, %v2635_v60  ;;  %v2647_v26 = vshll.u32 %v8681_v55, %v2635_v60  ;;  %v2650_v48 = vshll.u32 %v8690_v21, %v2635_v60 }
 0x33d   : > { %v2490_v2 = vadd.s32 127, %v2489_v0  ;;  %v2639_v36 = vshrl.u32 %v8687_v50, %v2636_v8  ;;  %v2642_v13 = vshrl.u32 %v8688_v12, %v2636_v8  ;;  %v2645_v11 = vshrl.u32 %v8681_v55, %v2636_v8 }
 0x33e   : > { %v2648_v18 = vshrl.u32 %v8690_v21, %v2636_v8  ;;  %v2651_v5 = vshrl.u32 %v8672_v52, %v2636_v8  ;;  %v4403_v6 = vmin.u32 %v2583_v58, %v7092_v53  ;;  %vm2653_vm7 = vcmp.lt.s32.totalorder %v2634_v59, 1 }
 0x33f   : > { %v2640_v30 = vor.u32 %v2639_v36, %v2638_v39  ;;  %v2643_v54 = vor.u32 %v2642_v13, %v2641_v34  ;;  %v2646_v1 = vor.u32 %v2645_v11, %v2644_v40  ;;  %v2737_v49 = vsel %vm2736_vm12, %v2735_v14, 0  ;;  %v7138_v34 = vpop.f32.mrb[5].mxu0 }
 0x340   : > { %v2649_v51 = vor.u32 %v2648_v18, %v2647_v26  ;;  %v2652_v0 = vor.u32 %v2651_v5, %v2650_v48  ;;  %v2491_v29 = vshll.u32 %v2490_v2, 23  ;;  %v2637_v60 = vshrl.u32 %v8694_v15, %v2636_v8  ;;  %8785 = vst [vmem:[#allocation25_spill] sm:$0xff] %v7138_v34 }
 0x341   : > { %vm2656_vm8 = vcmp.lt.s32.totalorder %v2634_v59, 4  ;;  %v2661_v39 = vsel %vm2653_vm7, %v2640_v30, %v2643_v54  ;;  %vm2655_vm10 = vcmp.lt.s32.totalorder %v2634_v59, 3  ;;  %v2665_v13 = vsel %vm2653_vm7, %v2643_v54, %v2646_v1 }
 0x342   : > { %v2658_v58 = vsel %vm2656_vm8, %v2646_v1, 2102212464  ;;  %v2662_v36 = vsel %vm2656_vm8, %v2649_v51, 920167782  ;;  %vm2654_vm3 = vcmp.lt.s32.totalorder %v2634_v59, 2  ;;  %v2585_v11 = vclz %v4403_v6 }
 0x343   : > { %v2663_v27 = vsel %vm2655_vm10, %v2646_v1, %v2662_v36  ;;  %v2666_v40 = vsel %vm2656_vm8, %v2652_v0, 1326507024  ;;  %v2657_v26 = vsel %vm2653_vm7, %v2637_v60, %v2640_v30  ;;  %v2659_v18 = vsel %vm2655_vm10, %v2643_v54, %v2658_v58 }
 0x344   : > { %v2664_v48 = vsel %vm2654_vm3, %v2661_v39, %v2663_v27  ;;  %v2667_v5 = vsel %vm2655_vm10, %v2649_v51, %v2666_v40  ;;  %v4404_v59 = vadd.s32 4294967294, %v2585_v11  ;;  %v2732_v30 = vand.u32 8388607, %v8604_v43 }
 0x345   : > { %v2668_v14 = vsel %vm2654_vm3, %v2665_v13, %v2667_v5  ;;  %v7141_v2 = vmul.u32.u64.low %v7112_v41, %v2664_v48  ;;  %v7142_v8 = vmul.u32.u64.high %v7112_v41, %v2664_v48, %v7141_v2  ;;  %v2660_v54 = vsel %vm2654_vm3, %v2657_v26, %v2659_v18 }
 0x346   : > { %v7148_v24 = vmul.u32.u64.low %v7112_v41, %v2668_v14  ;;  %v7149_v16 = vmul.u32.u64.high %v7112_v41, %v2668_v14, %v7148_v24  ;;  %v2739_v1 = vand.u32 31, %v2737_v49  ;;  %v2849_v6 = vshll.u32 %v8687_v50, %v7077_v38 }
 0x347   : > { %v2850_v51 = vshrl.u32 %v8688_v12, %v7104_v31  ;;  %v2487_v0 = vshrl.u32 %v7087_v23, %v2485_v7  ;;  %v2492_v60 = vor.u32 4788187, %v2491_v29  ;;  %vm4405_vm14 = vcmp.lt.s32.totalorder %v4404_v59, 0 }
 0x348   : > { %v7160_v39 = vshrl.u32 %v8694_v15, %v7104_v31  ;;  %v2679_v58 = vadd.s32 1, %v7142_v8  ;;  %v2740_v36 = vsub.s32 32, %v2739_v1  ;;  %v7166_v13 = vor.u32 %v2847_v61, %v2846_v20 }
 0x349   : > { %v2486_v27 = vshll.u32 %v7043_v25, %v7090_v46  ;;  %v2676_v23 = vmul.u32 %v7112_v41, %v2660_v54  ;;  %vm2678_vm0 = vc.u32 %v7149_v16, %v7141_v2  ;;  %v2733_v29 = vor.u32 8388608, %v2732_v30 }
 0x34a   : > { %v2680_v7 = vsel %vm2678_vm0, %v2679_v58, %v7142_v8  ;;  %v7174_v40 = vsel %vm4405_vm14, 0, %v4404_v59  ;;  %v7176_v11 = vor.u32 %v2850_v51, %v2849_v6  ;;  %v2852_v26 = vshll.u32 %v8688_v12, %v7077_v38 }
 0x34b   : > { %v2488_v61 = vor.u32 %v2487_v0, %v2486_v27  ;;  %v2493_v20 = vand.u32 2147483647, %v2492_v60  ;;  %v2681_v18 = vadd.s32 %v2680_v7, %v2676_v23  ;;  %v2743_v25 = vshrl.u32 %v8687_v50, %v2740_v36 }
 0x34c   : > { %v2742_v46 = vshll.u32 %v8694_v15, %v2739_v1  ;;  %v2745_v41 = vshll.u32 %v8687_v50, %v2739_v1  ;;  %v2746_v48 = vshrl.u32 %v8688_v12, %v2740_v36  ;;  %v2749_v5 = vshrl.u32 %v8681_v55, %v2740_v36 }
 0x34d   : > { %v2682_v14 = vadd.s32 536870912, %v2681_v18  ;;  %v2593_v8 = vsub.s32 4294967266, %v7174_v40  ;;  %v2738_v59 = vshrl.u32 %v2737_v49, 5  ;;  %v2748_v30 = vshll.u32 %v8688_v12, %v2739_v1 }
 0x34e   : > { %v2744_v54 = vor.u32 %v2743_v25, %v2742_v46  ;;  %v2747_v6 = vor.u32 %v2746_v48, %v2745_v41  ;;  %v2751_v51 = vshll.u32 %v8681_v55, %v2739_v1  ;;  %v2752_v0 = vshrl.u32 %v8690_v21, %v2740_v36  ;;  %v7197_v25 = vpop.f32.mrb[5].mxu1 }
 0x34f   : > { %v7189_v60 = vshrl.u32 %v2682_v14, 30  ;;  %v2750_v58 = vor.u32 %v2749_v5, %v2748_v30  ;;  %v2755_v27 = vshrl.u32 %v8672_v52, %v2740_v36  ;;  %v7192_v23 = vshll.u32 %v2733_v29, 8  ;;  %8786 = vst [vmem:[#allocation24_spill] sm:$0xff] %v7197_v25 }
 0x350   : > { %v2495_v7 = vcvt.s32.f32 %v2488_v61  ;;  %v2753_v43 = vor.u32 %v2752_v0, %v2751_v51  ;;  %v2754_v24 = vshll.u32 %v8690_v21, %v2739_v1  ;;  %v2853_v49 = vshrl.u32 %v8681_v55, %v7104_v31 }
 0x351   : > { %v2684_v46 = vshll.u32 %v7189_v60, 30  ;;  %v2594_v41 = vadd.s32 127, %v2593_v8  ;;  %vm2757_vm4 = vcmp.lt.s32.totalorder %v2738_v59, 1  ;;  %v2855_v48 = vshll.u32 %v8681_v55, %v7077_v38 }
 0x352   : > { %v7202_v5 = vmul.f32 %v2495_v7, %v2493_v20  ;;  %v2756_v29 = vor.u32 %v2755_v27, %v2754_v24  ;;  %vm2760_vm15 = vcmp.lt.s32.totalorder %v2738_v59, 4  ;;  %v2765_v61 = vsel %vm2757_vm4, %v2744_v54, %v2747_v6 }
 0x353   : > { %v7205_v14 = vsub.s32 %v2681_v18, %v2684_v46  ;;  %vm2759_vm13 = vcmp.lt.s32.totalorder %v2738_v59, 3  ;;  %v2762_v1 = vsel %vm2760_vm15, %v2750_v58, 2102212464  ;;  %v2766_v30 = vsel %vm2760_vm15, %v2753_v43, 920167782 }
 0x354   : > { %v2741_v51 = vshrl.u32 %v8694_v15, %v2740_v36  ;;  %vm2758_vm9 = vcmp.lt.s32.totalorder %v2738_v59, 2  ;;  %v2767_v8 = vsel %vm2759_vm13, %v2750_v58, %v2766_v30  ;;  %v2856_v20 = vshrl.u32 %v8690_v21, %v7104_v31 }
 0x355   : > { %v2687_v24 = vsub.s32 0, %v7205_v14  ;;  %v2589_v0 = vsub.s32 32, %v7174_v40  ;;  %v2595_v27 = vshll.u32 %v2594_v41, 23  ;;  %v2768_v18 = vsel %vm2758_vm9, %v2765_v61, %v2767_v8 }
 0x356   : > { %v2761_v7 = vsel %vm2757_vm4, %v2741_v51, %v2744_v54  ;;  %v2763_v46 = vsel %vm2759_vm13, %v2747_v6, %v2762_v1  ;;  %v2769_v4 = vsel %vm2757_vm4, %v2747_v6, %v2750_v58  ;;  %v2770_v36 = vsel %vm2760_vm15, %v2756_v29, 1326507024 }
 0x357   : > { %v4407_v30 = vmin.u32 %v2687_v24, %v7205_v14  ;;  %v2771_v17 = vsel %vm2759_vm13, %v2753_v43, %v2770_v36  ;;  %v7223_v25 = vmul.u32.u64.low %v7192_v23, %v2768_v18  ;;  %v7224_v34 = vmul.u32.u64.high %v7192_v23, %v2768_v18, %v7223_v25 }
 0x358   : > { %v2772_v41 = vsel %vm2758_vm9, %v2769_v4, %v2771_v17  ;;  %v2854_v61 = vor.u32 %v2853_v49, %v2852_v26  ;;  %v2857_v8 = vor.u32 %v2856_v20, %v2855_v48  ;;  %v2859_v54 = vshrl.u32 %v8672_v52, %v7104_v31 }
 0x359   : > { %v2689_v1 = vclz %v4407_v30  ;;  %v2764_v6 = vsel %vm2758_vm9, %v2761_v7, %v2763_v46  ;;  %v7232_v58 = vmul.u32.u64.low %v7192_v23, %v2772_v41  ;;  %v7233_v29 = vmul.u32.u64.high %v7192_v23, %v2772_v41, %v7232_v58 }
 0x35a   : > { %v2497_v43 = vxor.u32 2147483648, %v7202_v5  ;;  %v2590_v51 = vshll.u32 %v7092_v53, %v7174_v40  ;;  %v2591_v24 = vshrl.u32 %v7101_v32, %v2589_v0  ;;  %v2858_v4 = vshll.u32 %v8690_v21, %v7077_v38 }
 0x35b   : > { %v4408_v17 = vadd.s32 4294967294, %v2689_v1  ;;  %v2596_v26 = vor.u32 4788187, %v2595_v27  ;;  %v2783_v31 = vadd.s32 1, %v7224_v34  ;;  %vm2864_vm2 = vcmp.lt.s32.totalorder %v7094_v28, 4 }
 0x35c   : > { %v2780_v59 = vmul.u32 %v7192_v23, %v2764_v6  ;;  %v2860_v49 = vor.u32 %v2859_v54, %v2858_v4  ;;  %vm2861_vm6 = vcmp.lt.s32.totalorder %v7094_v28, 1  ;;  %v2870_v48 = vsel %vm2864_vm2, %v2857_v8, 920167782 }
 0x35d   : > { %vm4409_vm12 = vcmp.lt.s32.totalorder %v4408_v17, 0  ;;  %vm2782_vm7 = vc.u32 %v7233_v29, %v7223_v25  ;;  %vm2863_vm8 = vcmp.lt.s32.totalorder %v7094_v28, 3  ;;  %v2869_v38 = vsel %vm2861_vm6, %v7166_v13, %v7176_v11 }
 0x35e   : > { %v7254_v53 = vsel %vm4409_vm12, 0, %v4408_v17  ;;  %v2784_v32 = vsel %vm2782_vm7, %v2783_v31, %v7224_v34  ;;  %v2866_v40 = vsel %vm2864_vm2, %v2854_v61, 2102212464  ;;  %v2871_v23 = vsel %vm2863_vm8, %v2854_v61, %v2870_v48 }
 0x35f   : > { %v2697_v20 = vsub.s32 4294967266, %v7254_v53  ;;  %v2592_v0 = vor.u32 %v2591_v24, %v2590_v51  ;;  %v2785_v27 = vadd.s32 %v2784_v32, %v2780_v59  ;;  %vm2862_vm10 = vcmp.lt.s32.totalorder %v7094_v28, 2 }
 0x360   : > { %v2597_v18 = vand.u32 2147483647, %v2596_v26  ;;  %v2872_v7 = vsel %vm2862_vm10, %v2869_v38, %v2871_v23  ;;  %v2873_v34 = vsel %vm2861_vm6, %v7176_v11, %v2854_v61  ;;  %v2874_v46 = vsel %vm2864_vm2, %v2860_v49, 1326507024 }
 0x361   : > { %v2786_v36 = vadd.s32 536870912, %v2785_v27  ;;  %v2865_v30 = vsel %vm2861_vm6, %v7160_v39, %v7166_v13  ;;  %v2867_v41 = vsel %vm2863_vm8, %v7176_v11, %v2866_v40  ;;  %v2875_v54 = vsel %vm2863_vm8, %v2857_v8, %v2874_v46 }
 0x362   : > { %v2876_v1 = vsel %vm2862_vm10, %v2873_v34, %v2875_v54  ;;  %v7282_v61 = vmul.u32.u64.low %v7079_v62, %v2872_v7  ;;  %v7283_v6 = vmul.u32.u64.high %v7079_v62, %v2872_v7, %v7282_v61  ;;  %v7288_v58 = vadd.f32 %v7063_v9, %v6966_v3 }
 0x363   : > { %vm2623_vm3 = vcmp.lt.s32.totalorder %v7051_v44, 0  ;;  %v2698_v39 = vadd.s32 127, %v2697_v20  ;;  %v2599_v13 = vcvt.s32.f32 %v2592_v0  ;;  %v7291_v11 = vshrl.u32 %v2786_v36, 30 }
 0x364   : > { %8787 = vst [vmem:[#allocation5_spill] sm:$0xff] %v7288_v58  ;;  %v2693_v8 = vsub.s32 32, %v7254_v53  ;;  %v2707_v51 = vsub.s32 4, %v7189_v60  ;;  %v7296_v24 = vmul.u32.u64.low %v7079_v62, %v2876_v1  ;;  %v7297_v4 = vmul.u32.u64.high %v7079_v62, %v2876_v1, %v7296_v24 }
 0x365   : > { %v8788_v17 = vand.u32 2147483647, %v7051_v44  ;;  %vm2519_vm0 = vcmp.lt.s32.totalorder %v6954_v19, 0  ;;  %v2788_v9 = vshll.u32 %v7291_v11, 30  ;;  %v2868_v31 = vsel %vm2862_vm10, %v2865_v30, %v2867_v41 }
 0x366   : > { %v3040_v59 = vand.u32 2139095040, %v7288_v58  ;;  %v2498_v49 = vsel %vm2415_vm5, %v2497_v43, %v7202_v5  ;;  %v2677_v48 = vadd.s32 %v7141_v2, %v7149_v16  ;;  %v2600_v38 = vmul.f32 %v2599_v13, %v2597_v18 }
 0x367   : > { %vm7301_vm14 = vcmp.le.f32.partialorder %v8788_v17, 0.7853982  ;;  %v2887_v32 = vadd.s32 1, %v7283_v6  ;;  %v2699_v40 = vshll.u32 %v2698_v39, 23  ;;  %v7316_v23 = vsub.s32 %v2785_v27, %v2788_v9  ;;  %v7360_v17 = vpop.f32.mrb[6].mxu0 }
 0x368   : > { %v8608_v20 = vand.u32 2147483647, %v7288_v58  ;;  %v3041_v0 = vshrl.u32 %v3040_v59, 23  ;;  %v2695_v28 = vshrl.u32 %v2677_v48, %v2693_v8  ;;  %v2708_v7 = vsel %vm2623_vm3, %v2707_v51, %v7189_v60 }
 0x369   : > { %v8791_v34 = vand.u32 2147483647, %v6954_v19  ;;  %v2884_v16 = vmul.u32 %v7079_v62, %v2868_v31  ;;  %vm2886_vm4 = vc.u32 %v7297_v4, %v7282_v61  ;;  %v2791_v2 = vsub.s32 0, %v7316_v23  ;;  %v7339_v62 = vpop.permute.xlu0 %2214 }
 0x36a   : > { %v2888_v43 = vsel %vm2886_vm4, %v2887_v32, %v7283_v6  ;;  %v4422_v27 = vadd.s32 4294967169, %v3041_v0  ;;  %v2943_v18 = vadd.s32 1, %v7097_v56  ;;  %v2501_v60 = vsel %vm7132_vm1, %v6951_v22, %v2498_v49  ;;  %v8827_v22 = vld [vmem:[#allocation24_spill] sm:$0xff] }
 0x36b   : > { %vm7324_vm5 = vcmp.le.f32.partialorder %v8791_v34, 0.7853982  ;;  %v2694_v46 = vshll.u32 %v7205_v14, %v7254_v53  ;;  %v2601_v36 = vxor.u32 2147483648, %v2600_v38  ;;  %v2889_v30 = vadd.s32 %v2888_v43, %v2884_v16 }
 0x36c   : > { %v2700_v41 = vor.u32 4788187, %v2699_v40  ;;  %v4411_v54 = vmin.u32 %v2791_v2, %v7316_v23  ;;  %v3044_v1 = vand.u32 8388607, %v8608_v20  ;;  %v3047_v6 = vadd.s32 1, %v4422_v27 }
 0x36d   : > { %v8794_v56 = vsel %vm7132_vm1, 0, %v7110_v47  ;;  %v2710_v14 = vsel %vm7301_vm14, 0, %v2708_v7  ;;  %v2890_v53 = vadd.s32 536870912, %v2889_v30  ;;  %v7354_v13 = vadd.f32 %v6992_v42, %v7339_v62 }
 0x36e   : > { %v7348_v39 = vadd.s32 3, %v8794_v56  ;;  %v2696_v8 = vor.u32 %v2695_v28, %v2694_v46  ;;  %v2793_v51 = vclz %v4411_v54  ;;  %vm3048_vm15 = vcmp.gt.s32.totalorder %v3047_v6, 0 }
 0x36f   : > { %8796 = vst [vmem:[#allocation19_spill] sm:$0xff] %v7354_v13  ;;  %vm2944_vm13 = vcmp.gt.s32.totalorder %v2943_v18, 0  ;;  %4743 = vcosq.f32 %v2501_v60  ;;  %v2602_v37 = vsel %vm2519_vm0, %v2601_v36, %v2600_v38  ;;  %v7358_v24 = vshrl.u32 %v2890_v53, 30 }
 0x370   : > { %8795 = vst [vmem:[#allocation16_spill] sm:$0xff] %v7348_v39  ;;  %v3049_v47 = vsel %vm3048_vm15, %v3047_v6, 0  ;;  %v2701_v9 = vand.u32 2147483647, %v2700_v41  ;;  %v4412_v31 = vadd.s32 4294967294, %v2793_v51  ;;  %v3045_v59 = vor.u32 8388608, %v3044_v1 }
 0x371   : > { %v3051_v49 = vand.u32 31, %v3049_v47  ;;  %4745 = vsinq.f32 %v2501_v60  ;;  %v7362_v42 = vadd.s32 3, %v2710_v14  ;;  %v2892_v48 = vshll.u32 %v7358_v24, 30 }
 0x372   : > { %v2945_v32 = vsel %vm2944_vm13, %v2943_v18, 0  ;;  %v2703_v40 = vcvt.s32.f32 %v2696_v8  ;;  %v7368_v38 = vsel %vm7324_vm5, %v6954_v19, %v2602_v37  ;;  %vm4413_vm1 = vcmp.lt.s32.totalorder %v4412_v31, 0 }
 0x373   : > { %8797 = vst [vmem:[#allocation15_spill] sm:$0xff] %v7362_v42  ;;  %v3052_v0 = vsub.s32 32, %v3051_v49  ;;  %v2781_v28 = vadd.s32 %v7223_v25, %v7233_v29  ;;  %v2796_v7 = vsel %vm4413_vm1, 0, %v4412_v31  ;;  %v7374_v34 = vadd.s32 %v7282_v61, %v7297_v4 }
 0x374   : > { %v7376_v16 = vsub.s32 %v2889_v30, %v2892_v48  ;;  %v7378_v2 = vmul.f32 %v2703_v40, %v2701_v9  ;;  %v7380_v43 = vshll.u32 %v3045_v59, 8  ;;  %v7382_v27 = vshrl.u32 %v2945_v32, 5 }
 0x375   : > { %v7384_v18 = vand.u32 31, %v2945_v32  ;;  %v2801_v60 = vsub.s32 4294967266, %v2796_v7  ;;  %v3054_v25 = vshll.u32 %v8694_v15, %v3051_v49  ;;  %v3055_v29 = vshrl.u32 %v8687_v50, %v3052_v0 }
 0x376   : > { %v2895_v46 = vsub.s32 0, %v7376_v16  ;;  %v2797_v36 = vsub.s32 32, %v2796_v7  ;;  %v3057_v61 = vshll.u32 %v8687_v50, %v3051_v49  ;;  %v3058_v4 = vshrl.u32 %v8688_v12, %v3052_v0 }
 0x377   : > { %v3061_v30 = vshrl.u32 %v8681_v55, %v3052_v0  ;;  %v3050_v54 = vshrl.u32 %v3049_v47, 5  ;;  %v3063_v1 = vshll.u32 %v8681_v55, %v3051_v49  ;;  %v3064_v6 = vshrl.u32 %v8690_v21, %v3052_v0 }
 0x378   : > { %v4415_v41 = vmin.u32 %v2895_v46, %v7376_v16  ;;  %v3056_v14 = vor.u32 %v3055_v29, %v3054_v25  ;;  %v3059_v53 = vor.u32 %v3058_v4, %v3057_v61  ;;  %v3060_v8 = vshll.u32 %v8688_v12, %v3051_v49 }
 0x379   : > { %v7397_v51 = vpop.eup %4743  ;;  %v2802_v37 = vadd.s32 127, %v2801_v60  ;;  %v3065_v31 = vor.u32 %v3064_v6, %v3063_v1  ;;  %v3067_v59 = vshrl.u32 %v8672_v52, %v3052_v0  ;;  %v2799_v48 = vshrl.u32 %v2781_v28, %v2797_v36 }
 0x37a   : > { %8798 = vst [vmem:[#allocation14_spill] sm:$0xff] %v7397_v51  ;;  %v2897_v9 = vclz %v4415_v41  ;;  %v3062_v32 = vor.u32 %v3061_v30, %v3060_v8  ;;  %v3066_v47 = vshll.u32 %v8690_v21, %v3051_v49  ;;  %v7402_v40 = vsub.s32 32, %v7384_v18  ;;  %v7412_v30 = vpop.f32.mrb[6].mxu1 }
 0x37b   : > { %v7404_v46 = vpop.eup %4745  ;;  %v2798_v25 = vshll.u32 %v7316_v23, %v2796_v7  ;;  %vm3069_vm9 = vcmp.lt.s32.totalorder %v3050_v54, 1  ;;  %v2950_v60 = vshll.u32 %v8694_v15, %v7384_v18  ;;  %v3053_v61 = vshrl.u32 %v8694_v15, %v3052_v0 }
 0x37c   : > { %8799 = vst [vmem:[#allocation8_spill] sm:$0xff] %v7404_v46  ;;  %v4416_v29 = vadd.s32 4294967294, %v2897_v9  ;;  %v3068_v4 = vor.u32 %v3067_v59, %v3066_v47  ;;  %vm3072_vm2 = vcmp.lt.s32.totalorder %v3050_v54, 4  ;;  %v3077_v28 = vsel %vm3069_vm9, %v3056_v14, %v3059_v53 }
 0x37d   : > { %v2803_v36 = vshll.u32 %v2802_v37, 23  ;;  %vm3071_vm12 = vcmp.lt.s32.totalorder %v3050_v54, 3  ;;  %v3078_v49 = vsel %vm3072_vm2, %v3065_v31, 920167782  ;;  %v2800_v41 = vor.u32 %v2799_v48, %v2798_v25 }
 0x37e   : > { %vm4417_vm6 = vcmp.lt.s32.totalorder %v4416_v29, 0  ;;  %vm3070_vm7 = vcmp.lt.s32.totalorder %v3050_v54, 2  ;;  %v3079_v7 = vsel %vm3071_vm12, %v3062_v32, %v3078_v49  ;;  %v3074_v6 = vsel %vm3072_vm2, %v3062_v32, 2102212464 }
 0x37f   : > { %v2900_v23 = vsel %vm4417_vm6, 0, %v4416_v29  ;;  %v3080_v0 = vsel %vm3070_vm7, %v3077_v28, %v3079_v7  ;;  %v3081_v8 = vsel %vm3069_vm9, %v3059_v53, %v3062_v32  ;;  %v3082_v37 = vsel %vm3072_vm2, %v3068_v4, 1326507024 }
 0x380   : > { %v2905_v1 = vsub.s32 4294967266, %v2900_v23  ;;  %v2901_v9 = vsub.s32 32, %v2900_v23  ;;  %v7420_v59 = vmul.u32.u64.low %v7380_v43, %v3080_v0  ;;  %v7421_v47 = vmul.u32.u64.high %v7380_v43, %v3080_v0, %v7420_v59 }
 0x381   : > { %v2804_v48 = vor.u32 4788187, %v2803_v36  ;;  %v3083_v29 = vsel %vm3071_vm12, %v3065_v31, %v3082_v37  ;;  %v2953_v49 = vshll.u32 %v8687_v50, %v7384_v18  ;;  %v3073_v20 = vsel %vm3069_vm9, %v3053_v61, %v3056_v14 }
 0x382   : > { %v2906_v25 = vadd.s32 127, %v2905_v1  ;;  %v3075_v28 = vsel %vm3071_vm12, %v3059_v53, %v3074_v6  ;;  %v3084_v32 = vsel %vm3070_vm7, %v3081_v8, %v3083_v29  ;;  %v2951_v4 = vshrl.u32 %v8687_v50, %v7402_v40 }
 0x383   : > { %vm2965_vm8 = vcmp.lt.s32.totalorder %v7382_v27, 1  ;;  %v2954_v36 = vshrl.u32 %v8688_v12, %v7402_v40  ;;  %v2956_v31 = vshll.u32 %v8688_v12, %v7384_v18  ;;  %v2957_v1 = vshrl.u32 %v8681_v55, %v7402_v40 }
 0x384   : > { %v2907_v7 = vshll.u32 %v2906_v25, 23  ;;  %v2807_v14 = vcvt.s32.f32 %v2800_v41  ;;  %v2903_v53 = vshrl.u32 %v7374_v34, %v2901_v9  ;;  %v2805_v0 = vand.u32 2147483647, %v2804_v48 }
 0x385   : > { %v7441_v61 = vmul.u32.u64.low %v7380_v43, %v3084_v32  ;;  %v7442_v6 = vmul.u32.u64.high %v7380_v43, %v3084_v32, %v7441_v61  ;;  %v2902_v8 = vshll.u32 %v7376_v16, %v2900_v23  ;;  %v3076_v37 = vsel %vm3070_vm7, %v3073_v20, %v3075_v28 }
 0x386   : > { %v3095_v25 = vadd.s32 1, %v7421_v47  ;;  %v2908_v29 = vor.u32 4788187, %v2907_v7  ;;  %v2952_v56 = vor.u32 %v2951_v4, %v2950_v60  ;;  %v2959_v42 = vshll.u32 %v8681_v55, %v7384_v18 }
 0x387   : > { %v2960_v41 = vshrl.u32 %v8690_v21, %v7402_v40  ;;  %v2955_v34 = vor.u32 %v2954_v36, %v2953_v49  ;;  %v2958_v9 = vor.u32 %v2957_v1, %v2956_v31  ;;  %v2962_v32 = vshll.u32 %v8690_v21, %v7384_v18 }
 0x388   : > { %v2963_v16 = vshrl.u32 %v8672_v52, %v7402_v40  ;;  %v2904_v54 = vor.u32 %v2903_v53, %v2902_v8  ;;  %v3092_v20 = vmul.u32 %v7380_v43, %v3076_v37  ;;  %vm3094_vm10 = vc.u32 %v7442_v6, %v7420_v59 }
 0x389   : > { %v2961_v60 = vor.u32 %v2960_v41, %v2959_v42  ;;  %v3096_v23 = vsel %vm3094_vm10, %v3095_v25, %v7421_v47  ;;  %vm2966_vm4 = vcmp.lt.s32.totalorder %v7382_v27, 2  ;;  %vm2968_vm15 = vcmp.lt.s32.totalorder %v7382_v27, 4 }
 0x38a   : > { %v2964_v48 = vor.u32 %v2963_v16, %v2962_v32  ;;  %vm8646_vm13 = vcmp.lt.s32.totalorder %v7057_v63, 0  ;;  %v2808_v18 = vmul.f32 %v2807_v14, %v2805_v0  ;;  %v3097_v49 = vadd.s32 %v3096_v23, %v3092_v20 }
 0x38b   : > { %vm2967_vm1 = vcmp.lt.s32.totalorder %v7382_v27, 3  ;;  %v2974_v28 = vsel %vm2968_vm15, %v2961_v60, 920167782  ;;  %v2909_v4 = vand.u32 2147483647, %v2908_v29  ;;  %v2973_v43 = vsel %vm2965_vm8, %v2952_v56, %v2955_v34 }
 0x38c   : > { %v2975_v42 = vsel %vm2967_vm1, %v2958_v9, %v2974_v28  ;;  %v2977_v47 = vsel %vm2965_vm8, %v2955_v34, %v2958_v9  ;;  %v8800_v7 = vxor.u32 2147483648, %v7378_v2  ;;  %v2911_v31 = vcvt.s32.f32 %v2904_v54 }
 0x38d   : > { %v3098_v1 = vadd.s32 536870912, %v3097_v49  ;;  %v2978_v14 = vsel %vm2968_vm15, %v2964_v48, 1326507024  ;;  %vm2831_vm9 = vcmp.lt.s32.totalorder %v6969_v35, 0  ;;  %v2970_v53 = vsel %vm2968_vm15, %v2958_v9, 2102212464 }
 0x38e   : > { %v2706_v36 = vsel %vm2623_vm3, %v8800_v7, %v7378_v2  ;;  %v2979_v61 = vsel %vm2967_vm1, %v2961_v60, %v2978_v14  ;;  %v8801_v0 = vor.u32 8388608, %v7083_v45  ;;  %v7481_v37 = vadd.f32 %v7071_v10, %v6966_v3 }
 0x38f   : > { %v8802_v25 = vand.u32 2147483647, %v7057_v63  ;;  %v7489_v29 = vshrl.u32 %v3098_v1, 30  ;;  %v2949_v41 = vshrl.u32 %v8694_v15, %v7402_v40  ;;  %v2976_v9 = vsel %vm2966_vm4, %v2973_v43, %v2975_v42 }
 0x390   : > { %v2981_v8 = vshll.u32 %v8801_v0, 8  ;;  %v2980_v45 = vsel %vm2966_vm4, %v2977_v47, %v2979_v61  ;;  %v2809_v32 = vxor.u32 2147483648, %v2808_v18  ;;  %v2912_v3 = vmul.f32 %v2911_v31, %v2909_v4  ;;  %v7543_v0 = vpop.f32.mrb[7].mxu0 }
 0x391   : > { %vm7485_vm2 = vcmp.le.f32.partialorder %v8802_v25, 0.7853982  ;;  %v8805_v54 = vand.u32 2147483647, %v6969_v35  ;;  %v3100_v60 = vshll.u32 %v7489_v29, 30  ;;  %v2969_v40 = vsel %vm2965_vm8, %v2949_v41, %v2952_v56 }
 0x392   : > { %v7497_v10 = vmul.u32.u64.low %v2981_v8, %v2980_v45  ;;  %v7498_v16 = vmul.u32.u64.high %v2981_v8, %v2980_v45, %v7497_v10  ;;  %v2971_v23 = vsel %vm2967_vm1, %v2955_v34, %v2970_v53  ;;  %v8609_v48 = vand.u32 2147483647, %v7481_v37 }
 0x393   : > { %vm7502_vm3 = vcmp.le.f32.partialorder %v8805_v54, 0.7853982  ;;  %4747 = vcosq.f32 %v7368_v38  ;;  %v7513_v28 = vmul.u32.u64.low %v2981_v8, %v2976_v9  ;;  %v7514_v4 = vmul.u32.u64.high %v2981_v8, %v2976_v9, %v7513_v28 }
 0x394   : > { %v3144_v43 = vand.u32 2139095040, %v7481_v37  ;;  %v2709_v42 = vsel %vm7301_vm14, %v7051_v44, %v2706_v36  ;;  %4749 = vsinq.f32 %v7368_v38  ;;  %v2915_v56 = vsub.s32 4, %v7358_v24 }
 0x395   : > { %v7523_v47 = vsub.s32 %v3097_v49, %v3100_v60  ;;  %v2810_v34 = vsel %vm8646_vm13, %v2809_v32, %v2808_v18  ;;  %v2913_v7 = vxor.u32 2147483648, %v2912_v3  ;;  %v2972_v31 = vsel %vm2966_vm4, %v2969_v40, %v2971_v23 }
 0x396   : > { %v3145_v1 = vshrl.u32 %v3144_v43, 23  ;;  %vm2990_vm6 = vc.u32 %v7498_v16, %v7513_v28  ;;  %v3148_v26 = vand.u32 8388607, %v8609_v48  ;;  %v8610_v38 = vand.u32 2147483647, %v7354_v13 }
 0x397   : > { %v3103_v14 = vsub.s32 0, %v7523_v47  ;;  %4751 = vcosq.f32 %v2709_v42  ;;  %v2991_v49 = vadd.s32 1, %v7514_v4  ;;  %v3248_v18 = vand.u32 2139095040, %v7354_v13 }
 0x398   : > { %v4426_v36 = vadd.s32 4294967169, %v3145_v1  ;;  %4753 = vsinq.f32 %v2709_v42  ;;  %v7540_v27 = vsel %vm2831_vm9, %v2915_v56, %v7358_v24  ;;  %v2988_v61 = vmul.u32 %v2981_v8, %v2972_v31 }
 0x399   : > { %v4423_v53 = vmin.u32 %v3103_v14, %v7523_v47  ;;  %v7548_v25 = vsel %vm7485_vm2, %v7057_v63, %v2810_v34  ;;  %v2914_v41 = vsel %vm2831_vm9, %v2913_v7, %v2912_v3  ;;  %v2992_v9 = vsel %vm2990_vm6, %v2991_v49, %v7514_v4 }
 0x39a   : > { %v3151_v45 = vadd.s32 1, %v4426_v36  ;;  %v2993_v10 = vadd.s32 %v2992_v9, %v2988_v61  ;;  %v3149_v24 = vor.u32 8388608, %v3148_v26  ;;  %v7555_v54 = vand.u32 8388607, %v8610_v38 }
 0x39b   : > { %v3105_v32 = vclz %v4423_v53  ;;  %v3249_v60 = vshrl.u32 %v3248_v18, 23  ;;  %v7562_v40 = vadd.f32 %v7075_v57, %v7339_v62  ;;  %4755 = vcosq.f32 %v7548_v25 }
 0x39c   : > { %vm3152_vm14 = vcmp.gt.s32.totalorder %v3151_v45, 0  ;;  %v2994_v23 = vadd.s32 536870912, %v2993_v10  ;;  %v7570_v42 = vsel %vm7502_vm3, %v6969_v35, %v2914_v41  ;;  %v3093_v56 = vadd.s32 %v7420_v59, %v7442_v6 }
 0x39d   : > { %8808 = vst [vmem:[#allocation23_spill] sm:$0xff] %v7562_v40  ;;  %v4424_v3 = vadd.s32 4294967294, %v3105_v32  ;;  %v3153_v4 = vsel %vm3152_vm14, %v3151_v45, 0  ;;  %v7565_v43 = vpop.eup %4747  ;;  %v7579_v1 = vshll.u32 %v3149_v24, 8  ;;  %v4430_v36 = vadd.s32 4294967169, %v3249_v60 }
 0x39e   : > { %v3155_v7 = vand.u32 31, %v3153_v4  ;;  %v7575_v57 = vpop.eup %4749  ;;  %v7577_v31 = vshrl.u32 %v2994_v23, 30  ;;  %v3154_v6 = vshrl.u32 %v3153_v4, 5  ;;  %vm3039_vm6 = vcmp.lt.s32.totalorder %v7288_v58, 0 }
 0x39f   : > { %vm4425_vm12 = vcmp.lt.s32.totalorder %v4424_v3, 0  ;;  %v3255_v51 = vadd.s32 1, %v4430_v36  ;;  %4757 = vsinq.f32 %v7548_v25  ;;  %v7765_v39 = vadd.f32 %v8827_v22, %v7339_v62 }
 0x3a0   : > { %v3108_v26 = vsel %vm4425_vm12, 0, %v4424_v3  ;;  %v3156_v49 = vsub.s32 32, %v3155_v7  ;;  %v2996_v59 = vshll.u32 %v7577_v31, 30  ;;  %v3158_v9 = vshll.u32 %v8694_v15, %v3155_v7 }
 0x3a1   : > { %v3109_v53 = vsub.s32 32, %v3108_v26  ;;  %v3113_v61 = vsub.s32 4294967266, %v3108_v26  ;;  %v7584_v41 = vpop.eup %4751  ;;  %v3164_v24 = vshll.u32 %v8688_v12, %v3155_v7  ;;  %v3110_v4 = vshll.u32 %v7523_v47, %v3108_v26 }
 0x3a2   : > { %8809 = vst [vmem:[#allocation18_spill] sm:$0xff] %v7584_v41  ;;  %v3159_v45 = vshrl.u32 %v8687_v50, %v3156_v49  ;;  %v3162_v32 = vshrl.u32 %v8688_v12, %v3156_v49  ;;  %v7590_v3 = vpop.eup %4753  ;;  %v7592_v48 = vsub.s32 %v2993_v10, %v2996_v59  ;;  %v3165_v38 = vshrl.u32 %v8681_v55, %v3156_v49 }
 0x3a3   : > { %8810 = vst [vmem:[#allocation27_spill] sm:$0xff] %v7590_v3  ;;  %v3111_v60 = vshrl.u32 %v3093_v56, %v3109_v53  ;;  %v3114_v23 = vadd.s32 127, %v3113_v61  ;;  %v3161_v8 = vshll.u32 %v8687_v50, %v3155_v7  ;;  %v3167_v34 = vshll.u32 %v8681_v55, %v3155_v7 }
 0x3a4   : > { %v3168_v18 = vshrl.u32 %v8690_v21, %v3156_v49  ;;  %v2999_v44 = vsub.s32 0, %v7592_v48  ;;  %v3160_v41 = vor.u32 %v3159_v45, %v3158_v9  ;;  %v3166_v35 = vor.u32 %v3165_v38, %v3164_v24 }
 0x3a5   : > { %v3115_v14 = vshll.u32 %v3114_v23, 23  ;;  %v3163_v3 = vor.u32 %v3162_v32, %v3161_v8  ;;  %v3170_v10 = vshll.u32 %v8690_v21, %v3155_v7  ;;  %v3171_v53 = vshrl.u32 %v8672_v52, %v3156_v49  ;;  %v7602_v61 = vpop.eup %4755 }
 0x3a6   : > { %v3169_v56 = vor.u32 %v3168_v18, %v3167_v34  ;;  %8811 = vst [vmem:[#allocation38_spill] sm:$0xff] %v7602_v61  ;;  %v3112_v47 = vor.u32 %v3111_v60, %v3110_v4  ;;  %v4419_v59 = vmin.u32 %v2999_v44, %v7592_v48  ;;  %v3157_v46 = vshrl.u32 %v8694_v15, %v3156_v49  ;;  %v7606_v49 = vpop.f32.mrb[7].mxu1 }
 0x3a7   : > { %v3116_v26 = vor.u32 4788187, %v3115_v14  ;;  %v3172_v23 = vor.u32 %v3171_v53, %v3170_v10  ;;  %vm3173_vm7 = vcmp.lt.s32.totalorder %v3154_v6, 1  ;;  %vm3176_vm8 = vcmp.lt.s32.totalorder %v3154_v6, 4 }
 0x3a8   : > { %v3001_v38 = vclz %v4419_v59  ;;  %vm3175_vm10 = vcmp.lt.s32.totalorder %v3154_v6, 3  ;;  %v3178_v8 = vsel %vm3176_vm8, %v3166_v35, 2102212464  ;;  %v3181_v34 = vsel %vm3173_vm7, %v3160_v41, %v3163_v3 }
 0x3a9   : > { %v3117_v9 = vand.u32 2147483647, %v3116_v26  ;;  %v3182_v7 = vsel %vm3176_vm8, %v3169_v56, 920167782  ;;  %v3185_v18 = vsel %vm3173_vm7, %v3163_v3, %v3166_v35  ;;  %v3186_v45 = vsel %vm3176_vm8, %v3172_v23, 1326507024 }
 0x3aa   : > { %v3119_v32 = vcvt.s32.f32 %v3112_v47  ;;  %v4420_v24 = vadd.s32 4294967294, %v3001_v38  ;;  %vm3174_vm4 = vcmp.lt.s32.totalorder %v3154_v6, 2  ;;  %v3183_v14 = vsel %vm3175_vm10, %v3166_v35, %v3182_v7 }
 0x3ab   : > { %v3177_v60 = vsel %vm3173_vm7, %v3157_v46, %v3160_v41  ;;  %v3179_v44 = vsel %vm3175_vm10, %v3163_v3, %v3178_v8  ;;  %v3187_v36 = vsel %vm3175_vm10, %v3169_v56, %v3186_v45  ;;  %vm3256_vm15 = vcmp.gt.s32.totalorder %v3255_v51, 0 }
 0x3ac   : > { %vm4421_vm1 = vcmp.lt.s32.totalorder %v4420_v24, 0  ;;  %v3184_v4 = vsel %vm3174_vm4, %v3181_v34, %v3183_v14  ;;  %v3188_v10 = vsel %vm3174_vm4, %v3185_v18, %v3187_v36  ;;  %v3257_v53 = vsel %vm3256_vm15, %v3255_v51, 0 }
 0x3ad   : > { %v7610_v26 = vmul.f32 %v3119_v32, %v3117_v9  ;;  %v3004_v59 = vsel %vm4421_vm1, 0, %v4420_v24  ;;  %v7613_v47 = vmul.u32.u64.low %v7579_v1, %v3188_v10  ;;  %v7614_v23 = vmul.u32.u64.high %v7579_v1, %v3188_v10, %v7613_v47 }
 0x3ae   : > { %v2989_v35 = vadd.s32 %v7513_v28, %v7498_v16  ;;  %v3005_v46 = vsub.s32 32, %v3004_v59  ;;  %v3009_v41 = vsub.s32 4294967266, %v3004_v59  ;;  %v3180_v3 = vsel %vm3174_vm4, %v3177_v60, %v3179_v44 }
 0x3af   : > { %v7620_v56 = vmul.u32.u64.low %v7579_v1, %v3184_v4  ;;  %v7621_v38 = vmul.u32.u64.high %v7579_v1, %v3184_v4, %v7620_v56  ;;  %v3259_v51 = vand.u32 31, %v3257_v53  ;;  %v8812_v7 = vor.u32 8388608, %v7555_v54 }
 0x3b0   : > { %v3007_v8 = vshrl.u32 %v2989_v35, %v3005_v46  ;;  %v3010_v34 = vadd.s32 127, %v3009_v41  ;;  %v8813_v16 = vand.u32 2139095040, %v7562_v40  ;;  %v3121_v6 = vxor.u32 2147483648, %v7610_v26 }
 0x3b1   : > { %v7627_v18 = vshll.u32 %v8812_v7, 8  ;;  %v3196_v45 = vmul.u32 %v7579_v1, %v3180_v3  ;;  %v3258_v32 = vshrl.u32 %v3257_v53, 5  ;;  %v3260_v24 = vsub.s32 32, %v3259_v51 }
 0x3b2   : > { %v7631_v28 = vshrl.u32 %v8813_v16, 23  ;;  %v3006_v14 = vshll.u32 %v7592_v48, %v3004_v59  ;;  %v3011_v60 = vshll.u32 %v3010_v34, 23  ;;  %vm3198_vm9 = vc.u32 %v7614_v23, %v7620_v56 }
 0x3b3   : > { %v3262_v54 = vshll.u32 %v8694_v15, %v3259_v51  ;;  %v3199_v44 = vadd.s32 1, %v7621_v38  ;;  %v3263_v36 = vshrl.u32 %v8687_v50, %v3260_v24  ;;  %v3265_v4 = vshll.u32 %v8687_v50, %v3259_v51 }
 0x3b4   : > { %v3266_v10 = vshrl.u32 %v8688_v12, %v3260_v24  ;;  %v3008_v47 = vor.u32 %v3007_v8, %v3006_v14  ;;  %v3012_v1 = vor.u32 4788187, %v3011_v60  ;;  %v3268_v53 = vshll.u32 %v8688_v12, %v3259_v51 }
 0x3b5   : > { %v3269_v48 = vshrl.u32 %v8681_v55, %v3260_v24  ;;  %v3200_v59 = vsel %vm3198_vm9, %v3199_v44, %v7621_v38  ;;  %v3264_v35 = vor.u32 %v3263_v36, %v3262_v54  ;;  %v3271_v41 = vshll.u32 %v8681_v55, %v3259_v51 }
 0x3b6   : > { %v3267_v46 = vor.u32 %v3266_v10, %v3265_v4  ;;  %v3013_v3 = vand.u32 2147483647, %v3012_v1  ;;  %v3201_v34 = vadd.s32 %v3200_v59, %v3196_v45  ;;  %v3272_v16 = vshrl.u32 %v8690_v21, %v3260_v24 }
 0x3b7   : > { %v3270_v7 = vor.u32 %v3269_v48, %v3268_v53  ;;  %v3261_v8 = vshrl.u32 %v8694_v15, %v3260_v24  ;;  %v3274_v14 = vshll.u32 %v8690_v21, %v3259_v51  ;;  %v3275_v60 = vshrl.u32 %v8672_v52, %v3260_v24 }
 0x3b8   : > { %vm3277_vm14 = vcmp.lt.s32.totalorder %v3258_v32, 1  ;;  %v8814_v9 = vand.u32 2147483647, %v7288_v58  ;;  %v3015_v54 = vcvt.s32.f32 %v3008_v47  ;;  %v3202_v44 = vadd.s32 536870912, %v3201_v34 }
 0x3b9   : > { %v3273_v36 = vor.u32 %v3272_v16, %v3271_v41  ;;  %vm3280_vm7 = vcmp.lt.s32.totalorder %v3258_v32, 4  ;;  %v3276_v45 = vor.u32 %v3275_v60, %v3274_v14  ;;  %vm3278_vm8 = vcmp.lt.s32.totalorder %v3258_v32, 2 }
 0x3ba   : > { %vm7654_vm12 = vcmp.le.f32.partialorder %v8814_v9, 0.7853982  ;;  %v3282_v4 = vsel %vm3280_vm7, %v3270_v7, 2102212464  ;;  %v3285_v10 = vsel %vm3277_vm14, %v3264_v35, %v3267_v46  ;;  %vm2935_vm10 = vcmp.lt.s32.totalorder %v7048_v33, 0 }
 0x3bb   : > { %v3016_v51 = vmul.f32 %v3015_v54, %v3013_v3  ;;  %v7660_v24 = vshrl.u32 %v3202_v44, 30  ;;  %vm3279_vm4 = vcmp.lt.s32.totalorder %v3258_v32, 3  ;;  %v3286_v1 = vsel %vm3280_vm7, %v3273_v36, 920167782  ;;  %v8817_v44 = vld [vmem:[#allocation25_spill] sm:$0xff] }
 0x3bc   : > { %v3281_v9 = vsel %vm3277_vm14, %v3261_v8, %v3264_v35  ;;  %v3287_v53 = vsel %vm3279_vm4, %v3270_v7, %v3286_v1  ;;  %v3289_v47 = vsel %vm3277_vm14, %v3267_v46, %v3270_v7  ;;  %v3290_v48 = vsel %vm3280_vm7, %v3276_v45, 1326507024 }
 0x3bd   : > { %v3204_v59 = vshll.u32 %v7660_v24, 30  ;;  %v3283_v41 = vsel %vm3279_vm4, %v3267_v46, %v3282_v4  ;;  %v3288_v16 = vsel %vm3278_vm8, %v3285_v10, %v3287_v53  ;;  %v3291_v14 = vsel %vm3279_vm4, %v3273_v36, %v3290_v48 }
 0x3be   : > { %v3292_v60 = vsel %vm3278_vm8, %v3289_v47, %v3291_v14  ;;  %v7668_v3 = vmul.u32.u64.low %v7627_v18, %v3288_v16  ;;  %v7669_v54 = vmul.u32.u64.high %v7627_v18, %v3288_v16, %v7668_v3  ;;  %v7674_v35 = vadd.f32 %v8817_v44, %v7339_v62 }
 0x3bf   : > { %v8818_v7 = vsub.s32 4, %v7489_v29  ;;  %v8819_v8 = vand.u32 2147483647, %v7048_v33  ;;  %v7687_v45 = vsub.s32 %v3201_v34, %v3204_v59  ;;  %v3017_v1 = vxor.u32 2147483648, %v3016_v51 }
 0x3c0   : > { %v7690_v4 = vmul.u32.u64.low %v7627_v18, %v3292_v60  ;;  %v7691_v10 = vmul.u32.u64.high %v7627_v18, %v3292_v60, %v7690_v4  ;;  %v3284_v53 = vsel %vm3278_vm8, %v3281_v9, %v3283_v41  ;;  %v4438_v47 = vadd.s32 4294967169, %v7631_v28 }
 0x3c1   : > { %v3124_v46 = vsel %vm3039_vm6, %v8818_v7, %v7489_v29  ;;  %vm7683_vm15 = vcmp.le.f32.partialorder %v8819_v8, 0.7853982  ;;  %4759 = vcosq.f32 %v7570_v42  ;;  %v3122_v29 = vsel %vm3039_vm6, %v3121_v6, %v7610_v26 }
 0x3c2   : > { %v3207_v34 = vsub.s32 0, %v7687_v45  ;;  %v8822_v48 = vand.u32 2147483647, %v7562_v40  ;;  %v3126_v25 = vsel %vm7654_vm12, 0, %v3124_v46  ;;  %v3303_v32 = vadd.s32 1, %v7669_v54 }
 0x3c3   : > { %v3463_v9 = vadd.s32 1, %v4438_v47  ;;  %v3352_v28 = vand.u32 2139095040, %v7674_v35  ;;  %v3300_v16 = vmul.u32 %v7627_v18, %v3284_v53  ;;  %vm3302_vm1 = vc.u32 %v7691_v10, %v7668_v3 }
 0x3c4   : > { %v3460_v59 = vand.u32 8388607, %v8822_v48  ;;  %v4427_v41 = vmin.u32 %v3207_v34, %v7687_v45  ;;  %v8618_v26 = vand.u32 2147483647, %v7674_v35  ;;  %v3125_v6 = vsel %vm7654_vm12, %v7288_v58, %v3122_v29  ;;  %v7744_v48 = vpop.eup %4757 }
 0x3c5   : > { %v3018_v14 = vsel %vm2935_vm10, %v3017_v1, %v3016_v51  ;;  %v3304_v60 = vsel %vm3302_vm1, %v3303_v32, %v7669_v54  ;;  %vm3464_vm9 = vcmp.gt.s32.totalorder %v3463_v9, 0  ;;  %4761 = vsinq.f32 %v7570_v42 }
 0x3c6   : > { %v3209_v44 = vclz %v4427_v41  ;;  %v3305_v7 = vadd.s32 %v3304_v60, %v3300_v16  ;;  %v3461_v46 = vor.u32 8388608, %v3460_v59  ;;  %v3465_v8 = vsel %vm3464_vm9, %v3463_v9, 0 }
 0x3c7   : > { %v8823_v18 = vsel %vm7502_vm3, 0, %v7540_v27  ;;  %v3467_v38 = vand.u32 31, %v3465_v8  ;;  %v3353_v53 = vshrl.u32 %v3352_v28, 23  ;;  %4763 = vcosq.f32 %v3125_v6 }
 0x3c8   : > { %v7725_v4 = vadd.s32 3, %v8823_v18  ;;  %v7727_v47 = vadd.s32 3, %v3126_v25  ;;  %v4428_v51 = vadd.s32 4294967294, %v3209_v44  ;;  %v3306_v54 = vadd.s32 536870912, %v3305_v7 }
 0x3c9   : > { %4765 = vsinq.f32 %v3125_v6  ;;  %v7732_v1 = vsel %vm7683_vm15, %v7048_v33, %v3018_v14  ;;  %v3197_v20 = vadd.s32 %v7620_v56, %v7614_v23  ;;  %v3468_v42 = vsub.s32 32, %v3467_v38 }
 0x3ca   : > { %8824 = vst [vmem:[#allocation40_spill] sm:$0xff] %v7725_v4  ;;  %8825 = vst [vmem:[#allocation30_spill] sm:$0xff] %v7727_v47  ;;  %vm4429_vm3 = vcmp.lt.s32.totalorder %v4428_v51, 0  ;;  %v7736_v27 = vshrl.u32 %v3306_v54, 30  ;;  %v7738_v29 = vshll.u32 %v3461_v46, 8  ;;  %v4434_v9 = vadd.s32 4294967169, %v3353_v53 }
 0x3cb   : > { %v7742_v34 = vand.u32 8388607, %v8618_v26  ;;  %v3212_v59 = vsel %vm4429_vm3, 0, %v4428_v51  ;;  %v3471_v25 = vshrl.u32 %v8687_v50, %v3468_v42  ;;  %v3474_v32 = vshrl.u32 %v8688_v12, %v3468_v42  ;;  %v7748_v28 = vpop.eup %4759 }
 0x3cc   : > { %8826 = vst [vmem:[#allocation22_spill] sm:$0xff] %v7748_v28  ;;  %v3217_v23 = vsub.s32 4294967266, %v3212_v59  ;;  %v3308_v56 = vshll.u32 %v7736_v27, 30  ;;  %v3466_v41 = vshrl.u32 %v3465_v8, 5  ;;  %v3470_v16 = vshll.u32 %v8694_v15, %v3467_v38 }
 0x3cd   : > { %v3473_v6 = vshll.u32 %v8687_v50, %v3467_v38  ;;  %v3476_v14 = vshll.u32 %v8688_v12, %v3467_v38  ;;  %v3477_v60 = vshrl.u32 %v8681_v55, %v3468_v42  ;;  %v3479_v44 = vshll.u32 %v8681_v55, %v3467_v38 }
 0x3ce   : > { %v3218_v46 = vadd.s32 127, %v3217_v23  ;;  %v7756_v18 = vsub.s32 %v3305_v7, %v3308_v56  ;;  %v3480_v53 = vshrl.u32 %v8690_v21, %v3468_v42  ;;  %v3482_v51 = vshll.u32 %v8690_v21, %v3467_v38 }
 0x3cf   : > { %v3213_v54 = vsub.s32 32, %v3212_v59  ;;  %v3472_v26 = vor.u32 %v3471_v25, %v3470_v16  ;;  %v3475_v8 = vor.u32 %v3474_v32, %v3473_v6  ;;  %v3483_v58 = vshrl.u32 %v8672_v52, %v3468_v42  ;;  %v7767_v7 = vpop.eup %4761 }
 0x3d0   : > { %v3311_v47 = vsub.s32 0, %v7756_v18  ;;  %v3478_v28 = vor.u32 %v3477_v60, %v3476_v14  ;;  %v3357_v4 = vor.u32 8388608, %v7742_v34  ;;  %8828 = vst [vmem:[#allocation12_spill] sm:$0xff] %v7767_v7  ;;  %v3469_v23 = vshrl.u32 %v8694_v15, %v3468_v42 }
 0x3d1   : > { %v3481_v56 = vor.u32 %v3480_v53, %v3479_v44  ;;  %v3484_v38 = vor.u32 %v3483_v58, %v3482_v51  ;;  %v3359_v61 = vadd.s32 1, %v4434_v9  ;;  %v7770_v25 = vpop.eup %4763  ;;  %v3214_v32 = vshll.u32 %v7687_v45, %v3212_v59 }
 0x3d2   : > { %8829 = vst [vmem:[#allocation43_spill] sm:$0xff] %v7770_v25  ;;  %v3219_v16 = vshll.u32 %v3218_v46, 23  ;;  %v4431_v6 = vmin.u32 %v3311_v47, %v7756_v18  ;;  %vm3485_vm6 = vcmp.lt.s32.totalorder %v3466_v41, 1  ;;  %v3215_v14 = vshrl.u32 %v3197_v20, %v3213_v54 }
 0x3d3   : > { %v7774_v34 = vpop.eup %4765  ;;  %vm3486_vm14 = vcmp.lt.s32.totalorder %v3466_v41, 2  ;;  %vm3488_vm12 = vcmp.lt.s32.totalorder %v3466_v41, 4  ;;  %v3493_v22 = vsel %vm3485_vm6, %v3472_v26, %v3475_v8  ;;  %vm3487_vm7 = vcmp.lt.s32.totalorder %v3466_v41, 3 }
 0x3d4   : > { %8830 = vst [vmem:[#allocation34_spill] sm:$0xff] %v7774_v34  ;;  %v3313_v62 = vclz %v4431_v6  ;;  %v3490_v42 = vsel %vm3488_vm12, %v3478_v28, 2102212464  ;;  %v3494_v58 = vsel %vm3488_vm12, %v3481_v56, 920167782  ;;  %v3497_v60 = vsel %vm3485_vm6, %v3475_v8, %v3478_v28 }
 0x3d5   : > { %v3495_v9 = vsel %vm3487_vm7, %v3478_v28, %v3494_v58  ;;  %v3498_v44 = vsel %vm3488_vm12, %v3484_v38, 1326507024  ;;  %vm3360_vm8 = vcmp.gt.s32.totalorder %v3359_v61, 0  ;;  %v3220_v45 = vor.u32 4788187, %v3219_v16 }
 0x3d6   : > { %v4432_v59 = vadd.s32 4294967294, %v3313_v62  ;;  %v3489_v47 = vsel %vm3485_vm6, %v3469_v23, %v3472_v26  ;;  %v3496_v46 = vsel %vm3486_vm14, %v3493_v22, %v3495_v9  ;;  %v3491_v20 = vsel %vm3487_vm7, %v3475_v8, %v3490_v42 }
 0x3d7   : > { %v3499_v53 = vsel %vm3487_vm7, %v3481_v56, %v3498_v44  ;;  %v7781_v51 = vmul.u32.u64.low %v7738_v29, %v3496_v46  ;;  %v7782_v54 = vmul.u32.u64.high %v7738_v29, %v3496_v46, %v7781_v51  ;;  %v3216_v6 = vor.u32 %v3215_v14, %v3214_v32 }
 0x3d8   : > { %vm4433_vm4 = vcmp.lt.s32.totalorder %v4432_v59, 0  ;;  %v3500_v58 = vsel %vm3486_vm14, %v3497_v60, %v3499_v53  ;;  %v3361_v28 = vsel %vm3360_vm8, %v3359_v61, 0  ;;  %v3301_v38 = vadd.s32 %v7668_v3, %v7691_v10 }
 0x3d9   : > { %v3316_v16 = vsel %vm4433_vm4, 0, %v4432_v59  ;;  %v7789_v26 = vmul.u32.u64.low %v7738_v29, %v3500_v58  ;;  %v7790_v23 = vmul.u32.u64.high %v7738_v29, %v3500_v58, %v7789_v26  ;;  %v3221_v8 = vand.u32 2147483647, %v3220_v45 }
 0x3da   : > { %v3317_v56 = vsub.s32 32, %v3316_v16  ;;  %v3321_v22 = vsub.s32 4294967266, %v3316_v16  ;;  %v3492_v62 = vsel %vm3486_vm14, %v3489_v47, %v3491_v20  ;;  %4767 = vcosq.f32 %v7732_v1 }
 0x3db   : > { %v3511_v32 = vadd.s32 1, %v7782_v54  ;;  %v3363_v14 = vand.u32 31, %v3361_v28  ;;  %v7795_v42 = vshll.u32 %v3357_v4, 8  ;;  %v3223_v61 = vcvt.s32.f32 %v3216_v6 }
 0x3dc   : > { %v3319_v9 = vshrl.u32 %v3301_v38, %v3317_v56  ;;  %v3322_v3 = vadd.s32 127, %v3321_v22  ;;  %v8625_v10 = vand.u32 2147483647, %v7765_v39  ;;  %v3331_v60 = vsub.s32 4, %v7736_v27 }
 0x3dd   : > { %v3508_v44 = vmul.u32 %v7738_v29, %v3492_v62  ;;  %vm3510_vm1 = vc.u32 %v7790_v23, %v7781_v51  ;;  %v3364_v41 = vsub.s32 32, %v3363_v14  ;;  %v3224_v45 = vmul.f32 %v3223_v61, %v3221_v8 }
 0x3de   : > { %v3318_v59 = vshll.u32 %v7756_v18, %v3316_v16  ;;  %v3323_v47 = vshll.u32 %v3322_v3, 23  ;;  %v3512_v4 = vsel %vm3510_vm1, %v3511_v32, %v7782_v54  ;;  %vm8643_vm9 = vcmp.lt.s32.totalorder %v7481_v37, 0 }
 0x3df   : > { %vm3247_vm3 = vcmp.lt.s32.totalorder %v7354_v13, 0  ;;  %v3513_v46 = vadd.s32 %v3512_v4, %v3508_v44  ;;  %v7806_v20 = vshrl.u32 %v3361_v28, 5  ;;  %v3366_v53 = vshll.u32 %v8694_v15, %v3363_v14 }
 0x3e0   : > { %v3367_v29 = vshrl.u32 %v8687_v50, %v3364_v41  ;;  %v3320_v6 = vor.u32 %v3319_v9, %v3318_v59  ;;  %v3324_v58 = vor.u32 4788187, %v3323_v47  ;;  %v3369_v38 = vshll.u32 %v8687_v50, %v3363_v14 }
 0x3e1   : > { %v3370_v18 = vshrl.u32 %v8688_v12, %v3364_v41  ;;  %v3514_v16 = vadd.s32 536870912, %v3513_v46  ;;  %v3372_v54 = vshll.u32 %v8688_v12, %v3363_v14  ;;  %v3373_v8 = vshrl.u32 %v8681_v55, %v3364_v41 }
 0x3e2   : > { %v3368_v26 = vor.u32 %v3367_v29, %v3366_v53  ;;  %v8831_v56 = vand.u32 2147483647, %v7354_v13  ;;  %v3325_v22 = vand.u32 2147483647, %v3324_v58  ;;  %v3375_v32 = vshll.u32 %v8681_v55, %v3363_v14 }
 0x3e3   : > { %v3371_v62 = vor.u32 %v3370_v18, %v3369_v38  ;;  %v3376_v61 = vshrl.u32 %v8690_v21, %v3364_v41  ;;  %v8834_v9 = vand.u32 2147483647, %v7481_v37  ;;  %v8835_v3 = vmov 0 }
 0x3e4   : > { %vm7816_vm6 = vcmp.le.f32.partialorder %v8831_v56, 0.7853982  ;;  %v3515_v44 = vshrl.u32 %v3514_v16, 30  ;;  %v3374_v59 = vor.u32 %v3373_v8, %v3372_v54  ;;  %v3378_v47 = vshll.u32 %v8690_v21, %v3363_v14  ;;  %v7832_v58 = vpop.eup %4767 }
 0x3e5   : > { %vm7824_vm14 = vcmp.le.f32.partialorder %v8834_v9, 0.7853982  ;;  %v3379_v4 = vshrl.u32 %v8672_v52, %v3364_v41  ;;  %v3225_v53 = vxor.u32 2147483648, %v3224_v45  ;;  %v3377_v29 = vor.u32 %v3376_v61, %v3375_v32 }
 0x3e6   : > { %v8836_v3 = vsel %vm7824_vm14, 4294967295, %v8835_v3  ;;  %vm3381_vm12 = vcmp.lt.s32.totalorder %v7806_v20, 1  ;;  %vm3382_vm7 = vcmp.lt.s32.totalorder %v7806_v20, 2  ;;  %v3327_v38 = vcvt.s32.f32 %v3320_v6 }
 0x3e7   : > { %8837 = vst [vmem:[#allocation33_spill] sm:$0xff] %v8836_v3  ;;  %vm3455_vm8 = vcmp.lt.s32.totalorder %v7562_v40, 0  ;;  %v3516_v18 = vshll.u32 %v3515_v44, 30  ;;  %v3380_v56 = vor.u32 %v3379_v4, %v3378_v47  ;;  %vm3384_vm4 = vcmp.lt.s32.totalorder %v7806_v20, 4 }
 0x3e8   : > { %v3365_v16 = vshrl.u32 %v8694_v15, %v3364_v41  ;;  %vm3383_vm1 = vcmp.lt.s32.totalorder %v7806_v20, 3  ;;  %v3389_v14 = vsel %vm3381_vm12, %v3368_v26, %v3371_v62  ;;  %v3390_v54 = vsel %vm3384_vm4, %v3377_v29, 920167782 }
 0x3e9   : > { %v3328_v8 = vmul.f32 %v3327_v38, %v3325_v22  ;;  %v7842_v32 = vsub.s32 %v3513_v46, %v3516_v18  ;;  %v3386_v6 = vsel %vm3384_vm4, %v3374_v59, 2102212464  ;;  %v3391_v61 = vsel %vm3383_vm1, %v3374_v59, %v3390_v54 }
 0x3ea   : > { %v3226_v41 = vsel %vm8643_vm9, %v3225_v53, %v3224_v45  ;;  %v3332_v9 = vsel %vm3247_vm3, %v3331_v60, %v7736_v27  ;;  %v8838_v47 = vand.u32 2147483647, %v7562_v40  ;;  %v3392_v46 = vsel %vm3382_vm7, %v3389_v14, %v3391_v61 }
 0x3eb   : > { %v3393_v22 = vsel %vm3381_vm12, %v3371_v62, %v3374_v59  ;;  %v3519_v38 = vsub.s32 0, %v7842_v32  ;;  %v3539_v18 = vsub.s32 4, %v3515_v44  ;;  %v3385_v45 = vsel %vm3381_vm12, %v3365_v16, %v3368_v26  ;;  %v7882_v16 = vpop.permute.xlu1 %2219 }
 0x3ec   : > { %vm7855_vm11 = vcmp.le.f32.partialorder %v8838_v47, 0.7853982  ;;  %v3394_v27 = vsel %vm3384_vm4, %v3380_v56, 1326507024  ;;  %v3387_v60 = vsel %vm3383_vm1, %v3371_v62, %v3386_v6  ;;  %v3329_v59 = vxor.u32 2147483648, %v3328_v8 }
 0x3ed   : > { %v3395_v53 = vsel %vm3383_vm1, %v3377_v29, %v3394_v27  ;;  %v7873_v14 = vmul.u32.u64.low %v7795_v42, %v3392_v46  ;;  %v7874_v54 = vmul.u32.u64.high %v7795_v42, %v3392_v46, %v7873_v14  ;;  %v3334_v61 = vsel %vm7816_vm6, 0, %v3332_v9 }
 0x3ee   : > { %v4439_v26 = vmin.u32 %v3519_v38, %v7842_v32  ;;  %v3396_v56 = vsel %vm3382_vm7, %v3393_v22, %v3395_v53  ;;  %v3229_v62 = vsel %vm7824_vm14, %v7481_v37, %v3226_v41  ;;  %v3560_v47 = vand.u32 2139095040, %v7765_v39 }
 0x3ef   : > { %v7888_v29 = vmul.u32.u64.low %v7795_v42, %v3396_v56  ;;  %v7889_v6 = vmul.u32.u64.high %v7795_v42, %v3396_v56, %v7888_v29  ;;  %4769 = vsinq.f32 %v7732_v1  ;;  %v3388_v46 = vsel %vm3382_vm7, %v3385_v45, %v3387_v60 }
 0x3f0   : > { %v3521_v9 = vclz %v4439_v26  ;;  %v7897_v22 = vadd.f32 %v7360_v17, %v7882_v16  ;;  %v7899_v38 = vadd.s32 3, %v3334_v61  ;;  %v3540_v41 = vsel %vm3455_vm8, %v3539_v18, %v3515_v44 }
 0x3f1   : > { %v3407_v27 = vadd.s32 1, %v7874_v54  ;;  %v3561_v53 = vshrl.u32 %v3560_v47, 23  ;;  %4771 = vcosq.f32 %v3229_v62  ;;  %v3330_v1 = vsel %vm3247_vm3, %v3329_v59, %v3328_v8 }
 0x3f2   : > { %8841 = vst [vmem:[#allocation49_spill] sm:$0xff] %v7899_v38  ;;  %v4440_v26 = vadd.s32 4294967294, %v3521_v9  ;;  %v3564_v20 = vand.u32 8388607, %v8625_v10  ;;  %v3404_v45 = vmul.u32 %v7795_v42, %v3388_v46  ;;  %vm3406_vm12 = vc.u32 %v7889_v6, %v7873_v14 }
 0x3f3   : > { %v4442_v17 = vadd.s32 4294967169, %v3561_v53  ;;  %v3664_v60 = vand.u32 2139095040, %v7897_v22  ;;  %v3509_v44 = vadd.s32 %v7781_v51, %v7790_v23  ;;  %v3542_v18 = vsel %vm7855_vm11, 0, %v3540_v41 }
 0x3f4   : > { %vm4441_vm7 = vcmp.lt.s32.totalorder %v4440_v26, 0  ;;  %v3408_v8 = vsel %vm3406_vm12, %v3407_v27, %v7874_v54  ;;  %v7920_v59 = vsel %vm7816_vm6, %v7354_v13, %v3330_v1  ;;  %v3565_v9 = vor.u32 8388608, %v3564_v20 }
 0x3f5   : > { %v3524_v42 = vsel %vm4441_vm7, 0, %v4440_v26  ;;  %v3409_v61 = vadd.s32 %v3408_v8, %v3404_v45  ;;  %v3567_v56 = vadd.s32 1, %v4442_v17  ;;  %v3665_v46 = vshrl.u32 %v3664_v60, 23 }
 0x3f6   : > { %v3525_v29 = vsub.s32 32, %v3524_v42  ;;  %v3529_v47 = vsub.s32 4294967266, %v3524_v42  ;;  %4773 = vsinq.f32 %v3229_v62  ;;  %v7922_v51 = vadd.s32 3, %v3542_v18 }
 0x3f7   : > { %v3410_v23 = vadd.s32 536870912, %v3409_v61  ;;  %vm3568_vm3 = vcmp.gt.s32.totalorder %v3567_v56, 0  ;;  %4775 = vcosq.f32 %v7920_v59  ;;  %v3526_v28 = vshll.u32 %v7842_v32, %v3524_v42 }
 0x3f8   : > { %8842 = vst [vmem:[#allocation45_spill] sm:$0xff] %v7922_v51  ;;  %v3527_v54 = vshrl.u32 %v3509_v44, %v3525_v29  ;;  %v3530_v41 = vadd.s32 127, %v3529_v47  ;;  %v3569_v27 = vsel %vm3568_vm3, %v3567_v56, 0  ;;  %v7930_v26 = vadd.f32 %v7412_v30, %v7882_v16 }
 0x3f9   : > { %v7926_v53 = vshrl.u32 %v3410_v23, 30  ;;  %v3571_v1 = vand.u32 31, %v3569_v27  ;;  %v7932_v20 = vpop.eup %4769  ;;  %v7934_v45 = vshll.u32 %v3565_v9, 8  ;;  %v4446_v60 = vadd.s32 4294967169, %v3665_v46 }
 0x3fa   : > { %v3531_v62 = vshll.u32 %v3530_v41, 23  ;;  %v3528_v44 = vor.u32 %v3527_v54, %v3526_v28  ;;  %v3570_v8 = vshrl.u32 %v3569_v27, 5  ;;  %4777 = vsinq.f32 %v7920_v59 }
 0x3fb   : > { %8843 = vst [vmem:[#allocation48_spill] sm:$0xff] %v7926_v53  ;;  %v3412_v18 = vshll.u32 %v7926_v53, 30  ;;  %v3572_v32 = vsub.s32 32, %v3571_v1  ;;  %v7938_v42 = vpop.eup %4771  ;;  %v3574_v29 = vshll.u32 %v8694_v15, %v3571_v1  ;;  %v3577_v30 = vshll.u32 %v8687_v50, %v3571_v1 }
 0x3fc   : > { %8844 = vst [vmem:[#allocation10_spill] sm:$0xff] %v7938_v42  ;;  %v3532_v56 = vor.u32 4788187, %v3531_v62  ;;  %v3580_v47 = vshll.u32 %v8688_v12, %v3571_v1  ;;  %v3583_v54 = vshll.u32 %v8681_v55, %v3571_v1  ;;  %v3586_v62 = vshll.u32 %v8690_v21, %v3571_v1 }
 0x3fd   : > { %v7943_v23 = vsub.s32 %v3409_v61, %v3412_v18  ;;  %v3575_v9 = vshrl.u32 %v8687_v50, %v3572_v32  ;;  %v3578_v46 = vshrl.u32 %v8688_v12, %v3572_v32  ;;  %v3581_v27 = vshrl.u32 %v8681_v55, %v3572_v32 }
 0x3fe   : > { %v3533_v41 = vand.u32 2147483647, %v3532_v56  ;;  %v3584_v28 = vshrl.u32 %v8690_v21, %v3572_v32  ;;  %v3587_v61 = vshrl.u32 %v8672_v52, %v3572_v32  ;;  %v3535_v18 = vcvt.s32.f32 %v3528_v44 }
 0x3ff   : > { %v3415_v10 = vsub.s32 0, %v7943_v23  ;;  %v3576_v17 = vor.u32 %v3575_v9, %v3574_v29  ;;  %v3579_v51 = vor.u32 %v3578_v46, %v3577_v30  ;;  %v3582_v13 = vor.u32 %v3581_v27, %v3580_v47 }
 0x400   : > { %v3585_v38 = vor.u32 %v3584_v28, %v3583_v54  ;;  %v8845_v53 = vand.u32 2147483647, %v7897_v22  ;;  %v7955_v34 = vpop.eup %4773  ;;  %v3588_v7 = vor.u32 %v3587_v61, %v3586_v62  ;;  %vm3589_vm6 = vcmp.lt.s32.totalorder %v3570_v8, 1 }
 0x401   : > { %v4435_v56 = vmin.u32 %v3415_v10, %v7943_v23  ;;  %v3671_v42 = vadd.s32 1, %v4446_v60  ;;  %v7958_v1 = vpop.eup %4775  ;;  %v3536_v3 = vmul.f32 %v3535_v18, %v3533_v41  ;;  %v3573_v29 = vshrl.u32 %v8694_v15, %v3572_v32 }
 0x402   : > { %v3668_v25 = vand.u32 8388607, %v8845_v53  ;;  %8846 = vst [vmem:[#allocation44_spill] sm:$0xff] %v7958_v1  ;;  %vm3592_vm4 = vcmp.lt.s32.totalorder %v3570_v8, 4  ;;  %v3597_v44 = vsel %vm3589_vm6, %v3576_v17, %v3579_v51  ;;  %vm3591_vm1 = vcmp.lt.s32.totalorder %v3570_v8, 3 }
 0x403   : > { %v3417_v30 = vclz %v4435_v56  ;;  %v3594_v47 = vsel %vm3592_vm4, %v3582_v13, 2102212464  ;;  %v3598_v9 = vsel %vm3592_vm4, %v3585_v38, 920167782  ;;  %vm3590_vm12 = vcmp.lt.s32.totalorder %v3570_v8, 2 }
 0x404   : > { %v3599_v53 = vsel %vm3591_vm1, %v3582_v13, %v3598_v9  ;;  %v3601_v46 = vsel %vm3589_vm6, %v3579_v51, %v3582_v13  ;;  %v3602_v10 = vsel %vm3592_vm4, %v3588_v7, 1326507024  ;;  %v3405_v60 = vadd.s32 %v7873_v14, %v7889_v6 }
 0x405   : > { %v4436_v54 = vadd.s32 4294967294, %v3417_v30  ;;  %v3593_v41 = vsel %vm3589_vm6, %v3573_v29, %v3576_v17  ;;  %v3600_v32 = vsel %vm3590_vm12, %v3597_v44, %v3599_v53  ;;  %v3595_v27 = vsel %vm3591_vm1, %v3579_v51, %v3594_v47 }
 0x406   : > { %v3603_v28 = vsel %vm3591_vm1, %v3585_v38, %v3602_v10  ;;  %v7968_v62 = vmul.u32.u64.low %v7934_v45, %v3600_v32  ;;  %v7969_v61 = vmul.u32.u64.high %v7934_v45, %v3600_v32, %v7968_v62  ;;  %v3537_v18 = vxor.u32 2147483648, %v3536_v3 }
 0x407   : > { %vm4437_vm7 = vcmp.lt.s32.totalorder %v4436_v54, 0  ;;  %v3604_v13 = vsel %vm3590_vm12, %v3601_v46, %v3603_v28  ;;  %v3669_v7 = vor.u32 8388608, %v3668_v25  ;;  %vm3672_vm3 = vcmp.gt.s32.totalorder %v3671_v42, 0 }
 0x408   : > { %v3420_v56 = vsel %vm4437_vm7, 0, %v4436_v54  ;;  %v7974_v14 = vmul.u32.u64.low %v7934_v45, %v3604_v13  ;;  %v7975_v6 = vmul.u32.u64.high %v7934_v45, %v3604_v13, %v7974_v14  ;;  %v3596_v38 = vsel %vm3590_vm12, %v3593_v41, %v3595_v27 }
 0x409   : > { %v3421_v17 = vsub.s32 32, %v3420_v56  ;;  %v3425_v29 = vsub.s32 4294967266, %v3420_v56  ;;  %v3673_v51 = vsel %vm3672_vm3, %v3671_v42, 0  ;;  %v3615_v44 = vadd.s32 1, %v7969_v61 }
 0x40a   : > { %v3675_v30 = vand.u32 31, %v3673_v51  ;;  %v7982_v9 = vadd.f32 %v7543_v0, %v7882_v16  ;;  %v3422_v25 = vshll.u32 %v7943_v23, %v3420_v56  ;;  %v7985_v10 = vshll.u32 %v3669_v7, 8 }
 0x40b   : > { %v3423_v53 = vshrl.u32 %v3405_v60, %v3421_v17  ;;  %v3426_v46 = vadd.s32 127, %v3425_v29  ;;  %v3538_v8 = vsel %vm3455_vm8, %v3537_v18, %v3536_v3  ;;  %v3612_v42 = vmul.u32 %v7934_v45, %v3596_v38 }
 0x40c   : > { %vm3614_vm6 = vc.u32 %v7975_v6, %v7968_v62  ;;  %v3676_v54 = vsub.s32 32, %v3675_v30  ;;  %v3678_v27 = vshll.u32 %v8694_v15, %v3675_v30  ;;  %v3681_v28 = vshll.u32 %v8687_v50, %v3675_v30 }
 0x40d   : > { %v3424_v41 = vor.u32 %v3423_v53, %v3422_v25  ;;  %v3427_v32 = vshll.u32 %v3426_v46, 23  ;;  %v3616_v0 = vsel %vm3614_vm6, %v3615_v44, %v7969_v61  ;;  %v3674_v18 = vshrl.u32 %v3673_v51, 5 }
 0x40e   : > { %v3617_v23 = vadd.s32 %v3616_v0, %v3612_v42  ;;  %v3679_v60 = vshrl.u32 %v8687_v50, %v3676_v54  ;;  %v3682_v13 = vshrl.u32 %v8688_v12, %v3676_v54  ;;  %v3684_v45 = vshll.u32 %v8688_v12, %v3675_v30 }
 0x40f   : > { %v3428_v3 = vor.u32 4788187, %v3427_v32  ;;  %v3685_v7 = vshrl.u32 %v8681_v55, %v3676_v54  ;;  %vm8642_vm8 = vcmp.lt.s32.totalorder %v7674_v35, 0  ;;  %v3431_v56 = vcvt.s32.f32 %v3424_v41 }
 0x410   : > { %v3618_v14 = vadd.s32 536870912, %v3617_v23  ;;  %v3680_v61 = vor.u32 %v3679_v60, %v3678_v27  ;;  %v3683_v17 = vor.u32 %v3682_v13, %v3681_v28  ;;  %v3687_v44 = vshll.u32 %v8681_v55, %v3675_v30 }
 0x411   : > { %v3429_v29 = vand.u32 2147483647, %v3428_v3  ;;  %v3686_v38 = vor.u32 %v3685_v7, %v3684_v45  ;;  %v3688_v25 = vshrl.u32 %v8690_v21, %v3676_v54  ;;  %v3690_v51 = vshll.u32 %v8690_v21, %v3675_v30 }
 0x412   : > { %v8002_v53 = vshrl.u32 %v3618_v14, 30  ;;  %v3691_v46 = vshrl.u32 %v8672_v52, %v3676_v54  ;;  %v3872_v42 = vand.u32 2139095040, %v7930_v26  ;;  %v8848_v32 = vand.u32 2147483647, %v7674_v35 }
 0x413   : > { %v3432_v0 = vmul.f32 %v3431_v56, %v3429_v29  ;;  %v3677_v27 = vshrl.u32 %v8694_v15, %v3676_v54  ;;  %v3689_v60 = vor.u32 %v3688_v25, %v3687_v44  ;;  %vm3693_vm1 = vcmp.lt.s32.totalorder %v3674_v18, 1 }
 0x414   : > { %8847 = vst [vmem:[#allocation46_spill] sm:$0xff] %v8002_v53  ;;  %vm8009_vm4 = vcmp.le.f32.partialorder %v8848_v32, 0.7853982  ;;  %v3620_v28 = vshll.u32 %v8002_v53, 30  ;;  %v3692_v13 = vor.u32 %v3691_v46, %v3690_v51  ;;  %vm3695_vm12 = vcmp.lt.s32.totalorder %v3674_v18, 3 }
 0x415   : > { %vm3696_vm7 = vcmp.lt.s32.totalorder %v3674_v18, 4  ;;  %v3433_v30 = vxor.u32 2147483648, %v3432_v0  ;;  %v3701_v45 = vsel %vm3693_vm1, %v3680_v61, %v3683_v17  ;;  %vm3694_vm3 = vcmp.lt.s32.totalorder %v3674_v18, 2 }
 0x416   : > { %v3698_v3 = vsel %vm3696_vm7, %v3686_v38, 2102212464  ;;  %v3702_v7 = vsel %vm3696_vm7, %v3689_v60, 920167782  ;;  %v8015_v14 = vsub.s32 %v3617_v23, %v3620_v28  ;;  %v3705_v47 = vsel %vm3693_vm1, %v3683_v17, %v3686_v38 }
 0x417   : > { %v3703_v32 = vsel %vm3695_vm12, %v3686_v38, %v3702_v7  ;;  %v3541_v54 = vsel %vm7855_vm11, %v7562_v40, %v3538_v8  ;;  %v3697_v56 = vsel %vm3693_vm1, %v3677_v27, %v3680_v61  ;;  %v3706_v44 = vsel %vm3696_vm7, %v3692_v13, 1326507024 }
 0x418   : > { %v3704_v29 = vsel %vm3694_vm3, %v3701_v45, %v3703_v32  ;;  %v3623_v25 = vsub.s32 0, %v8015_v14  ;;  %v3699_v51 = vsel %vm3695_vm12, %v3683_v17, %v3698_v3  ;;  %v3707_v46 = vsel %vm3695_vm12, %v3689_v60, %v3706_v44 }
 0x419   : > { %v3873_v23 = vshrl.u32 %v3872_v42, 23  ;;  %v3434_v28 = vsel %vm8642_vm8, %v3433_v30, %v3432_v0  ;;  %v3708_v38 = vsel %vm3694_vm3, %v3705_v47, %v3707_v46  ;;  %v8851_v17 = vand.u32 2147483647, %v7930_v26 }
 0x41a   : > { %v8029_v7 = vmul.u32.u64.low %v7985_v10, %v3704_v29  ;;  %v8030_v4 = vmul.u32.u64.high %v7985_v10, %v3704_v29, %v8029_v7  ;;  %v4443_v8 = vmin.u32 %v3623_v25, %v8015_v14  ;;  %v3700_v42 = vsel %vm3694_vm3, %v3697_v56, %v3699_v51 }
 0x41b   : > { %v8035_v61 = vmul.u32.u64.low %v7985_v10, %v3708_v38  ;;  %v8036_v27 = vmul.u32.u64.high %v7985_v10, %v3708_v38, %v8035_v61  ;;  %v3876_v60 = vand.u32 8388607, %v8851_v17  ;;  %v4454_v0 = vadd.s32 4294967169, %v3873_v23 }
 0x41c   : > { %v8044_v47 = vadd.f32 %v7606_v49, %v7882_v16  ;;  %4779 = vcosq.f32 %v3541_v54  ;;  %v3437_v13 = vsel %vm8009_vm4, %v7674_v35, %v3434_v28  ;;  %v3625_v30 = vclz %v4443_v8 }
 0x41d   : > { %v3768_v3 = vand.u32 2139095040, %v7982_v9  ;;  %4781 = vsinq.f32 %v3541_v54  ;;  %v3613_v45 = vadd.s32 %v7968_v62, %v7975_v6  ;;  %v3719_v59 = vadd.s32 1, %v8030_v4 }
 0x41e   : > { %v3879_v18 = vadd.s32 1, %v4454_v0  ;;  %v4444_v32 = vadd.s32 4294967294, %v3625_v30  ;;  %v3716_v56 = vmul.u32 %v7985_v10, %v3700_v42  ;;  %vm3718_vm11 = vc.u32 %v8036_v27, %v8029_v7 }
 0x41f   : > { %v3877_v49 = vor.u32 8388608, %v3876_v60  ;;  %4783 = vcosq.f32 %v3437_v13  ;;  %v3720_v16 = vsel %vm3718_vm11, %v3719_v59, %v8030_v4  ;;  %v3769_v29 = vshrl.u32 %v3768_v3, 23 }
 0x420   : > { %vm3880_vm6 = vcmp.gt.s32.totalorder %v3879_v18, 0  ;;  %4785 = vsinq.f32 %v3437_v13  ;;  %vm4445_vm1 = vcmp.lt.s32.totalorder %v4444_v32, 0  ;;  %v3721_v54 = vadd.s32 %v3720_v16, %v3716_v56  ;;  %v8066_v13 = vpop.eup %4777 }
 0x421   : > { %v3881_v44 = vsel %vm3880_vm6, %v3879_v18, 0  ;;  %v3628_v62 = vsel %vm4445_vm1, 0, %v4444_v32  ;;  %vm3663_vm12 = vcmp.lt.s32.totalorder %v7897_v22, 0  ;;  %v8060_v28 = vshll.u32 %v3877_v49, 8  ;;  %8852 = vst [vmem:[#allocation36_spill] sm:$0xff] %v8066_v13 }
 0x422   : > { %v3883_v6 = vand.u32 31, %v3881_v44  ;;  %v3629_v51 = vsub.s32 32, %v3628_v62  ;;  %v3633_v46 = vsub.s32 4294967266, %v3628_v62  ;;  %v3722_v23 = vadd.s32 536870912, %v3721_v54 }
 0x423   : > { %v3630_v38 = vshll.u32 %v8015_v14, %v3628_v62  ;;  %v8063_v4 = vshrl.u32 %v3881_v44, 5  ;;  %v4450_v61 = vadd.s32 4294967169, %v3769_v29  ;;  %v8855_v29 = vand.u32 2147483647, %v7897_v22 }
 0x424   : > { %v3884_v8 = vsub.s32 32, %v3883_v6  ;;  %v3631_v17 = vshrl.u32 %v3613_v45, %v3629_v51  ;;  %v3634_v60 = vadd.s32 127, %v3633_v46  ;;  %v3723_v42 = vshrl.u32 %v3722_v23, 30 }
 0x425   : > { %v3886_v0 = vshll.u32 %v8694_v15, %v3883_v6  ;;  %v3892_v59 = vshll.u32 %v8688_v12, %v3883_v6  ;;  %vm8078_vm7 = vcmp.le.f32.partialorder %v8855_v29, 0.7853982  ;;  %v3889_v51 = vshll.u32 %v8687_v50, %v3883_v6 }
 0x426   : > { %v3887_v30 = vshrl.u32 %v8687_v50, %v3884_v8  ;;  %v3890_v3 = vshrl.u32 %v8688_v12, %v3884_v8  ;;  %v3893_v18 = vshrl.u32 %v8681_v55, %v3884_v8  ;;  %v8072_v14 = vpop.eup %4779  ;;  %v3632_v32 = vor.u32 %v3631_v17, %v3630_v38 }
 0x427   : > { %8853 = vst [vmem:[#allocation41_spill] sm:$0xff] %v8072_v14  ;;  %v3635_v56 = vshll.u32 %v3634_v60, 23  ;;  %v3724_v49 = vshll.u32 %v3723_v42, 30  ;;  %v3747_v45 = vsub.s32 4, %v3723_v42  ;;  %v8074_v16 = vpop.eup %4781  ;;  %v3885_v62 = vshrl.u32 %v8694_v15, %v3884_v8 }
 0x428   : > { %8854 = vst [vmem:[#allocation7_spill] sm:$0xff] %v8074_v16  ;;  %v3895_v46 = vshll.u32 %v8681_v55, %v3883_v6  ;;  %v3896_v23 = vshrl.u32 %v8690_v21, %v3884_v8  ;;  %v3888_v60 = vor.u32 %v3887_v30, %v3886_v0  ;;  %v3894_v10 = vor.u32 %v3893_v18, %v3892_v59 }
 0x429   : > { %v3636_v38 = vor.u32 4788187, %v3635_v56  ;;  %v8086_v17 = vsub.s32 %v3721_v54, %v3724_v49  ;;  %v8088_v25 = vpop.eup %4783  ;;  %vm8645_vm3 = vcmp.lt.s32.totalorder %v7765_v39, 0  ;;  %v3891_v29 = vor.u32 %v3890_v3, %v3889_v51 }
 0x42a   : > { %v3897_v40 = vor.u32 %v3896_v23, %v3895_v46  ;;  %v3898_v14 = vshll.u32 %v8690_v21, %v3883_v6  ;;  %v3899_v16 = vshrl.u32 %v8672_v52, %v3884_v8  ;;  %v8093_v1 = vpop.eup %4785  ;;  %v3639_v53 = vcvt.s32.f32 %v3632_v32 }
 0x42b   : > { %v3637_v13 = vand.u32 2147483647, %v3636_v38  ;;  %v3727_v56 = vsub.s32 0, %v8086_v17  ;;  %v3748_v54 = vsel %vm3663_vm12, %v3747_v45, %v3723_v42  ;;  %vm3901_vm11 = vcmp.lt.s32.totalorder %v8063_v4, 1 }
 0x42c   : > { %v3900_v0 = vor.u32 %v3899_v16, %v3898_v14  ;;  %vm3902_vm6 = vcmp.lt.s32.totalorder %v8063_v4, 2  ;;  %vm3904_vm1 = vcmp.lt.s32.totalorder %v8063_v4, 4  ;;  %v8858_v6 = vand.u32 2147483647, %v7765_v39 }
 0x42d   : > { %v8859_v8 = vmov 0  ;;  %v3640_v30 = vmul.f32 %v3639_v53, %v3637_v13  ;;  %v4447_v3 = vmin.u32 %v3727_v56, %v8086_v17  ;;  %vm3903_vm9 = vcmp.lt.s32.totalorder %v8063_v4, 3 }
 0x42e   : > { %vm8103_vm8 = vcmp.le.f32.partialorder %v8858_v6, 0.7853982  ;;  %v3906_v59 = vsel %vm3904_vm1, %v3894_v10, 2102212464  ;;  %v3905_v42 = vsel %vm3901_vm11, %v3885_v62, %v3888_v60  ;;  %v3909_v14 = vsel %vm3901_vm11, %v3888_v60, %v3891_v29 }
 0x42f   : > { %v8860_v8 = vsel %vm8103_vm8, 4294967295, %v8859_v8  ;;  %v3907_v18 = vsel %vm3903_vm9, %v3891_v29, %v3906_v59  ;;  %v3910_v32 = vsel %vm3904_vm1, %v3897_v40, 920167782  ;;  %v3641_v49 = vxor.u32 2147483648, %v3640_v30 }
 0x430   : > { %8861 = vst [vmem:[#allocation21_spill] sm:$0xff] %v8860_v8  ;;  %v3729_v45 = vclz %v4447_v3  ;;  %v3911_v16 = vsel %vm3903_vm9, %v3894_v10, %v3910_v32  ;;  %v3913_v51 = vsel %vm3901_vm11, %v3891_v29, %v3894_v10  ;;  %v3914_v13 = vsel %vm3904_vm1, %v3900_v0, 1326507024 }
 0x431   : > { %v3912_v53 = vsel %vm3902_vm6, %v3909_v14, %v3911_v16  ;;  %v8862_v46 = vand.u32 2147483647, %v7982_v9  ;;  %v3775_v62 = vadd.s32 1, %v4450_v61  ;;  %v3717_v38 = vadd.s32 %v8029_v7, %v8036_v27 }
 0x432   : > { %v4448_v60 = vadd.s32 4294967294, %v3729_v45  ;;  %v3750_v56 = vsel %vm8078_vm7, 0, %v3748_v54  ;;  %v3915_v6 = vsel %vm3903_vm9, %v3897_v40, %v3914_v13  ;;  %v3908_v10 = vsel %vm3902_vm6, %v3905_v42, %v3907_v18 }
 0x433   : > { %v8117_v23 = vand.u32 8388607, %v8862_v46  ;;  %v3916_v29 = vsel %vm3902_vm6, %v3913_v51, %v3915_v6  ;;  %v8130_v0 = vmul.u32.u64.low %v8060_v28, %v3912_v53  ;;  %v8131_v3 = vmul.u32.u64.high %v8060_v28, %v3912_v53, %v8130_v0 }
 0x434   : > { %v3642_v7 = vsel %vm8645_vm3, %v3641_v49, %v3640_v30  ;;  %vm4449_vm11 = vcmp.lt.s32.totalorder %v4448_v60, 0  ;;  %v8137_v27 = vmul.u32.u64.low %v8060_v28, %v3916_v29  ;;  %v8138_v61 = vmul.u32.u64.high %v8060_v28, %v3916_v29, %v8137_v27 }
 0x435   : > { %v3732_v40 = vsel %vm4449_vm11, 0, %v4448_v60  ;;  %v8140_v54 = vadd.s32 3, %v3750_v56  ;;  %vm3776_vm9 = vcmp.gt.s32.totalorder %v3775_v62, 0  ;;  %v3924_v18 = vmul.u32 %v8060_v28, %v3908_v10 }
 0x436   : > { %v3733_v4 = vsub.s32 32, %v3732_v40  ;;  %v3737_v42 = vsub.s32 4294967266, %v3732_v40  ;;  %v3777_v14 = vsel %vm3776_vm9, %v3775_v62, 0  ;;  %v3645_v30 = vsel %vm8103_vm8, %v7765_v39, %v3642_v7 }
 0x437   : > { %8863 = vst [vmem:[#allocation17_spill] sm:$0xff] %v8140_v54  ;;  %v3927_v32 = vadd.s32 1, %v8131_v3  ;;  %v3779_v49 = vand.u32 31, %v3777_v14  ;;  %v3976_v45 = vand.u32 2139095040, %v8044_v47  ;;  %v3734_v16 = vshll.u32 %v8086_v17, %v3732_v40 }
 0x438   : > { %v3735_v51 = vshrl.u32 %v3717_v38, %v3733_v4  ;;  %v3738_v53 = vadd.s32 127, %v3737_v42  ;;  %vm3926_vm6 = vc.u32 %v8138_v61, %v8130_v0  ;;  %v3778_v28 = vshrl.u32 %v3777_v14, 5 }
 0x439   : > { %v3928_v13 = vsel %vm3926_vm6, %v3927_v32, %v8131_v3  ;;  %v3780_v46 = vsub.s32 32, %v3779_v49  ;;  %v3782_v62 = vshll.u32 %v8694_v15, %v3779_v49  ;;  %v3785_v10 = vshll.u32 %v8687_v50, %v3779_v49 }
 0x43a   : > { %v3736_v60 = vor.u32 %v3735_v51, %v3734_v16  ;;  %v3739_v56 = vshll.u32 %v3738_v53, 23  ;;  %v3929_v6 = vadd.s32 %v3928_v13, %v3924_v18  ;;  %v3788_v38 = vshll.u32 %v8688_v12, %v3779_v49 }
 0x43b   : > { %v3783_v29 = vshrl.u32 %v8687_v50, %v3780_v46  ;;  %v3786_v17 = vshrl.u32 %v8688_v12, %v3780_v46  ;;  %v3789_v7 = vshrl.u32 %v8681_v55, %v3780_v46  ;;  %vm3871_vm1 = vcmp.lt.s32.totalorder %v7930_v26, 0 }
 0x43c   : > { %v3740_v27 = vor.u32 4788187, %v3739_v56  ;;  %v3743_v40 = vcvt.s32.f32 %v3736_v60  ;;  %v3930_v3 = vadd.s32 536870912, %v3929_v6  ;;  %v3791_v4 = vshll.u32 %v8681_v55, %v3779_v49 }
 0x43d   : > { %v3784_v42 = vor.u32 %v3783_v29, %v3782_v62  ;;  %v3787_v14 = vor.u32 %v3786_v17, %v3785_v10  ;;  %v3790_v18 = vor.u32 %v3789_v7, %v3788_v38  ;;  %v3792_v32 = vshrl.u32 %v8690_v21, %v3780_v46 }
 0x43e   : > { %v3741_v16 = vand.u32 2147483647, %v3740_v27  ;;  %v3931_v51 = vshrl.u32 %v3930_v3, 30  ;;  %v3794_v53 = vshll.u32 %v8690_v21, %v3779_v49  ;;  %v3795_v13 = vshrl.u32 %v8672_v52, %v3780_v46 }
 0x43f   : > { %4787 = vcosq.f32 %v3645_v30  ;;  %v3781_v56 = vshrl.u32 %v8694_v15, %v3780_v46  ;;  %v3793_v60 = vor.u32 %v3792_v32, %v3791_v4  ;;  %v3977_v59 = vshrl.u32 %v3976_v45, 23 }
 0x440   : > { %v3744_v54 = vmul.f32 %v3743_v40, %v3741_v16  ;;  %v8864_v8 = vand.u32 2147483647, %v7930_v26  ;;  %v3932_v10 = vshll.u32 %v3931_v51, 30  ;;  %v3796_v29 = vor.u32 %v3795_v13, %v3794_v53 }
 0x441   : > { %vm3797_vm9 = vcmp.lt.s32.totalorder %v3778_v28, 1  ;;  %v3955_v17 = vsub.s32 4, %v3931_v51  ;;  %vm3799_vm6 = vcmp.lt.s32.totalorder %v3778_v28, 3  ;;  %vm3800_vm3 = vcmp.lt.s32.totalorder %v3778_v28, 4 }
 0x442   : > { %vm8167_vm11 = vcmp.le.f32.partialorder %v8864_v8, 0.7853982  ;;  %v3801_v49 = vsel %vm3797_vm9, %v3781_v56, %v3784_v42  ;;  %v3745_v38 = vxor.u32 2147483648, %v3744_v54  ;;  %v8171_v7 = vsub.s32 %v3929_v6, %v3932_v10 }
 0x443   : > { %v3802_v46 = vsel %vm3800_vm3, %v3790_v18, 2102212464  ;;  %v3805_v27 = vsel %vm3797_vm9, %v3784_v42, %v3787_v14  ;;  %v3806_v40 = vsel %vm3800_vm3, %v3793_v60, 920167782  ;;  %v3809_v3 = vsel %vm3797_vm9, %v3787_v14, %v3790_v18 }
 0x444   : > { %v3803_v45 = vsel %vm3799_vm6, %v3787_v14, %v3802_v46  ;;  %v3810_v8 = vsel %vm3800_vm3, %v3796_v29, 1326507024  ;;  %4789 = vsinq.f32 %v3645_v30  ;;  %v3746_v4 = vsel %vm3663_vm12, %v3745_v38, %v3744_v54 }
 0x445   : > { %v3935_v32 = vsub.s32 0, %v8171_v7  ;;  %v8867_v16 = vor.u32 8388608, %v8117_v23  ;;  %v8181_v6 = vsel %vm3871_vm1, %v3955_v17, %v3931_v51  ;;  %vm3798_vm13 = vcmp.lt.s32.totalorder %v3778_v28, 2 }
 0x446   : > { %v3807_v42 = vsel %vm3799_vm6, %v3790_v18, %v3806_v40  ;;  %v3811_v13 = vsel %vm3799_vm6, %v3793_v60, %v3810_v8  ;;  %v3804_v30 = vsel %vm3798_vm13, %v3801_v49, %v3803_v45  ;;  %v3749_v54 = vsel %vm8078_vm7, %v7897_v22, %v3746_v4  ;;  %v8869_v45 = vld [vmem:[#allocation20_spill] sm:$0xff] }
 0x447   : > { %v3813_v53 = vshll.u32 %v8867_v16, 8  ;;  %v4455_v14 = vmin.u32 %v3935_v32, %v8171_v7  ;;  %v3808_v56 = vsel %vm3798_vm13, %v3805_v27, %v3807_v42  ;;  %v3812_v10 = vsel %vm3798_vm13, %v3809_v3, %v3811_v13 }
 0x448   : > { %v4458_v38 = vadd.s32 4294967169, %v3977_v59  ;;  %v8868_v28 = vand.u32 2147483647, %v8044_v47  ;;  %v3925_v49 = vadd.s32 %v8130_v0, %v8138_v61  ;;  %v2603_v59 = vsub.s32 4, %v8869_v45 }
 0x449   : > { %v8189_v23 = vmul.u32.u64.low %v3813_v53, %v3812_v10  ;;  %v8190_v29 = vmul.u32.u64.high %v3813_v53, %v3812_v10, %v8189_v23  ;;  %v3937_v51 = vclz %v4455_v14  ;;  %v8198_v60 = vpop.eup %4787  ;;  %4791 = vcosq.f32 %v3749_v54 }
 0x44a   : > { %v8192_v17 = vmul.u32.u64.low %v3813_v53, %v3808_v56  ;;  %v8193_v46 = vmul.u32.u64.high %v3813_v53, %v3808_v56, %v8192_v17  ;;  %v3980_v18 = vand.u32 8388607, %v8868_v28  ;;  %v3983_v27 = vadd.s32 1, %v4458_v38 }
 0x44b   : > { %v4456_v40 = vadd.s32 4294967294, %v3937_v51  ;;  %v3820_v3 = vmul.u32 %v3813_v53, %v3804_v30  ;;  %4793 = vsinq.f32 %v3749_v54  ;;  %v8211_v0 = vsel %vm2519_vm0, %v2603_v59, %v8869_v45 }
 0x44c   : > { %v3981_v8 = vor.u32 8388608, %v3980_v18  ;;  %vm3822_vm13 = vc.u32 %v8190_v29, %v8192_v17  ;;  %vm3984_vm12 = vcmp.gt.s32.totalorder %v3983_v27, 0  ;;  %v3823_v61 = vadd.s32 1, %v8193_v46 }
 0x44d   : > { %vm4457_vm7 = vcmp.lt.s32.totalorder %v4456_v40, 0  ;;  %v3985_v4 = vsel %vm3984_vm12, %v3983_v27, 0  ;;  %v2606_v54 = vsel %vm7324_vm5, 0, %v8211_v0  ;;  %vm2609_vm6 = vweird.f32 %v6954_v19 }
 0x44e   : > { %v3940_v16 = vsel %vm4457_vm7, 0, %v4456_v40  ;;  %v3986_v42 = vshrl.u32 %v3985_v4, 5  ;;  %v3987_v53 = vand.u32 31, %v3985_v4  ;;  %v8215_v13 = vshll.u32 %v3981_v8, 8  ;;  %v8217_v14 = vpop.eup %4789 }
 0x44f   : > { %v3941_v30 = vsub.s32 32, %v3940_v16  ;;  %v3945_v56 = vsub.s32 4294967266, %v3940_v16  ;;  %v3824_v10 = vsel %vm3822_vm13, %v3823_v61, %v8193_v46  ;;  %v3942_v23 = vshll.u32 %v8171_v7, %v3940_v16 }
 0x450   : > { %v3825_v38 = vadd.s32 %v3824_v10, %v3820_v3  ;;  %v3988_v51 = vsub.s32 32, %v3987_v53  ;;  %v3990_v28 = vshll.u32 %v8694_v15, %v3987_v53  ;;  %v3993_v45 = vshll.u32 %v8687_v50, %v3987_v53 }
 0x451   : > { %v3943_v18 = vshrl.u32 %v3925_v49, %v3941_v30  ;;  %v3946_v27 = vadd.s32 127, %v3945_v56  ;;  %v3996_v59 = vshll.u32 %v8688_v12, %v3987_v53  ;;  %v3999_v5 = vshll.u32 %v8681_v55, %v3987_v53 }
 0x452   : > { %v3826_v40 = vadd.s32 536870912, %v3825_v38  ;;  %v3991_v8 = vshrl.u32 %v8687_v50, %v3988_v51  ;;  %v3994_v46 = vshrl.u32 %v8688_v12, %v3988_v51  ;;  %v3997_v7 = vshrl.u32 %v8681_v55, %v3988_v51 }
 0x453   : > { %v3944_v0 = vor.u32 %v3943_v18, %v3942_v23  ;;  %v3947_v61 = vshll.u32 %v3946_v27, 23  ;;  %v4000_v3 = vshrl.u32 %v8690_v21, %v3988_v51  ;;  %v3989_v49 = vshrl.u32 %v8694_v15, %v3988_v51  ;;  %v8235_v56 = vpop.eup %4791 }
 0x454   : > { %v8232_v4 = vshrl.u32 %v3826_v40, 30  ;;  %v3992_v16 = vor.u32 %v3991_v8, %v3990_v28  ;;  %v3995_v30 = vor.u32 %v3994_v46, %v3993_v45  ;;  %v3998_v50 = vor.u32 %v3997_v7, %v3996_v59 }
 0x455   : > { %v3948_v10 = vor.u32 4788187, %v3947_v61  ;;  %v4001_v44 = vor.u32 %v4000_v3, %v3999_v5  ;;  %v4002_v12 = vshll.u32 %v8690_v21, %v3987_v53  ;;  %v8238_v32 = vpop.eup %4793  ;;  %v3951_v23 = vcvt.s32.f32 %v3944_v0 }
 0x456   : > { %v3828_v55 = vshll.u32 %v8232_v4, 30  ;;  %v4003_v18 = vshrl.u32 %v8672_v52, %v3988_v51  ;;  %vm4005_vm0 = vcmp.lt.s32.totalorder %v3986_v42, 1  ;;  %vm4007_vm5 = vcmp.lt.s32.totalorder %v3986_v42, 3 }
 0x457   : > { %v3949_v27 = vand.u32 2147483647, %v3948_v10  ;;  %vm4008_vm3 = vcmp.lt.s32.totalorder %v3986_v42, 4  ;;  %v4009_v15 = vsel %vm4005_vm0, %v3989_v49, %v3992_v16  ;;  %v4013_v59 = vsel %vm4005_vm0, %v3992_v16, %v3995_v30 }
 0x458   : > { %v8242_v28 = vsub.s32 %v3825_v38, %v3828_v55  ;;  %v4004_v45 = vor.u32 %v4003_v18, %v4002_v12  ;;  %v4010_v40 = vsel %vm4008_vm3, %v3998_v50, 2102212464  ;;  %v4014_v53 = vsel %vm4008_vm3, %v4001_v44, 920167782 }
 0x459   : > { %v3952_v8 = vmul.f32 %v3951_v23, %v3949_v27  ;;  %v4011_v21 = vsel %vm4007_vm5, %v3995_v30, %v4010_v40  ;;  %v4017_v46 = vsel %vm4005_vm0, %v3995_v30, %v3998_v50  ;;  %vm4006_vm9 = vcmp.lt.s32.totalorder %v3986_v42, 2 }
 0x45a   : > { %v3831_v5 = vsub.s32 0, %v8242_v28  ;;  %v4015_v52 = vsel %vm4007_vm5, %v3998_v50, %v4014_v53  ;;  %v4018_v51 = vsel %vm4008_vm3, %v4004_v45, 1326507024  ;;  %v4012_v61 = vsel %vm4006_vm9, %v4009_v15, %v4011_v21 }
 0x45b   : > { %v3953_v0 = vxor.u32 2147483648, %v3952_v8  ;;  %v4016_v7 = vsel %vm4006_vm9, %v4013_v59, %v4015_v52  ;;  %v4019_v38 = vsel %vm4007_vm5, %v4001_v44, %v4018_v51  ;;  %v2610_v23 = vadd.s32 3, %v2606_v54 }
 0x45c   : > { %v4451_v3 = vmin.u32 %v3831_v5, %v8242_v28  ;;  %v4020_v49 = vsel %vm4006_vm9, %v4017_v46, %v4019_v38  ;;  %v8250_v16 = vmul.u32.u64.low %v8215_v13, %v4016_v7  ;;  %v8251_v10 = vmul.u32.u64.high %v8215_v13, %v4016_v7, %v8250_v16 }
 0x45d   : > { %v3954_v30 = vsel %vm3871_vm1, %v3953_v0, %v3952_v8  ;;  %v8258_v50 = vmul.u32.u64.low %v8215_v13, %v4020_v49  ;;  %v8259_v12 = vmul.u32.u64.high %v8215_v13, %v4020_v49, %v8258_v50  ;;  %v2614_v44 = vxor.u32 2147483648, %v7575_v57 }
 0x45e   : > { %v3833_v42 = vclz %v4451_v3  ;;  %v2617_v55 = vxor.u32 2147483648, %v7565_v43  ;;  %v8870_v18 = vsub.s32 4, %v7577_v31  ;;  %v3821_v15 = vadd.s32 %v8192_v17, %v8190_v29 }
 0x45f   : > { %v4028_v45 = vmul.u32 %v8215_v13, %v4012_v61  ;;  %v2611_v40 = vand.u32 3, %v2610_v23  ;;  %v3957_v59 = vsel %vm8167_vm11, %v7930_v26, %v3954_v30  ;;  %v4031_v21 = vadd.s32 1, %v8251_v10 }
 0x460   : > { %v3020_v27 = vsel %vm2935_vm10, %v8870_v18, %v7577_v31  ;;  %v4452_v8 = vadd.s32 4294967294, %v3833_v42  ;;  %vm4030_vm10 = vc.u32 %v8259_v12, %v8250_v16  ;;  %v3030_v31 = vxor.u32 2147483648, %v7932_v20 }
 0x461   : > { %v3022_v54 = vsel %vm7683_vm15, 0, %v3020_v27  ;;  %vm2612_vm1 = vcmp.lt.s32.totalorder %v2611_v40, 2  ;;  %vm2613_vm13 = vcmp.eq.s32.totalorder %v2611_v40, 0  ;;  %v4032_v29 = vsel %vm4030_vm10, %v4031_v21, %v8251_v10 }
 0x462   : > { %v3026_v53 = vadd.s32 3, %v3022_v54  ;;  %vm4453_vm12 = vcmp.lt.s32.totalorder %v4452_v8, 0  ;;  %v2615_v36 = vsel %vm2613_vm13, %v7565_v43, %v2614_v44  ;;  %vm2616_vm15 = vcmp.eq.s32.totalorder %v2611_v40, 2  ;;  %v8875_v40 = vld [vmem:[#allocation38_spill] sm:$0xff] }
 0x463   : > { %v3836_v17 = vsel %vm4453_vm12, 0, %v4452_v8  ;;  %v4033_v13 = vadd.s32 %v4032_v29, %v4028_v45  ;;  %v2618_v46 = vsel %vm2616_vm15, %v2617_v55, %v7575_v57  ;;  %vm3025_vm7 = vweird.f32 %v7048_v33 }
 0x464   : > { %v3027_v5 = vand.u32 3, %v3026_v53  ;;  %v3837_v52 = vsub.s32 32, %v3836_v17  ;;  %v3841_v51 = vsub.s32 4294967266, %v3836_v17  ;;  %v2619_v0 = vsel %vm2612_vm1, %v2615_v36, %v2618_v46  ;;  %v8885_v36 = vld [vmem:[#allocation22_spill] sm:$0xff] }
 0x465   : > { %4795 = vcosq.f32 %v3957_v59  ;;  %v3838_v61 = vshll.u32 %v8242_v28, %v3836_v17  ;;  %v4034_v7 = vadd.s32 536870912, %v4033_v13  ;;  %v2620_v38 = vsel %vm2609_vm6, nan, %v2619_v0 }
 0x466   : > { %v3839_v3 = vshrl.u32 %v3821_v15, %v3837_v52  ;;  %v3842_v43 = vadd.s32 127, %v3841_v51  ;;  %vm3028_vm0 = vcmp.lt.s32.totalorder %v3027_v5, 2  ;;  %vm3029_vm5 = vcmp.eq.s32.totalorder %v3027_v5, 0  ;;  %v8878_v51 = vld [vmem:[#allocation16_spill] sm:$0xff] }
 0x467   : > { %v8287_v49 = vshrl.u32 %v4034_v7, 30  ;;  %v3031_v57 = vsel %vm3029_vm5, %v7832_v58, %v3030_v31  ;;  %v3033_v10 = vxor.u32 2147483648, %v7832_v58  ;;  %v2811_v30 = vsub.s32 4, %v7291_v11 }
 0x468   : > { %v3840_v50 = vor.u32 %v3839_v3, %v3838_v61  ;;  %v3843_v23 = vshll.u32 %v3842_v43, 23  ;;  %vm3032_vm3 = vcmp.eq.s32.totalorder %v3027_v5, 2  ;;  %v2822_v28 = vxor.u32 2147483648, %v7744_v48 }
 0x469   : > { %vm3767_vm9 = vcmp.lt.s32.totalorder %v7982_v9, 0  ;;  %v4036_v19 = vshll.u32 %v8287_v49, 30  ;;  %v3034_v42 = vsel %vm3032_vm3, %v3033_v10, %v7932_v20  ;;  %vm8871_vm6 = vcmp.lt.s32.totalorder %v7057_v63, 0 }
 0x46a   : > { %v2812_v44 = vsel %vm8871_vm6, %v2811_v30, %v7291_v11  ;;  %v3227_v55 = vsub.s32 4, %v7660_v24  ;;  %v8872_v58 = vand.u32 2147483647, %v7982_v9  ;;  %v3844_v27 = vor.u32 4788187, %v3843_v23 }
 0x46b   : > { %v3035_v15 = vsel %vm3028_vm0, %v3031_v57, %v3034_v42  ;;  %v2814_v45 = vsel %vm7485_vm2, 0, %v2812_v44  ;;  %v2825_v20 = vxor.u32 2147483648, %v8875_v40  ;;  %v8310_v54 = vsub.s32 %v4033_v13, %v4036_v19  ;;  %v8881_v19 = vld [vmem:[#allocation8_spill] sm:$0xff] }
 0x46c   : > { %vm8302_vm10 = vcmp.le.f32.partialorder %v8872_v58, 0.7853982  ;;  %v3036_v11 = vsel %vm3025_vm7, nan, %v3035_v15  ;;  %v2818_v8 = vadd.s32 3, %v2814_v45  ;;  %vm8876_vm1 = vcmp.lt.s32.totalorder %v7481_v37, 0  ;;  %v8882_v58 = vld [vmem:[#allocation14_spill] sm:$0xff] }
 0x46d   : > { %v3228_v21 = vsel %vm8876_vm1, %v3227_v55, %v7660_v24  ;;  %v3845_v53 = vand.u32 2147483647, %v3844_v27  ;;  %v3847_v31 = vcvt.s32.f32 %v3840_v50  ;;  %v4486_v29 = vpack.c.bf16 %v3036_v11, %v2620_v38 }
 0x46e   : > { %v3230_v17 = vsel %vm7824_vm14, 0, %v3228_v21  ;;  %4797 = vsinq.f32 %v3957_v59  ;;  %v4039_v2 = vsub.s32 0, %v8310_v54  ;;  %v2819_v46 = vand.u32 3, %v2818_v8  ;;  %v8879_v59 = vld [vmem:[#allocation10_spill] sm:$0xff] }
 0x46f   : > { %v3234_v13 = vadd.s32 3, %v3230_v17  ;;  %v3848_v5 = vmul.f32 %v3847_v31, %v3845_v53  ;;  %v4029_v33 = vadd.s32 %v8250_v16, %v8259_v12  ;;  %4487 = vmatprep.subr.bf16.mxu0 %v4486_v29  ;;  %v3238_v52 = vxor.u32 2147483648, %v7955_v34  ;;  %v8324_v0 = vpop.eup %4795  ;;  %v8884_v31 = vld [vmem:[#allocation12_spill] sm:$0xff] }
 0x470   : > { %v2507_v24 = vand.u32 3, %v8878_v51  ;;  %v4459_v61 = vmin.u32 %v4039_v2, %v8310_v54  ;;  %vm2821_vm2 = vcmp.eq.s32.totalorder %v2819_v46, 0  ;;  %vm2824_vm14 = vcmp.eq.s32.totalorder %v2819_v46, 2 }
 0x471   : > { %v3241_v7 = vxor.u32 2147483648, %v8879_v59  ;;  %v3849_v38 = vxor.u32 2147483648, %v3848_v5  ;;  %v2823_v3 = vsel %vm2821_vm2, %v8875_v40, %v2822_v28  ;;  %v2826_v43 = vsel %vm2824_vm14, %v2825_v20, %v7744_v48  ;;  %v8880_v28 = vld [vmem:[#allocation13_spill] sm:$0xff] }
 0x472   : > { %v3235_v57 = vand.u32 3, %v3234_v13  ;;  %v4041_v16 = vclz %v4459_v61  ;;  %vm2817_vm13 = vweird.f32 %v7057_v63  ;;  %vm2820_vm12 = vcmp.lt.s32.totalorder %v2819_v46, 2  ;;  %v8883_v63 = vld [vmem:[#allocation40_spill] sm:$0xff]  ;;  %v8886_v13 = vld [vmem:[#allocation47_spill] sm:$0xff] }
 0x473   : > { %vm3233_vm15 = vweird.f32 %v7481_v37  ;;  %v3850_v12 = vsel %vm3767_vm9, %v3849_v38, %v3848_v5  ;;  %v2827_v10 = vsel %vm2820_vm12, %v2823_v3, %v2826_v43  ;;  %vm2508_vm0 = vcmp.lt.s32.totalorder %v2507_v24, 2  ;;  %v8888_v38 = vld [vmem:[#allocation27_spill] sm:$0xff]  ;;  %v8889_v43 = vld [vmem:[#allocation18_spill] sm:$0xff] }
 0x474   : > { %vm3237_vm7 = vcmp.eq.s32.totalorder %v3235_v57, 0  ;;  %v3853_v30 = vsel %vm8302_vm10, %v7982_v9, %v3850_v12  ;;  %v4460_v50 = vadd.s32 4294967294, %v4041_v16  ;;  %vm3240_vm5 = vcmp.eq.s32.totalorder %v3235_v57, 2 }
 0x475   : > { %v3239_v48 = vsel %vm3237_vm7, %v8879_v59, %v3238_v52  ;;  %vm3236_vm3 = vcmp.lt.s32.totalorder %v3235_v57, 2  ;;  %v3242_v23 = vsel %vm3240_vm5, %v3241_v7, %v7955_v34  ;;  %vm2505_vm6 = vweird.f32 %v8880_v28  ;;  %v8894_v28 = vld [vmem:[#allocation34_spill] sm:$0xff] }
 0x476   : > { %vm2509_vm1 = vcmp.eq.s32.totalorder %v2507_v24, 0  ;;  %v2510_v42 = vxor.u32 2147483648, %v8881_v19  ;;  %vm4461_vm2 = vcmp.lt.s32.totalorder %v4460_v50, 0  ;;  %v2828_v44 = vsel %vm2817_vm13, nan, %v2827_v10 }
 0x477   : > { %v3243_v55 = vsel %vm3236_vm3, %v3239_v48, %v3242_v23  ;;  %v2513_v27 = vxor.u32 2147483648, %v8882_v58  ;;  %4799 = vcosq.f32 %v3853_v30  ;;  %v4044_v15 = vsel %vm4461_vm2, 0, %v4460_v50 }
 0x478   : > { %v3244_v45 = vsel %vm3233_vm15, nan, %v3243_v55  ;;  %vm2512_vm14 = vcmp.eq.s32.totalorder %v2507_v24, 2  ;;  %v8346_v40 = vpop.eup %4797  ;;  %v4045_v34 = vsub.s32 32, %v4044_v15  ;;  %v4049_v20 = vsub.s32 4294967266, %v4044_v15 }
 0x479   : > { %v4494_v11 = vpack.c.bf16 %v3244_v45, %v2828_v44  ;;  %v2511_v8 = vsel %vm2509_vm1, %v8882_v58, %v2510_v42  ;;  %v2514_v21 = vsel %vm2512_vm14, %v2513_v27, %v8881_v19  ;;  %v2923_v53 = vand.u32 3, %v8883_v63  ;;  %v8893_v44 = vld [vmem:[#allocation30_spill] sm:$0xff]  ;;  %v8898_v63 = vld [vmem:[#allocation5_spill] sm:$0xff] }
 0x47a   : > { %v2926_v29 = vxor.u32 2147483648, %v8884_v31  ;;  %v2929_v17 = vxor.u32 2147483648, %v8885_v36  ;;  %v4046_v2 = vshll.u32 %v8310_v54, %v4044_v15  ;;  %v4047_v37 = vshrl.u32 %v4029_v33, %v4045_v34  ;;  %v8887_v54 = vld [vmem:[#allocation15_spill] sm:$0xff]  ;;  %v8896_v34 = vld [vmem:[#allocation48_spill] sm:$0xff] }
 0x47b   : > { %v4050_v46 = vadd.s32 127, %v4049_v20  ;;  %4495 = vmatprep.subr.bf16.mxu1 %v4494_v11  ;;  %vm2921_vm13 = vweird.f32 %v8886_v13  ;;  %v2515_v5 = vsel %vm2508_vm0, %v2511_v8, %v2514_v21  ;;  %vm2924_vm12 = vcmp.lt.s32.totalorder %v2923_v53, 2  ;;  %v8895_v15 = vld [vmem:[#allocation43_spill] sm:$0xff]  ;;  %v8897_v8 = vld [vmem:[#allocation6_spill] sm:$0xff] }
 0x47c   : > { %vm2925_vm15 = vcmp.eq.s32.totalorder %v2923_v53, 0  ;;  %vm2928_vm7 = vcmp.eq.s32.totalorder %v2923_v53, 2  ;;  %v4048_v52 = vor.u32 %v4047_v37, %v4046_v2  ;;  %vm3975_vm5 = vcmp.lt.s32.totalorder %v8044_v47, 0 }
 0x47d   : > { %v4051_v51 = vshll.u32 %v4050_v46, 23  ;;  %v2927_v61 = vsel %vm2925_vm15, %v8885_v36, %v2926_v29  ;;  %v2930_v59 = vsel %vm2928_vm7, %v2929_v17, %v8884_v31  ;;  %v2715_v33 = vand.u32 3, %v8887_v54 }
 0x47e   : > { %v2931_v7 = vsel %vm2924_vm12, %v2927_v61, %v2930_v59  ;;  %v2718_v3 = vxor.u32 2147483648, %v8888_v38  ;;  %v2721_v57 = vxor.u32 2147483648, %v8889_v43  ;;  %4801 = vsinq.f32 %v3853_v30 }
 0x47f   : > { %v8890_v24 = vand.u32 2147483647, %v8044_v47  ;;  %v4052_v12 = vor.u32 4788187, %v4051_v51  ;;  %v2516_v10 = vsel %vm2505_vm6, nan, %v2515_v5  ;;  %v2932_v50 = vsel %vm2921_vm13, nan, %v2931_v7 }
 0x480   : > { %v4055_v48 = vcvt.s32.f32 %v4048_v52  ;;  %v4488_v23 = vpack.c.bf16 %v2932_v50, %v2516_v10  ;;  %vm2717_vm3 = vcmp.eq.s32.totalorder %v2715_v33, 0  ;;  %vm2720_vm1 = vcmp.eq.s32.totalorder %v2715_v33, 2 }
 0x481   : > { %vm8364_vm0 = vcmp.le.f32.partialorder %v8890_v24, 0.7853982  ;;  %v4053_v19 = vand.u32 2147483647, %v4052_v12  ;;  %v2719_v30 = vsel %vm2717_vm3, %v8889_v43, %v2718_v3  ;;  %v2722_v42 = vsel %vm2720_vm1, %v2721_v57, %v8888_v38  ;;  %v8375_v58 = vpop.eup %4799  ;;  %v8901_v57 = vld [vmem:[#allocation46_spill] sm:$0xff] }
 0x482   : > { %v3131_v55 = vand.u32 3, %v8893_v44  ;;  %4489 = vmatpush1.bf16.msra.mxu0 %v4488_v23  ;;  %vm2716_vm2 = vcmp.lt.s32.totalorder %v2715_v33, 2  ;;  %v3134_v27 = vxor.u32 2147483648, %v8894_v28  ;;  %v3137_v45 = vxor.u32 2147483648, %v8895_v15 }
 0x483   : > { %v3435_v20 = vsub.s32 4, %v8896_v34  ;;  %v4056_v11 = vmul.f32 %v4055_v48, %v4053_v19  ;;  %vm2713_vm6 = vweird.f32 %v8897_v8  ;;  %v2723_v21 = vsel %vm2716_vm2, %v2719_v30, %v2722_v42 }
 0x484   : > { %vm3133_vm14 = vcmp.eq.s32.totalorder %v3131_v55, 0  ;;  %vm3129_vm13 = vweird.f32 %v8898_v63  ;;  %vm3136_vm12 = vcmp.eq.s32.totalorder %v3131_v55, 2  ;;  %vm8899_vm15 = vcmp.lt.s32.totalorder %v7674_v35, 0 }
 0x485   : > { %v3135_v53 = vsel %vm3133_vm14, %v8895_v15, %v3134_v27  ;;  %v3436_v31 = vsel %vm8899_vm15, %v3435_v20, %v8896_v34  ;;  %v4057_v29 = vxor.u32 2147483648, %v4056_v11  ;;  %vm3132_vm7 = vcmp.lt.s32.totalorder %v3131_v55, 2 }
 0x486   : > { %v3138_v36 = vsel %vm3136_vm12, %v3137_v45, %v8894_v28  ;;  %v3438_v17 = vsel %vm8009_vm4, 0, %v3436_v31  ;;  %v2724_v2 = vsel %vm2713_vm6, nan, %v2723_v21  ;;  %v3851_v13 = vsub.s32 4, %v8232_v4  ;;  %v8904_v28 = vld [vmem:[#allocation49_spill] sm:$0xff] }
 0x487   : > { %v3139_v37 = vsel %vm3132_vm7, %v3135_v53, %v3138_v36  ;;  %v3442_v46 = vadd.s32 3, %v3438_v17  ;;  %v4058_v5 = vsel %vm3975_vm5, %v4057_v29, %v4056_v11  ;;  %v3446_v51 = vxor.u32 2147483648, %v8093_v1 }
 0x488   : > { %v3140_v52 = vsel %vm3129_vm13, nan, %v3139_v37  ;;  %v3449_v61 = vxor.u32 2147483648, %v8088_v25  ;;  %v4061_v59 = vsel %vm8364_vm0, %v8044_v47, %v4058_v5  ;;  %v3852_v54 = vsel %vm3767_vm9, %v3851_v13, %v8232_v4  ;;  %v4802_v33 = vpop.eup %4801 }
 0x489   : > { %v4496_v7 = vpack.c.bf16 %v3140_v52, %v2724_v2  ;;  %v3443_v41 = vand.u32 3, %v3442_v46  ;;  %v8900_v38 = vsel %vm8167_vm11, 0, %v8181_v6  ;;  %4803 = vcosq.f32 %v4061_v59  ;;  %v8908_v46 = vld [vmem:[#allocation17_spill] sm:$0xff] }
 0x48a   : > { %v8404_v3 = vadd.s32 3, %v8900_v38  ;;  %v3854_v43 = vsel %vm8302_vm10, 0, %v3852_v54  ;;  %v3643_v24 = vsub.s32 4, %v8901_v57  ;;  %4805 = vsinq.f32 %v4061_v59 }
 0x48b   : > { %4497 = vmatpush1.bf16.msra.mxu1 %v4496_v7  ;;  %vm3444_vm4 = vcmp.lt.s32.totalorder %v3443_v41, 2  ;;  %vm3445_vm3 = vcmp.eq.s32.totalorder %v3443_v41, 0  ;;  %vm3448_vm1 = vcmp.eq.s32.totalorder %v3443_v41, 2  ;;  %v3858_v62 = vadd.s32 3, %v3854_v43 }
 0x48c   : > { %v3447_v4 = vsel %vm3445_vm3, %v8088_v25, %v3446_v51  ;;  %v3450_v12 = vsel %vm3448_vm1, %v3449_v61, %v8093_v1  ;;  %vm8902_vm11 = vcmp.lt.s32.totalorder %v7765_v39, 0  ;;  %v3862_v50 = vxor.u32 2147483648, %v4802_v33 }
 0x48d   : > { %v3644_v6 = vsel %vm8902_vm11, %v3643_v24, %v8901_v57  ;;  %v3451_v10 = vsel %vm3444_vm4, %v3447_v4, %v3450_v12  ;;  %v3865_v18 = vxor.u32 2147483648, %v8375_v58  ;;  %vm3441_vm9 = vweird.f32 %v7674_v35  ;;  %v8909_v24 = vld [vmem:[#allocation45_spill] sm:$0xff]  ;;  %v8910_v12 = vld [vmem:[#allocation7_spill] sm:$0xff] }
 0x48e   : > { %v3646_v23 = vsel %vm8103_vm8, 0, %v3644_v6  ;;  %vm3857_vm10 = vweird.f32 %v7982_v9  ;;  %v3859_v19 = vand.u32 3, %v3858_v62  ;;  %v3452_v30 = vsel %vm3441_vm9, nan, %v3451_v10  ;;  %v8906_v9 = vld [vmem:[#allocation36_spill] sm:$0xff]  ;;  %v8911_v10 = vld [vmem:[#allocation41_spill] sm:$0xff] }
 0x48f   : > { %v3650_v25 = vadd.s32 3, %v3646_v23  ;;  %vm3649_vm2 = vweird.f32 %v7765_v39  ;;  %v3654_v1 = vxor.u32 2147483648, %v8217_v14  ;;  %v3657_v42 = vxor.u32 2147483648, %v8198_v60 }
 0x490   : > { %v4059_v44 = vsub.s32 4, %v8287_v49  ;;  %vm3861_vm6 = vcmp.eq.s32.totalorder %v3859_v19, 0  ;;  %vm3864_vm14 = vcmp.eq.s32.totalorder %v3859_v19, 2  ;;  %v3339_v27 = vand.u32 3, %v8904_v28 }
 0x491   : > { %v3651_v55 = vand.u32 3, %v3650_v25  ;;  %vm3860_vm8 = vcmp.lt.s32.totalorder %v3859_v19, 2  ;;  %v3863_v35 = vsel %vm3861_vm6, %v8375_v58, %v3862_v50  ;;  %v3866_v15 = vsel %vm3864_vm14, %v3865_v18, %v4802_v33  ;;  %v4077_v19 = vld [vmem:[%s8524_s7] sm:$0xf] }
 0x492   : > { %v4060_v45 = vsel %vm3975_vm5, %v4059_v44, %v8287_v49  ;;  %v3867_v34 = vsel %vm3860_vm8, %v3863_v35, %v3866_v15  ;;  %vm4065_vm15 = vweird.f32 %v8044_v47  ;;  %v8905_v49 = vld [vmem:[#allocation19_spill] sm:$0xff]  ;;  %vm3340_vm4 = vcmp.lt.s32.totalorder %v3339_v27, 2 }
 0x493   : > { %vm3653_vm13 = vcmp.eq.s32.totalorder %v3651_v55, 0  ;;  %vm3656_vm12 = vcmp.eq.s32.totalorder %v3651_v55, 2  ;;  %v3868_v20 = vsel %vm3857_vm10, nan, %v3867_v34  ;;  %v4062_v58 = vsel %vm8364_vm0, 0, %v4060_v45  ;;  %v4804_v21 = vpop.eup %4803 }
 0x494   : > { %v3655_v11 = vsel %vm3653_vm13, %v8198_v60, %v3654_v1  ;;  %v3658_v8 = vsel %vm3656_vm12, %v3657_v42, %v8217_v14  ;;  %v4490_v63 = vpack.c.bf16 %v3868_v20, %v3452_v30  ;;  %vm3652_vm7 = vcmp.lt.s32.totalorder %v3651_v55, 2  ;;  %v4806_v31 = vpop.eup %4805  ;;  %v8907_v14 = vld [vmem:[#allocation44_spill] sm:$0xff]  ;;  %v8912_v1 = vld [vmem:[#allocation23_spill] sm:$0xff] }
 0x495   : > { %v4066_v53 = vadd.s32 3, %v4062_v58  ;;  %vm3337_vm5 = vweird.f32 %v8905_v49  ;;  %v3659_v29 = vsel %vm3652_vm7, %v3655_v11, %v3658_v8  ;;  %v4073_v36 = vxor.u32 2147483648, %v4804_v21 }
 0x496   : > { %vm3341_vm3 = vcmp.eq.s32.totalorder %v3339_v27, 0  ;;  %v3342_v17 = vxor.u32 2147483648, %v8906_v9  ;;  %4491 = vmatprep.subr.bf16.mxu0 %v4490_v63  ;;  %v4070_v2 = vxor.u32 2147483648, %v4806_v31  ;;  %vm3344_vm1 = vcmp.eq.s32.totalorder %v3339_v27, 2  ;;  %v4082_v27 = vpop.permute.xlu0 %4081 }
 0x497   : > { %v4067_v60 = vand.u32 3, %v4066_v53  ;;  %v3345_v16 = vxor.u32 2147483648, %v8907_v14  ;;  %v3755_v13 = vand.u32 3, %v8908_v46  ;;  %v3758_v5 = vxor.u32 2147483648, %v8238_v32 }
 0x498   : > { %v3343_v37 = vsel %vm3341_vm3, %v8907_v14, %v3342_v17  ;;  %v3761_v52 = vxor.u32 2147483648, %v8235_v56  ;;  %v3660_v51 = vsel %vm3649_vm2, nan, %v3659_v29  ;;  %vm3753_vm10 = vweird.f32 %v7897_v22 }
 0x499   : > { %vm4069_vm0 = vcmp.eq.s32.totalorder %v4067_v60, 0  ;;  %vm4072_vm11 = vcmp.eq.s32.totalorder %v4067_v60, 2  ;;  %v3346_v61 = vsel %vm3344_vm1, %v3345_v16, %v8906_v9  ;;  %vm4068_vm9 = vcmp.lt.s32.totalorder %v4067_v60, 2 }
 0x49a   : > { %v4071_v59 = vsel %vm4069_vm0, %v4804_v21, %v4070_v2  ;;  %v4074_v7 = vsel %vm4072_vm11, %v4073_v36, %v4806_v31  ;;  %v3347_v54 = vsel %vm3340_vm4, %v3343_v37, %v3346_v61  ;;  %vm3757_vm6 = vcmp.eq.s32.totalorder %v3755_v13, 0 }
 0x49b   : > { %v4075_v41 = vsel %vm4068_vm9, %v4071_v59, %v4074_v7  ;;  %vm3760_vm14 = vcmp.eq.s32.totalorder %v3755_v13, 2  ;;  %vm3756_vm8 = vcmp.lt.s32.totalorder %v3755_v13, 2  ;;  %v3759_v39 = vsel %vm3757_vm6, %v8235_v56, %v3758_v5 }
 0x49c   : > { %v4076_v33 = vsel %vm4065_vm15, nan, %v4075_v41  ;;  %v3762_v38 = vsel %vm3760_vm14, %v3761_v52, %v8238_v32  ;;  %v3547_v4 = vand.u32 3, %v8909_v24  ;;  %v3550_v62 = vxor.u32 2147483648, %v8910_v12 }
 0x49d   : > { %v4498_v43 = vpack.c.bf16 %v4076_v33, %v3660_v51  ;;  %v3763_v57 = vsel %vm3756_vm8, %v3759_v39, %v3762_v38  ;;  %v3348_v22 = vsel %vm3337_vm5, nan, %v3347_v54  ;;  %v3553_v50 = vxor.u32 2147483648, %v8911_v10 }
 0x49e   : > { %v3764_v6 = vsel %vm3753_vm10, nan, %v3763_v57  ;;  %v3963_v47 = vand.u32 3, %v8404_v3  ;;  %vm3549_vm2 = vcmp.eq.s32.totalorder %v3547_v4, 0  ;;  %vm3552_vm13 = vcmp.eq.s32.totalorder %v3547_v4, 2 }
 0x49f   : > { %4499 = vmatprep.subr.bf16.mxu1 %v4498_v43  ;;  %v4492_v18 = vpack.c.bf16 %v3764_v6, %v3348_v22  ;;  %v3551_v32 = vsel %vm3549_vm2, %v8911_v10, %v3550_v62  ;;  %v3554_v56 = vsel %vm3552_vm13, %v3553_v50, %v8910_v12  ;;  %vm3548_vm12 = vcmp.lt.s32.totalorder %v3547_v4, 2 }
 0x4a0   : > { %v3966_v48 = vxor.u32 2147483648, %v8346_v40  ;;  %v3969_v23 = vxor.u32 2147483648, %v8324_v0  ;;  %v3555_v3 = vsel %vm3548_vm12, %v3551_v32, %v3554_v56  ;;  %vm3965_vm15 = vcmp.eq.s32.totalorder %v3963_v47, 0 }
 0x4a1   : > { %4493 = vmatpush1.bf16.msra.mxu0 %v4492_v18  ;;  %vm3968_vm7 = vcmp.eq.s32.totalorder %v3963_v47, 2  ;;  %vm3964_vm5 = vcmp.lt.s32.totalorder %v3963_v47, 2  ;;  %vm3545_vm4 = vweird.f32 %v8912_v1  ;;  %vm3961_vm3 = vweird.f32 %v7930_v26 }
 0x4a2   : > { %v3967_v25 = vsel %vm3965_vm15, %v8324_v0, %v3966_v48  ;;  %v3970_v30 = vsel %vm3968_vm7, %v3969_v23, %v8346_v40  ;;  %vm8913_vm1 = vcmask 261120   ;;  %v3556_v44 = vsel %vm3545_vm4, nan, %v3555_v3 }
 0x4a3   : > { %v3971_v42 = vsel %vm3964_vm5, %v3967_v25, %v3970_v30  ;;  %vm8914_vm0 = vmmov %vm8913_vm1 }
 0x4a4   : > { %4462 = vmatmul.mubr.msk.f32.vlgmr.msra.gmra.mrb[8].mxu0 %vm8913_vm1, %v4077_v19  ;;  %v3972_v55 = vsel %vm3961_vm3, nan, %v3971_v42 }
 0x4a5   : > { %v4500_v28 = vpack.c.bf16 %v3972_v55, %v3556_v44 }
 0x4a7   : > { %4501 = vmatpush1.bf16.msra.mxu1 %v4500_v28 }
 0x4aa   : > { %4463 = vmatmul.mubr.msk.f32.vlgmr.msra.gmra.mrb[8].mxu1 %vm8914_vm0, %v4077_v19 }
 0x577   : > { %v4153_v35 = vpop.f32.mrb[8].mxu0 }
 0x578   : > { %v4154_v0 = vadd.f32 %v4153_v35, %v4082_v27  ;;  %v4155_v40 = vpop.f32.mrb[9].mxu0 }
 0x579   : > { %v4156_v15 = vadd.f32 %v4155_v40, %v4082_v27 }
 0x57b   : > { %v4233_v45 = vcombine.low %v4154_v0, %v4156_v15 }
 0x57d   : > { %4237 = vst [vmem:[%s338_s27] sm:$0xff] %v4233_v45  ;;  %v4224_v26 = vpop.f32.mrb[8].mxu1 }
 0x57e   : > { %v4225_v34 = vadd.f32 %v4224_v26, %v4082_v27  ;;  %v4226_v20 = vpop.f32.mrb[9].mxu1 }
 0x57f   : > { %v4227_v11 = vadd.f32 %v4226_v20, %v4082_v27 }
 0x581   : > { %v4234_v8 = vcombine.low %v4225_v34, %v4227_v11 }
 0x583   : > { %4238 = vst [vmem:[%s338_s27 + $0x8] sm:$0xff] %v4234_v8 }
 0x584   : > { %4820 = shalt.err (!%p4817_p3)
}
 0x585   : > { %s4821_s24 = scalar_lea.hbm %s8475_s16, 256  ;;  %s4825_s28 = scalar_lea.hbm %s8526_s9, 512 }
 0x586   : > { %p4822_p4 = scmp.ne.s32.totalorder %s8475_s16, %s4821_s24  ;;  %p4826_p9 = scmp.lt.u32.totalorder %s8475_s16, %s8526_s9 }
 0x587   : > { %p4827_p10 = scmp.lt.u32.totalorder %s4825_s28, %s4821_s24  ;;  %p4829_p12 = scmp.lt.u32.totalorder %s4821_s24, %s8475_s16 }
 0x588   : > { %p4823_p7 = pnand %p4822_p4, %p4968_p5 }
 0x589   : > { %p4828_p11 = por %p4827_p10, %p4826_p9 }
 0x58a   : > { %p4824_p8 = pneg %p4823_p7 }
 0x58b   : > { %p4830_p13 = por %p4829_p12, %p4828_p11 }
 0x58d   : > { %p4831_p0 = pnand %p4830_p13, %p4824_p8 }
 0x58f   : > { %4834 = shalt.err (!%p4831_p0)
}
 0x590   : > { %4630 = dma.vmem_to_hbm [thread:$0]  (%p4968_p5), %s8477_s25, 256, %s8475_s16, %s4240_s17  }
 0x591 PF: > { %p4636_p1 = scmp.ge.s32.totalorder %s4869_s12, 2  ;;  %s4266_s21 = sand.u32 1, %s4857_s30  }
 0x592   : > { %s4267_s13 = scalar_lea.sflag [#allocation3], %s4266_s21 }
 0x593   : > { %p4633_p2 = pnand %p4636_p1, %p4972_p6 }
 0x595   : > { %4852 = dma.done.wait (!%p4633_p2), %s4267_s13, 256  }
 0x596   : > { %4854 = vsyncadd (!%p4633_p2), %s4267_s13, 4294967040  ;;  %p19_p3 = scmp.ge.s32.totalorder %s4955_s15, 4   ;;  %s8915_s30 = smov %s4861_s10 }
 0x597   : > { %s8916_s10 = smov %s4865_s11  ;;  %s8917_s11 = smov %s4966_s18 }
 0x598   : > { %s8918_s12 = smov %s4955_s15  ;;  %21 = sbr.rel (!%p19_p3) target bundleno = 3 (0x3), region = 94 }
 0x59f   :  { %4272 = vsyncpa [#allocation3], 1 }
 0x5a0   :  { %4274 = vsyncpa [#allocation3 + $0x1], 1 }

</bundles_post_ra>
